<compile_context>
chip_gen: v7x
topology: tpu7x:2x2x1
jax: 0.10.0
libtpu: 0.0.40
codegen_flags: <defaults>
</compile_context>

<pallas_src>
import functools
import math

import jax
import jax.numpy as jnp
from jax.experimental import pallas as pl
from jax.experimental.pallas import tpu as pltpu


VEC_NAMES = ("bq", "bk", "bv", "bo", "b1", "b2",
             "ln1_g", "ln1_b", "ln2_g", "ln2_b")
NVEC = len(VEC_NAMES)


def _layernorm(x, g, b, eps=1e-5):
    mu = jnp.mean(x, axis=-1, keepdims=True)
    var = jnp.mean((x - mu) ** 2, axis=-1, keepdims=True)
    return (x - mu) * jax.lax.rsqrt(var + eps) * g + b


def lmd_fused_kernel(nhead,
                     tgt_ref, mem_ref,
                     wq_ref, wk_ref, wv_ref, wo_ref, w1_ref, w2_ref,
                     vec_ref,
                     out_ref, attn_ref,
                     x_scratch):
    l = pl.program_id(2)
    n_layers = pl.num_programs(2)

    Tb, D = x_scratch.shape                      # row block, d_model
    S = mem_ref.shape[1]
    F = w1_ref.shape[2]
    H = nhead
    hd = D // H
    scale = 1.0 / math.sqrt(hd)

    # First layer of each (batch, row-block): load the residual stream into
    # VMEM.  Later layers read/write it in place (no HBM round trip).
    @pl.when(l == 0)
    def _():
        x_scratch[...] = tgt_ref[0].astype(jnp.float32)

    x = x_scratch[...]                           # (Tb, D) f32
    x_b = x.astype(jnp.bfloat16)
    m_b = mem_ref[0]                             # (S, D) already bf16

    # Packed per-layer vectors: one DMA, sliced here.
    vecs = vec_ref[0]                            # (NVEC, max(D, F)) f32
    bq = vecs[0:1, :D]
    bk = vecs[1:2, :D]
    bv = vecs[2:3, :D]
    bo = vecs[3:4, :D]
    b1 = vecs[4:5, :F]
    b2 = vecs[5:6, :D]
    ln1_g, ln1_b = vecs[6:7, :D], vecs[7:8, :D]
    ln2_g, ln2_b = vecs[8:9, :D], vecs[9:10, :D]

    # --- cross multi-head attention (folded-head batched einsums) ----------
    q = jnp.dot(x_b, wq_ref[0], preferred_element_type=jnp.float32) + bq   # (Tb, D)
    k = jnp.dot(m_b, wk_ref[0], preferred_element_type=jnp.float32) + bk   # (S, D)
    v = jnp.dot(m_b, wv_ref[0], preferred_element_type=jnp.float32) + bv   # (S, D)

    qh = q.reshape(Tb, H, hd).transpose(1, 0, 2).astype(jnp.bfloat16)      # (H, Tb, hd)
    kh = k.reshape(S, H, hd).transpose(1, 0, 2).astype(jnp.bfloat16)       # (H, S, hd)
    vh = v.reshape(S, H, hd).transpose(1, 0, 2).astype(jnp.bfloat16)       # (H, S, hd)

    s = jnp.einsum('htd,hsd->hts', qh, kh,
                   preferred_element_type=jnp.float32) * scale             # (H, Tb, S)
    # TODO(synk): additive memory_mask / memory_key_padding_mask on `s`.
    # TODO(synk): chunk S with an online softmax if the memory block is large.
    s_max = jnp.max(s, axis=-1, keepdims=True)
    p = jnp.exp(s - s_max)
    a = p / jnp.sum(p, axis=-1, keepdims=True)   # exact softmax (matches torch)

    ctx = jnp.einsum('hts,hsd->htd', a.astype(jnp.bfloat16), vh,
                     preferred_element_type=jnp.float32)                   # (H, Tb, hd)
    ctx2 = ctx.transpose(1, 0, 2).reshape(Tb, D)
    attn_out = jnp.dot(ctx2.astype(jnp.bfloat16), wo_ref[0],
                       preferred_element_type=jnp.float32) + bo

    # --- residual + LN1, FFN(ReLU) + residual + LN2 (f32 elementwise) ------
    y1 = _layernorm(x + attn_out, ln1_g, ln1_b)
    ff = jnp.dot(y1.astype(jnp.bfloat16), w1_ref[0],
                 preferred_element_type=jnp.float32) + b1
    ff = jnp.maximum(ff, 0.0)
    ff = jnp.dot(ff.astype(jnp.bfloat16), w2_ref[0],
                 preferred_element_type=jnp.float32) + b2
    y2 = _layernorm(y1 + ff, ln2_g, ln2_b)

    x_scratch[...] = y2

    # Only the last layer's output / head-averaged attention weights are live.
    @pl.when(l == n_layers - 1)
    def _():
        out_ref[0] = y2.astype(out_ref.dtype)
        attn_ref[0] = jnp.mean(a, axis=0).astype(attn_ref.dtype)


def _pick_t_block(T, requested=None):
    if requested is not None:
        if T % requested != 0 or (requested % 8 != 0 and requested != T):
            raise ValueError("t_block must divide T and be a multiple of 8 (or == T)")
        return requested
    for cand in (256, 128, 64, 32, 16, 8):       # prefer large M for the MXU
        if T % cand == 0:
            return cand
    return T                                      # ragged T: one full block


def _vmem_limit_bytes(tb, S, D, F, P, nhead):
    blk = (tb * D * 4            # tgt block (f32)
           + S * D * 2           # memory block (bf16)
           + 4 * D * D * 2       # wq, wk, wv, wo (bf16)
           + 2 * D * F * 2       # w1, w2 (bf16)
           + NVEC * P * 4        # packed vectors (f32)
           + tb * D * 4          # out block
           + tb * S * 4)         # attn block
    scratch = tb * D * 4
    acts = 4 * (2 * S * D + 4 * tb * D + 3 * nhead * tb * S + tb * F)
    need = 2 * blk + scratch + acts + (8 << 20)   # x2: double-buffered pipeline
    return int(min(need, 64 << 20))               # v7x physical VMEM cap


def lmd_forward(tgt_tbd, memory_sbd, layer_params, nhead,
                memory_mask=None, memory_key_padding_mask=None, t_block=None):
    """LMD.forward.  tgt (T,B,D), memory (S,B,D), seq-first (PyTorch layout).
    Returns (output (T,B,D), attn_output_weights (B,T,S) of the last layer)."""
    if memory_mask is not None or memory_key_padding_mask is not None:
        # TODO(synk): additive attention masking not implemented.
        raise NotImplementedError("memory masks not supported")

    num_layers = len(layer_params)
    # Seq-first -> batch-first, once per forward call (not per layer).
    tgt = jnp.transpose(tgt_tbd, (1, 0, 2)).astype(jnp.float32)      # (B, T, D)
    mem = jnp.transpose(memory_sbd, (1, 0, 2)).astype(jnp.bfloat16)  # (B, S, D) bf16 once
    B, T, D = tgt.shape
    S = mem.shape[1]
    F = layer_params[0]["w1"].shape[1]
    P = max(D, F)

    tb = _pick_t_block(T, t_block)
    TB = T // tb
    L = num_layers

    # MXU weights stacked per layer in bf16 (f32 accumulation in-kernel).
    def stack_w(name):
        return jnp.stack([p[name] for p in layer_params]).astype(jnp.bfloat16)
    wq, wk, wv, wo = stack_w("wq"), stack_w("wk"), stack_w("wv"), stack_w("wo")
    w1, w2 = stack_w("w1"), stack_w("w2")

    # Coalesce the 10 small per-layer vectors into one padded (L, 10, P) block.
    def _pad_vec(v):
        v = jnp.asarray(v, jnp.float32).reshape(-1)
        return jnp.pad(v, (0, P - v.shape[0]))
    vecs = jnp.stack([jnp.stack([_pad_vec(p[n]) for n in VEC_NAMES])
                      for p in layer_params])                        # (L, 10, P) f32

    grid = (B, TB, L)

    row_spec = lambda last: pl.BlockSpec((1, tb, last), lambda b, t, l: (b, t, 0))
    w_spec = lambda r, c: pl.BlockSpec((1, r, c), lambda b, t, l: (l, 0, 0))

    in_specs = [
        row_spec(D),                                          # tgt
        pl.BlockSpec((1, S, D), lambda b, t, l: (b, 0, 0)),   # memory (bf16)
        w_spec(D, D), w_spec(D, D), w_spec(D, D), w_spec(D, D),   # wq wk wv wo
        w_spec(D, F), w_spec(F, D),                               # w1 w2
        pl.BlockSpec((1, NVEC, P), lambda b, t, l: (l, 0, 0)),    # packed vectors
    ]
    out_specs = [row_spec(D), row_spec(S)]
    out_shape = [jax.ShapeDtypeStruct((B, T, D), jnp.float32),
                 jax.ShapeDtypeStruct((B, T, S), jnp.float32)]

    # Rough cost hint so XLA overlaps the surrounding transposes with the kernel.
    steps = B * TB * L
    flops_step = 2 * (tb * D * D + 2 * S * D * D + 2 * tb * S * D
                      + tb * D * D + 2 * tb * D * F)
    weight_bytes_step = (4 * D * D + 2 * D * F) * 2 + NVEC * P * 4
    cost = pl.CostEstimate(
        flops=flops_step * steps,
        transcendentals=nhead * tb * S * steps,
        bytes_accessed=(B * T * D * 4 + B * S * D * 2
                        + steps * weight_bytes_step
                        + B * T * D * 4 + B * T * S * 4))

    out, attn = pl.pallas_call(
        functools.partial(lmd_fused_kernel, nhead),
        grid=grid,
        in_specs=in_specs,
        out_specs=out_specs,
        out_shape=out_shape,
        scratch_shapes=[pltpu.VMEM((tb, D), jnp.float32)],
        compiler_params=pltpu.CompilerParams(
            dimension_semantics=("parallel", "parallel", "arbitrary"),
            vmem_limit_bytes=_vmem_limit_bytes(tb, S, D, F, P, nhead)),
        cost_estimate=cost,
    )(tgt, mem, wq, wk, wv, wo, w1, w2, vecs)

    # self.norm is None in this instantiation (no final norm applied).
    return jnp.transpose(out, (1, 0, 2)), attn


# ----------------------------- pure-JAX reference ---------------------------
def lmd_reference(tgt_tbd, memory_sbd, layer_params, nhead):
    x = jnp.transpose(tgt_tbd, (1, 0, 2)).astype(jnp.float32)
    m = jnp.transpose(memory_sbd, (1, 0, 2)).astype(jnp.float32)
    B, T, D = x.shape
    S = m.shape[1]
    hd = D // nhead
    attn_w = None
    for p in layer_params:
        q = x @ p["wq"] + p["bq"]
        k = m @ p["wk"] + p["bk"]
        v = m @ p["wv"] + p["bv"]
        qh = q.reshape(B, T, nhead, hd).transpose(0, 2, 1, 3)
        kh = k.reshape(B, S, nhead, hd).transpose(0, 2, 1, 3)
        vh = v.reshape(B, S, nhead, hd).transpose(0, 2, 1, 3)
        s = jnp.einsum('bhtd,bhsd->bhts', qh, kh) / math.sqrt(hd)
        a = jax.nn.softmax(s, axis=-1)
        ctx = jnp.einsum('bhts,bhsd->bhtd', a, vh)
        ctx = ctx.transpose(0, 2, 1, 3).reshape(B, T, D)
        attn_out = ctx @ p["wo"] + p["bo"]
        y1 = _layernorm(x + attn_out, p["ln1_g"], p["ln1_b"])
        ff = jnp.maximum(y1 @ p["w1"] + p["b1"], 0.0) @ p["w2"] + p["b2"]
        x = _layernorm(y1 + ff, p["ln2_g"], p["ln2_b"])
        attn_w = jnp.mean(a, axis=1)           # torch average_attn_weights=True
    return jnp.transpose(x, (1, 0, 2)), attn_w


def make_layer_params(key, d_model, dim_ff):
    ks = jax.random.split(key, 6)
    s = 0.02
    return {
        "wq": s * jax.random.normal(ks[0], (d_model, d_model), jnp.float32),
        "bq": jnp.zeros((1, d_model), jnp.float32),
        "wk": s * jax.random.normal(ks[1], (d_model, d_model), jnp.float32),
        "bk": jnp.zeros((1, d_model), jnp.float32),
        "wv": s * jax.random.normal(ks[2], (d_model, d_model), jnp.float32),
        "bv": jnp.zeros((1, d_model), jnp.float32),
        "wo": s * jax.random.normal(ks[3], (d_model, d_model), jnp.float32),
        "bo": jnp.zeros((1, d_model), jnp.float32),
        "w1": s * jax.random.normal(ks[4], (d_model, dim_ff), jnp.float32),
        "b1": jnp.zeros((1, dim_ff), jnp.float32),
        "w2": s * jax.random.normal(ks[5], (dim_ff, d_model), jnp.float32),
        "b2": jnp.zeros((1, d_model), jnp.float32),
        "ln1_g": jnp.ones((1, d_model), jnp.float32),
        "ln1_b": jnp.zeros((1, d_model), jnp.float32),
        "ln2_g": jnp.ones((1, d_model), jnp.float32),
        "ln2_b": jnp.zeros((1, d_model), jnp.float32),
    }


if __name__ == "__main__":
    # Small but lane-dense demo shapes (D, S multiples of 128 -> unmasked vst).
    B, T, S, D = 2, 32, 128, 128
    NHEAD, DIM_FF, NUM_LAYERS = 4, 256, 2

    key = jax.random.PRNGKey(0)
    k_tgt, k_mem, k_par = jax.random.split(key, 3)

    tgt = jax.random.normal(k_tgt, (T, B, D), jnp.float32)       # seq-first
    memory = jax.random.normal(k_mem, (S, B, D), jnp.float32)    # seq-first

    # _get_clones deep-copies one layer -> identical params in every layer.
    base_params = make_layer_params(k_par, D, DIM_FF)
    layer_params = [base_params for _ in range(NUM_LAYERS)]

    out, attn = lmd_forward(tgt, memory, layer_params, NHEAD, t_block=16)
    out = jax.block_until_ready(out)
    attn = jax.block_until_ready(attn)

    assert out.shape == (T, B, D), out.shape
    assert attn.shape == (B, T, S), attn.shape
    assert bool(jnp.all(jnp.isfinite(out))) and bool(jnp.all(jnp.isfinite(attn)))

    ref_out, ref_attn = lmd_reference(tgt, memory, layer_params, NHEAD)
    assert bool(jnp.allclose(out, ref_out, atol=5e-2, rtol=5e-2)), \
        float(jnp.max(jnp.abs(out - ref_out)))
    assert bool(jnp.allclose(attn, ref_attn, atol=2e-2, rtol=2e-2)), \
        float(jnp.max(jnp.abs(attn - ref_attn)))

    print("KERNEL_OK")
</pallas_src>

<mosaic_0001>
module attributes {stable_mosaic.version = 11 : i64} {
  func.func @lmd_fused_kernel(%arg0: i32, %arg1: i32, %arg2: i32, %arg3: memref<1x16x128xf32, #tpu.memory_space<vmem>>, %arg4: memref<1x128x128xbf16, #tpu.memory_space<vmem>>, %arg5: memref<1x128x128xbf16, #tpu.memory_space<vmem>>, %arg6: memref<1x128x128xbf16, #tpu.memory_space<vmem>>, %arg7: memref<1x128x128xbf16, #tpu.memory_space<vmem>>, %arg8: memref<1x128x128xbf16, #tpu.memory_space<vmem>>, %arg9: memref<1x128x256xbf16, #tpu.memory_space<vmem>>, %arg10: memref<1x256x128xbf16, #tpu.memory_space<vmem>>, %arg11: memref<1x10x256xf32, #tpu.memory_space<vmem>>, %arg12: memref<1x16x128xf32, #tpu.memory_space<vmem>>, %arg13: memref<1x16x128xf32, #tpu.memory_space<vmem>>, %arg14: memref<16x128xf32, #tpu.memory_space<vmem>>) attributes {dimension_semantics = [#tpu.dimension_semantics<parallel>, #tpu.dimension_semantics<parallel>, #tpu.dimension_semantics<arbitrary>], iteration_bounds = array<i64: 2, 2, 2>, scalar_prefetch = 0 : i64, scratch_operands = 1 : i64, tpu.core_type = #tpu.core_type<tc>, window_params = [{transform_indices = @transform_0, window_bounds = array<i64: 1, 16, 128>}, {transform_indices = @transform_1, window_bounds = array<i64: 1, 128, 128>}, {transform_indices = @transform_2, window_bounds = array<i64: 1, 128, 128>}, {transform_indices = @transform_3, window_bounds = array<i64: 1, 128, 128>}, {transform_indices = @transform_4, window_bounds = array<i64: 1, 128, 128>}, {transform_indices = @transform_5, window_bounds = array<i64: 1, 128, 128>}, {transform_indices = @transform_6, window_bounds = array<i64: 1, 128, 256>}, {transform_indices = @transform_7, window_bounds = array<i64: 1, 256, 128>}, {transform_indices = @transform_8, window_bounds = array<i64: 1, 10, 256>}, {transform_indices = @transform_9, window_bounds = array<i64: 1, 16, 128>}, {transform_indices = @transform_10, window_bounds = array<i64: 1, 16, 128>}]} {
    %c0_i32 = arith.constant 0 : i32
    %0 = arith.cmpi eq, %arg2, %c0_i32 : i32
    %1 = arith.extui %0 : i1 to i32
    %c0_i32_0 = arith.constant 0 : i32
    %2 = arith.cmpi ne, %1, %c0_i32_0 : i32
    scf.if %2 {
      %c0_50 = arith.constant 0 : index
      %c0_51 = arith.constant 0 : index
      %c0_52 = arith.constant 0 : index
      %129 = vector.load %arg3[%c0_50, %c0_51, %c0_52] : memref<1x16x128xf32, #tpu.memory_space<vmem>>, vector<1x16x128xf32>
      %130 = vector.shape_cast %129 : vector<1x16x128xf32> to vector<16x128xf32>
      %c0_53 = arith.constant 0 : index
      %c0_54 = arith.constant 0 : index
      %131 = vector.load %arg14[%c0_53, %c0_54] : memref<16x128xf32, #tpu.memory_space<vmem>>, vector<16x128xf32>
      tpu.vector_store %arg14[%c0_53, %c0_54], %130 {strides = array<i32>} : memref<16x128xf32, #tpu.memory_space<vmem>>, vector<16x128xf32>,
    } else {
    }
    %c0 = arith.constant 0 : index
    %c0_1 = arith.constant 0 : index
    %3 = vector.load %arg14[%c0, %c0_1] : memref<16x128xf32, #tpu.memory_space<vmem>>, vector<16x128xf32>
    %4 = arith.truncf %3 : vector<16x128xf32> to vector<16x128xbf16>
    %c0_2 = arith.constant 0 : index
    %c0_3 = arith.constant 0 : index
    %c0_4 = arith.constant 0 : index
    %5 = vector.load %arg4[%c0_2, %c0_3, %c0_4] : memref<1x128x128xbf16, #tpu.memory_space<vmem>>, vector<1x128x128xbf16>
    %6 = vector.shape_cast %5 : vector<1x128x128xbf16> to vector<128x128xbf16>
    %c0_5 = arith.constant 0 : index
    %c0_6 = arith.constant 0 : index
    %c0_7 = arith.constant 0 : index
    %7 = vector.load %arg11[%c0_5, %c0_6, %c0_7] : memref<1x10x256xf32, #tpu.memory_space<vmem>>, vector<1x10x256xf32>
    %8 = vector.shape_cast %7 : vector<1x10x256xf32> to vector<10x256xf32>
    %9 = vector.extract_strided_slice %8 {offsets = [0, 0], sizes = [1, 128], strides = [1, 1]} : vector<10x256xf32> to vector<1x128xf32>
    %10 = vector.extract_strided_slice %8 {offsets = [1, 0], sizes = [1, 128], strides = [1, 1]} : vector<10x256xf32> to vector<1x128xf32>
    %11 = vector.extract_strided_slice %8 {offsets = [2, 0], sizes = [1, 128], strides = [1, 1]} : vector<10x256xf32> to vector<1x128xf32>
    %12 = vector.extract_strided_slice %8 {offsets = [3, 0], sizes = [1, 128], strides = [1, 1]} : vector<10x256xf32> to vector<1x128xf32>
    %13 = vector.extract_strided_slice %8 {offsets = [4, 0], sizes = [1, 256], strides = [1, 1]} : vector<10x256xf32> to vector<1x256xf32>
    %14 = vector.extract_strided_slice %8 {offsets = [5, 0], sizes = [1, 128], strides = [1, 1]} : vector<10x256xf32> to vector<1x128xf32>
    %15 = vector.extract_strided_slice %8 {offsets = [6, 0], sizes = [1, 128], strides = [1, 1]} : vector<10x256xf32> to vector<1x128xf32>
    %16 = vector.extract_strided_slice %8 {offsets = [7, 0], sizes = [1, 128], strides = [1, 1]} : vector<10x256xf32> to vector<1x128xf32>
    %17 = vector.extract_strided_slice %8 {offsets = [8, 0], sizes = [1, 128], strides = [1, 1]} : vector<10x256xf32> to vector<1x128xf32>
    %18 = vector.extract_strided_slice %8 {offsets = [9, 0], sizes = [1, 128], strides = [1, 1]} : vector<10x256xf32> to vector<1x128xf32>
    %c0_8 = arith.constant 0 : index
    %c0_9 = arith.constant 0 : index
    %c0_10 = arith.constant 0 : index
    %19 = vector.load %arg5[%c0_8, %c0_9, %c0_10] : memref<1x128x128xbf16, #tpu.memory_space<vmem>>, vector<1x128x128xbf16>
    %20 = vector.shape_cast %19 : vector<1x128x128xbf16> to vector<128x128xbf16>
    %cst = arith.constant dense<0.000000e+00> : vector<16x128xf32>
    %21 = tpu.matmul %4, %20, %cst {dimension_numbers = #tpu.dot_dimension_numbers<[1], [0], [0], [1], [0, 0, 1, 1], [], []>} : vector<16x128xbf16>, vector<128x128xbf16>, vector<16x128xf32> -> vector<16x128xf32>
    %22 = vector.broadcast %9 : vector<1x128xf32> to vector<16x128xf32>
    %23 = arith.addf %21, %22 : vector<16x128xf32>
    %c0_11 = arith.constant 0 : index
    %c0_12 = arith.constant 0 : index
    %c0_13 = arith.constant 0 : index
    %24 = vector.load %arg6[%c0_11, %c0_12, %c0_13] : memref<1x128x128xbf16, #tpu.memory_space<vmem>>, vector<1x128x128xbf16>
    %25 = vector.shape_cast %24 : vector<1x128x128xbf16> to vector<128x128xbf16>
    %cst_14 = arith.constant dense<0.000000e+00> : vector<128x128xf32>
    %26 = tpu.matmul %6, %25, %cst_14 {dimension_numbers = #tpu.dot_dimension_numbers<[1], [0], [0], [1], [0, 0, 1, 1], [], []>} : vector<128x128xbf16>, vector<128x128xbf16>, vector<128x128xf32> -> vector<128x128xf32>
    %27 = vector.broadcast %10 : vector<1x128xf32> to vector<128x128xf32>
    %28 = arith.addf %26, %27 : vector<128x128xf32>
    %c0_15 = arith.constant 0 : index
    %c0_16 = arith.constant 0 : index
    %c0_17 = arith.constant 0 : index
    %29 = vector.load %arg7[%c0_15, %c0_16, %c0_17] : memref<1x128x128xbf16, #tpu.memory_space<vmem>>, vector<1x128x128xbf16>
    %30 = vector.shape_cast %29 : vector<1x128x128xbf16> to vector<128x128xbf16>
    %cst_18 = arith.constant dense<0.000000e+00> : vector<128x128xf32>
    %31 = tpu.matmul %6, %30, %cst_18 {dimension_numbers = #tpu.dot_dimension_numbers<[1], [0], [0], [1], [0, 0, 1, 1], [], []>} : vector<128x128xbf16>, vector<128x128xbf16>, vector<128x128xf32> -> vector<128x128xf32>
    %32 = vector.broadcast %11 : vector<1x128xf32> to vector<128x128xf32>
    %33 = arith.addf %31, %32 : vector<128x128xf32>
    %34 = vector.shape_cast %23 : vector<16x128xf32> to vector<16x4x32xf32>
    %35 = tpu.transpose %34, [1, 0, 2] : vector<16x4x32xf32> -> vector<4x16x32xf32>
    %36 = arith.truncf %35 : vector<4x16x32xf32> to vector<4x16x32xbf16>
    %37 = vector.shape_cast %28 : vector<128x128xf32> to vector<128x4x32xf32>
    %38 = tpu.transpose %37, [1, 0, 2] : vector<128x4x32xf32> -> vector<4x128x32xf32>
    %39 = arith.truncf %38 : vector<4x128x32xf32> to vector<4x128x32xbf16>
    %40 = vector.shape_cast %33 : vector<128x128xf32> to vector<128x4x32xf32>
    %41 = tpu.transpose %40, [1, 0, 2] : vector<128x4x32xf32> -> vector<4x128x32xf32>
    %42 = arith.truncf %41 : vector<4x128x32xf32> to vector<4x128x32xbf16>
    "tpu.trace_start"() <{level = 10 : i32, message = "htd,hsd->hts"}> : () -> ()
    %cst_19 = arith.constant dense<0.000000e+00> : vector<4x16x128xf32>
    %43 = tpu.matmul %36, %39, %cst_19 {dimension_numbers = #tpu.dot_dimension_numbers<[2], [2], [1], [1], [0, 0, 0, 1, 1, 1], [0], [0]>} : vector<4x16x32xbf16>, vector<4x128x32xbf16>, vector<4x16x128xf32> -> vector<4x16x128xf32>
    "tpu.trace_stop"() : () -> ()
    %cst_20 = arith.constant 0.176776692 : f32
    %44 = vector.broadcast %cst_20 : f32 to vector<4x16x128xf32>
    %45 = arith.mulf %43, %44 : vector<4x16x128xf32>
    %cst_21 = arith.constant dense<0xFF800000> : vector<4x16xf32>
    %46 = vector.multi_reduction <maximumf>, %45, %cst_21 [2] : vector<4x16x128xf32> to vector<4x16xf32>
    %47 = vector.shape_cast %46 : vector<4x16xf32> to vector<4x16x1xf32>
    %48 = vector.broadcast %47 : vector<4x16x1xf32> to vector<4x16x128xf32>
    %49 = arith.subf %45, %48 : vector<4x16x128xf32>
    %50 = math.exp %49 : vector<4x16x128xf32>
    %cst_22 = arith.constant dense<0.000000e+00> : vector<4x16xf32>
    %51 = vector.multi_reduction <add>, %50, %cst_22 [2] : vector<4x16x128xf32> to vector<4x16xf32>
    %52 = vector.shape_cast %51 : vector<4x16xf32> to vector<4x16x1xf32>
    %53 = vector.broadcast %52 : vector<4x16x1xf32> to vector<4x16x128xf32>
    %54 = arith.divf %50, %53 : vector<4x16x128xf32>
    %55 = arith.truncf %54 : vector<4x16x128xf32> to vector<4x16x128xbf16>
    "tpu.trace_start"() <{level = 10 : i32, message = "hts,hsd->htd"}> : () -> ()
    %cst_23 = arith.constant dense<0.000000e+00> : vector<4x16x32xf32>
    %56 = tpu.matmul %55, %42, %cst_23 {dimension_numbers = #tpu.dot_dimension_numbers<[2], [1], [1], [2], [0, 0, 0, 1, 1, 2], [0], [0]>} : vector<4x16x128xbf16>, vector<4x128x32xbf16>, vector<4x16x32xf32> -> vector<4x16x32xf32>
    "tpu.trace_stop"() : () -> ()
    %57 = tpu.transpose %56, [1, 0, 2] : vector<4x16x32xf32> -> vector<16x4x32xf32>
    %58 = vector.shape_cast %57 : vector<16x4x32xf32> to vector<16x128xf32>
    %59 = arith.truncf %58 : vector<16x128xf32> to vector<16x128xbf16>
    %c0_24 = arith.constant 0 : index
    %c0_25 = arith.constant 0 : index
    %c0_26 = arith.constant 0 : index
    %60 = vector.load %arg8[%c0_24, %c0_25, %c0_26] : memref<1x128x128xbf16, #tpu.memory_space<vmem>>, vector<1x128x128xbf16>
    %61 = vector.shape_cast %60 : vector<1x128x128xbf16> to vector<128x128xbf16>
    %cst_27 = arith.constant dense<0.000000e+00> : vector<16x128xf32>
    %62 = tpu.matmul %59, %61, %cst_27 {dimension_numbers = #tpu.dot_dimension_numbers<[1], [0], [0], [1], [0, 0, 1, 1], [], []>} : vector<16x128xbf16>, vector<128x128xbf16>, vector<16x128xf32> -> vector<16x128xf32>
    %63 = vector.broadcast %12 : vector<1x128xf32> to vector<16x128xf32>
    %64 = arith.addf %62, %63 : vector<16x128xf32>
    %65 = arith.addf %3, %64 : vector<16x128xf32>
    %cst_28 = arith.constant dense<0.000000e+00> : vector<16xf32>
    %66 = vector.multi_reduction <add>, %65, %cst_28 [1] : vector<16x128xf32> to vector<16xf32>
    %67 = vector.shape_cast %66 : vector<16xf32> to vector<16x1xf32>
    %cst_29 = arith.constant 1.280000e+02 : f32
    %68 = vector.broadcast %cst_29 : f32 to vector<16x1xf32>
    %69 = arith.divf %67, %68 : vector<16x1xf32>
    %70 = vector.broadcast %69 : vector<16x1xf32> to vector<16x128xf32>
    %71 = arith.subf %65, %70 : vector<16x128xf32>
    %72 = arith.mulf %71, %71 : vector<16x128xf32>
    %cst_30 = arith.constant dense<0.000000e+00> : vector<16xf32>
    %73 = vector.multi_reduction <add>, %72, %cst_30 [1] : vector<16x128xf32> to vector<16xf32>
    %74 = vector.shape_cast %73 : vector<16xf32> to vector<16x1xf32>
    %cst_31 = arith.constant 1.280000e+02 : f32
    %75 = vector.broadcast %cst_31 : f32 to vector<16x1xf32>
    %76 = arith.divf %74, %75 : vector<16x1xf32>
    %77 = vector.broadcast %69 : vector<16x1xf32> to vector<16x128xf32>
    %78 = arith.subf %65, %77 : vector<16x128xf32>
    %cst_32 = arith.constant 9.99999974E-6 : f32
    %79 = vector.broadcast %cst_32 : f32 to vector<16x1xf32>
    %80 = arith.addf %76, %79 : vector<16x1xf32>
    %81 = math.rsqrt %80 : vector<16x1xf32>
    %82 = vector.broadcast %81 : vector<16x1xf32> to vector<16x128xf32>
    %83 = arith.mulf %78, %82 : vector<16x128xf32>
    %84 = vector.broadcast %15 : vector<1x128xf32> to vector<16x128xf32>
    %85 = arith.mulf %83, %84 : vector<16x128xf32>
    %86 = vector.broadcast %16 : vector<1x128xf32> to vector<16x128xf32>
    %87 = arith.addf %85, %86 : vector<16x128xf32>
    %88 = arith.truncf %87 : vector<16x128xf32> to vector<16x128xbf16>
    %c0_33 = arith.constant 0 : index
    %c0_34 = arith.constant 0 : index
    %c0_35 = arith.constant 0 : index
    %89 = vector.load %arg9[%c0_33, %c0_34, %c0_35] : memref<1x128x256xbf16, #tpu.memory_space<vmem>>, vector<1x128x256xbf16>
    %90 = vector.shape_cast %89 : vector<1x128x256xbf16> to vector<128x256xbf16>
    %cst_36 = arith.constant dense<0.000000e+00> : vector<16x256xf32>
    %91 = tpu.matmul %88, %90, %cst_36 {dimension_numbers = #tpu.dot_dimension_numbers<[1], [0], [0], [1], [0, 0, 1, 1], [], []>} : vector<16x128xbf16>, vector<128x256xbf16>, vector<16x256xf32> -> vector<16x256xf32>
    %92 = vector.broadcast %13 : vector<1x256xf32> to vector<16x256xf32>
    %93 = arith.addf %91, %92 : vector<16x256xf32>
    %cst_37 = arith.constant 0.000000e+00 : f32
    %94 = vector.broadcast %cst_37 : f32 to vector<16x256xf32>
    %95 = arith.maximumf %93, %94 : vector<16x256xf32>
    %96 = arith.truncf %95 : vector<16x256xf32> to vector<16x256xbf16>
    %c0_38 = arith.constant 0 : index
    %c0_39 = arith.constant 0 : index
    %c0_40 = arith.constant 0 : index
    %97 = vector.load %arg10[%c0_38, %c0_39, %c0_40] : memref<1x256x128xbf16, #tpu.memory_space<vmem>>, vector<1x256x128xbf16>
    %98 = vector.shape_cast %97 : vector<1x256x128xbf16> to vector<256x128xbf16>
    %cst_41 = arith.constant dense<0.000000e+00> : vector<16x128xf32>
    %99 = tpu.matmul %96, %98, %cst_41 {dimension_numbers = #tpu.dot_dimension_numbers<[1], [0], [0], [1], [0, 0, 1, 1], [], []>} : vector<16x256xbf16>, vector<256x128xbf16>, vector<16x128xf32> -> vector<16x128xf32>
    %100 = vector.broadcast %14 : vector<1x128xf32> to vector<16x128xf32>
    %101 = arith.addf %99, %100 : vector<16x128xf32>
    %102 = arith.addf %87, %101 : vector<16x128xf32>
    %cst_42 = arith.constant dense<0.000000e+00> : vector<16xf32>
    %103 = vector.multi_reduction <add>, %102, %cst_42 [1] : vector<16x128xf32> to vector<16xf32>
    %104 = vector.shape_cast %103 : vector<16xf32> to vector<16x1xf32>
    %cst_43 = arith.constant 1.280000e+02 : f32
    %105 = vector.broadcast %cst_43 : f32 to vector<16x1xf32>
    %106 = arith.divf %104, %105 : vector<16x1xf32>
    %107 = vector.broadcast %106 : vector<16x1xf32> to vector<16x128xf32>
    %108 = arith.subf %102, %107 : vector<16x128xf32>
    %109 = arith.mulf %108, %108 : vector<16x128xf32>
    %cst_44 = arith.constant dense<0.000000e+00> : vector<16xf32>
    %110 = vector.multi_reduction <add>, %109, %cst_44 [1] : vector<16x128xf32> to vector<16xf32>
    %111 = vector.shape_cast %110 : vector<16xf32> to vector<16x1xf32>
    %cst_45 = arith.constant 1.280000e+02 : f32
    %112 = vector.broadcast %cst_45 : f32 to vector<16x1xf32>
    %113 = arith.divf %111, %112 : vector<16x1xf32>
    %114 = vector.broadcast %106 : vector<16x1xf32> to vector<16x128xf32>
    %115 = arith.subf %102, %114 : vector<16x128xf32>
    %cst_46 = arith.constant 9.99999974E-6 : f32
    %116 = vector.broadcast %cst_46 : f32 to vector<16x1xf32>
    %117 = arith.addf %113, %116 : vector<16x1xf32>
    %118 = math.rsqrt %117 : vector<16x1xf32>
    %119 = vector.broadcast %118 : vector<16x1xf32> to vector<16x128xf32>
    %120 = arith.mulf %115, %119 : vector<16x128xf32>
    %121 = vector.broadcast %17 : vector<1x128xf32> to vector<16x128xf32>
    %122 = arith.mulf %120, %121 : vector<16x128xf32>
    %123 = vector.broadcast %18 : vector<1x128xf32> to vector<16x128xf32>
    %124 = arith.addf %122, %123 : vector<16x128xf32>
    %c0_47 = arith.constant 0 : index
    %c0_48 = arith.constant 0 : index
    %125 = vector.load %arg14[%c0_47, %c0_48] : memref<16x128xf32, #tpu.memory_space<vmem>>, vector<16x128xf32>
    tpu.vector_store %arg14[%c0_47, %c0_48], %124 {strides = array<i32>} : memref<16x128xf32, #tpu.memory_space<vmem>>, vector<16x128xf32>,
    %c1_i32 = arith.constant 1 : i32
    %126 = arith.cmpi eq, %arg2, %c1_i32 : i32
    %127 = arith.extui %126 : i1 to i32
    %c0_i32_49 = arith.constant 0 : i32
    %128 = arith.cmpi ne, %127, %c0_i32_49 : i32
    scf.if %128 {
      %c0_50 = arith.constant 0 : index
      %c0_51 = arith.constant 0 : index
      %c0_52 = arith.constant 0 : index
      %129 = vector.load %arg12[%c0_50, %c0_51, %c0_52] : memref<1x16x128xf32, #tpu.memory_space<vmem>>, vector<1x16x128xf32>
      %130 = vector.shape_cast %129 : vector<1x16x128xf32> to vector<16x128xf32>
      %131 = vector.shape_cast %124 : vector<16x128xf32> to vector<1x16x128xf32>
      tpu.vector_store %arg12[%c0_50, %c0_51, %c0_52], %131 {strides = array<i32>} : memref<1x16x128xf32, #tpu.memory_space<vmem>>, vector<1x16x128xf32>,
      %cst_53 = arith.constant dense<0.000000e+00> : vector<16x128xf32>
      %132 = vector.multi_reduction <add>, %54, %cst_53 [0] : vector<4x16x128xf32> to vector<16x128xf32>
      %cst_54 = arith.constant 4.000000e+00 : f32
      %133 = vector.broadcast %cst_54 : f32 to vector<16x128xf32>
      %134 = arith.divf %132, %133 : vector<16x128xf32>
      %c0_55 = arith.constant 0 : index
      %c0_56 = arith.constant 0 : index
      %c0_57 = arith.constant 0 : index
      %135 = vector.load %arg13[%c0_55, %c0_56, %c0_57] : memref<1x16x128xf32, #tpu.memory_space<vmem>>, vector<1x16x128xf32>
      %136 = vector.shape_cast %135 : vector<1x16x128xf32> to vector<16x128xf32>
      %137 = vector.shape_cast %134 : vector<16x128xf32> to vector<1x16x128xf32>
      tpu.vector_store %arg13[%c0_55, %c0_56, %c0_57], %137 {strides = array<i32>} : memref<1x16x128xf32, #tpu.memory_space<vmem>>, vector<1x16x128xf32>,
    } else {
    }
    return
  }
  func.func @transform_0(%arg0: i32, %arg1: i32, %arg2: i32) -> (i32, i32, i32) {
    %c0_i32 = arith.constant 0 : i32
    %c0_i32_0 = arith.constant 0 : i32
    return %arg0, %arg1, %c0_i32 : i32, i32, i32
  }
  func.func @transform_1(%arg0: i32, %arg1: i32, %arg2: i32) -> (i32, i32, i32) {
    %c0_i32 = arith.constant 0 : i32
    %c0_i32_0 = arith.constant 0 : i32
    %c0_i32_1 = arith.constant 0 : i32
    return %arg0, %c0_i32, %c0_i32_0 : i32, i32, i32
  }
  func.func @transform_2(%arg0: i32, %arg1: i32, %arg2: i32) -> (i32, i32, i32) {
    %c0_i32 = arith.constant 0 : i32
    %c0_i32_0 = arith.constant 0 : i32
    %c0_i32_1 = arith.constant 0 : i32
    return %arg2, %c0_i32, %c0_i32_0 : i32, i32, i32
  }
  func.func @transform_3(%arg0: i32, %arg1: i32, %arg2: i32) -> (i32, i32, i32) {
    %c0_i32 = arith.constant 0 : i32
    %c0_i32_0 = arith.constant 0 : i32
    %c0_i32_1 = arith.constant 0 : i32
    return %arg2, %c0_i32, %c0_i32_0 : i32, i32, i32
  }
  func.func @transform_4(%arg0: i32, %arg1: i32, %arg2: i32) -> (i32, i32, i32) {
    %c0_i32 = arith.constant 0 : i32
    %c0_i32_0 = arith.constant 0 : i32
    %c0_i32_1 = arith.constant 0 : i32
    return %arg2, %c0_i32, %c0_i32_0 : i32, i32, i32
  }
  func.func @transform_5(%arg0: i32, %arg1: i32, %arg2: i32) -> (i32, i32, i32) {
    %c0_i32 = arith.constant 0 : i32
    %c0_i32_0 = arith.constant 0 : i32
    %c0_i32_1 = arith.constant 0 : i32
    return %arg2, %c0_i32, %c0_i32_0 : i32, i32, i32
  }
  func.func @transform_6(%arg0: i32, %arg1: i32, %arg2: i32) -> (i32, i32, i32) {
    %c0_i32 = arith.constant 0 : i32
    %c0_i32_0 = arith.constant 0 : i32
    %c0_i32_1 = arith.constant 0 : i32
    return %arg2, %c0_i32, %c0_i32_0 : i32, i32, i32
  }
  func.func @transform_7(%arg0: i32, %arg1: i32, %arg2: i32) -> (i32, i32, i32) {
    %c0_i32 = arith.constant 0 : i32
    %c0_i32_0 = arith.constant 0 : i32
    %c0_i32_1 = arith.constant 0 : i32
    return %arg2, %c0_i32, %c0_i32_0 : i32, i32, i32
  }
  func.func @transform_8(%arg0: i32, %arg1: i32, %arg2: i32) -> (i32, i32, i32) {
    %c0_i32 = arith.constant 0 : i32
    %c0_i32_0 = arith.constant 0 : i32
    %c0_i32_1 = arith.constant 0 : i32
    return %arg2, %c0_i32, %c0_i32_0 : i32, i32, i32
  }
  func.func @transform_9(%arg0: i32, %arg1: i32, %arg2: i32) -> (i32, i32, i32) {
    %c0_i32 = arith.constant 0 : i32
    %c0_i32_0 = arith.constant 0 : i32
    return %arg0, %arg1, %c0_i32 : i32, i32, i32
  }
  func.func @transform_10(%arg0: i32, %arg1: i32, %arg2: i32) -> (i32, i32, i32) {
    %c0_i32 = arith.constant 0 : i32
    %c0_i32_0 = arith.constant 0 : i32
    return %arg0, %arg1, %c0_i32 : i32, i32, i32
  }
}

</mosaic_0001>

<bundles_post_ra>
// kernel: tpu_custom_call.1
= control target key start
LH: loop header
LB: loop body
LE: loop exit
PB: predicated region body
PF: predicated region fallthrough
CT: control target
= control target key end

     0   :  { %s12446_s0 = inlined_call_operand.vmem [shape: f32[2,32,128], index: 0, kind: input, shape index: {}]   ;;  %s12447_s1 = inlined_call_operand.hbm [shape: bf16[2,128,128], index: 1, kind: input, shape index: {}]   ;;  %s12448_s2 = inlined_call_operand.hbm [shape: bf16[2,128,128], index: 2, kind: input, shape index: {}]   ;;  %s12449_s3 = inlined_call_operand.hbm [shape: bf16[2,128,128], index: 3, kind: input, shape index: {}]   ;;  %s12450_s4 = inlined_call_operand.hbm [shape: bf16[2,128,128], index: 4, kind: input, shape index: {}]   ;;  %s12451_s5 = inlined_call_operand.hbm [shape: bf16[2,128,128], index: 5, kind: input, shape index: {}]   ;;  %s12452_s6 = inlined_call_operand.hbm [shape: bf16[2,128,256], index: 6, kind: input, shape index: {}]   ;;  %s12453_s7 = inlined_call_operand.hbm [shape: bf16[2,256,128], index: 7, kind: input, shape index: {}]   ;;  %s12454_s8 = inlined_call_operand.vmem [shape: f32[2,10,256], index: 8, kind: input, shape index: {}]   ;;  %s12455_s9 = inlined_call_operand.hbm [shape: f32[2,32,128], index: 9, kind: output, shape index: {0}]   ;;  %s12456_s10 = inlined_call_operand.hbm [shape: f32[2,32,128], index: 10, kind: output, shape index: {1}]  }
   0x1   :  { %12562 = sst [smem:[#allocation104_spill]] %s12446_s0 }
   0x2   :  { %12563 = sst [smem:[#allocation105_spill]] %s12447_s1 }
   0x3   :  { %12564 = sst [smem:[#allocation106_spill]] %s12448_s2 }
   0x4   :  { %12565 = sst [smem:[#allocation107_spill]] %s12449_s3 }
   0x5   :  { %12566 = sst [smem:[#allocation108_spill]] %s12450_s4 }
   0x6   :  { %12567 = sst [smem:[#allocation109_spill]] %s12451_s5 }
   0x7   :  { %12568 = sst [smem:[#allocation110_spill]] %s12452_s6 }
   0x8   :  { %12569 = sst [smem:[#allocation111_spill]] %s12453_s7 }
   0x9   :  { %12570 = sst [smem:[#allocation112_spill]] %s12454_s8 }
   0xa   :  { %12571 = sst [smem:[#allocation113_spill]] %s12455_s9 }
   0xb   :  { %12572 = sst [smem:[#allocation114_spill]] %s12456_s10 }
   0xc   :  { %16 = vsyncpa [#allocation4], 0 }
   0xd   :  { %18 = vsyncpa [#allocation4 + $0x1], 0 }
   0xe   :  { %19 = vsyncpa [#allocation7], 0 }
   0xf   :  { %21 = vsyncpa [#allocation7 + $0x1], 0 }
  0x10   :  { %22 = vsyncpa [#allocation10], 0 }
  0x11   :  { %24 = vsyncpa [#allocation10 + $0x1], 0 }
  0x12   :  { %25 = vsyncpa [#allocation13], 0 }
  0x13   :  { %27 = vsyncpa [#allocation13 + $0x1], 0 }
  0x14   :  { %28 = vsyncpa [#allocation5], 0 }
  0x15   :  { %30 = vsyncpa [#allocation5 + $0x1], 0 }
  0x16   :  { %31 = vsyncpa [#allocation17], 0 }
  0x17   :  { %33 = vsyncpa [#allocation17 + $0x1], 0  ;;  %s9372_s13 = smov 0   ;;  %s9374_s14 = smov 0  }
  0x18   :  { %s9376_s15 = smov 0   ;;  %s9378_s16 = smov 0  }
  0x19   :  { %s9380_s17 = smov 0   ;;  %s9382_s18 = smov 0  }
  0x1a   :  { %s9384_s19 = smov 0   ;;  %s9386_s20 = smov 0  }
  0x1b   :  { %s9388_s21 = smov 0   ;;  %s9390_s22 = smov 0  }
  0x1c   :  { %s9392_s23 = smov 0   ;;  %s9394_s24 = smov 0  }
  0x1d   :  { %s9396_s25 = smov 0   ;;  %s9398_s26 = smov 0  }
  0x1e   :  { %s9400_s27 = smov 0   ;;  %s9402_s28 = smov 0  }
  0x1f LB: > { %12573 = sst [smem:[#allocation24_spill]] %s9232_s13  ;;  %s51_s29 = sadd.s32 1, %s9280_s25  ;;  %s9292_s28 = sphi %s9402_s28, %s39_s28   ;;  %s9288_s27 = sphi %s9400_s27, %s12834_s27   ;;  %s9284_s26 = sphi %s9398_s26, %s12833_s26   ;;  %s9280_s25 = sphi %s9396_s25, %s12832_s25   ;;  %s9276_s24 = sphi %s9394_s24, %s12831_s24   ;;  %s9272_s23 = sphi %s9392_s23, %s12830_s23   ;;  %s9268_s22 = sphi %s9390_s22, %s12829_s22   ;;  %s9264_s21 = sphi %s9388_s21, %s12828_s21   ;;  %s9260_s20 = sphi %s9386_s20, %s12827_s20   ;;  %s9256_s19 = sphi %s9384_s19, %s12836_s19   ;;  %s9252_s18 = sphi %s9382_s18, %s12825_s18   ;;  %s9248_s17 = sphi %s9380_s17, %s12824_s17   ;;  %s9244_s16 = sphi %s9378_s16, %s12823_s16   ;;  %s9240_s15 = sphi %s9376_s15, %s12822_s15   ;;  %s9236_s14 = sphi %s9374_s14, %s12821_s14   ;;  %s9232_s13 = sphi %s9372_s13, %s12820_s13  }
  0x20   : > { %12574 = sst [smem:[#allocation25_spill]] %s9236_s14  ;;  %p12467_p0 = scmp.eq.s32.totalorder %s9292_s28, 0 }
  0x21   : > { %12575 = sst [smem:[#allocation26_spill]] %s9240_s15  ;;  %p9454_p1 = scmp.ge.s32.totalorder %s51_s29, 2 }
  0x22   : > { %12576 = sst [smem:[#allocation27_spill]] %s9248_s17  ;;  %s119_s11 = sadd.s32 1, %s9252_s18 }
  0x23   : > { %12577 = sst [smem:[#allocation28_spill]] %s9252_s18  ;;  %p126_p2 = scmp.ne.s32.totalorder %s9252_s18, %s9248_s17 }
  0x24   : > { %12578 = sst [smem:[#allocation29_spill]] %s9260_s20  ;;  %s12838_s29 = smov (%p9454_p1, %s51_s29), 0 }
  0x25   : > { %12579 = sst [smem:[#allocation30_spill]] %s9264_s21  ;;  %p128_p3 = por %p126_p2, %p12467_p0 }
  0x26   : > { %12580 = sst [smem:[#allocation31_spill]] %s9268_s22  ;;  %s116_s12 = ssub.s32 %s9280_s25, %s12838_s29 }
  0x27   : > { %12581 = sst [smem:[#allocation32_spill]] %s9272_s23  ;;  %p12466_p4 = scmp.lt.s32.totalorder %s9292_s28, 8 }
  0x28   : > { %12582 = sst [smem:[#allocation33_spill]] %s9276_s24  ;;  %p117_p5 = scmp.eq.s32.totalorder %s116_s12, 0 }
  0x29   : > { %12583 = sst [smem:[#allocation34_spill]] %s9280_s25  ;;  %s9471_s10 = sand.u32 1, %s9292_s28  }
  0x2a   : > { %12584 = sst [smem:[#allocation35_spill]] %s9284_s26  ;;  %s12463_s8 = sand.u32 1, %s9252_s18  }
  0x2b   : > { %12585 = sst [smem:[#allocation36_spill]] %s9288_s27  ;;  %s9479_s0 = sshll.u32 %s12463_s8, 6 }
  0x2c   : > { %s12586_s30 = scalar_select %p9454_p1, 1, 0 }
  0x2d   : > { %12587 = sst [smem:[#allocation37_spill]] %s12838_s29  ;;  %s9482_s22 = sshll.u32 %s9280_s25, 10 }
  0x2e   : > { %12588 = sst [smem:[#allocation38_spill]] %s9471_s10  ;;  %s12591_s2 = sld [smem:[#allocation106_spill]] }
  0x2f   : > { %s9474_s9 = scalar_select %p117_p5, %s9252_s18, %s119_s11  }
  0x30   : > { %12590 = sst [smem:[#allocation40_spill]] %s9482_s22  ;;  %s406_s12 = scalar_lea.vmem [#allocation6], %s9479_s0 }
  0x31   : > { %12589 = sst [smem:[#allocation39_spill]] %s9474_s9  ;;  %s413_s11 = sshll.u32 %s406_s12, 4  ;;  %s9497_s11 = int_to_ptr.vmem [resolvable:$true] %s413_s11 }
  0x32   : > { %p9493_p6 = pnand %p12466_p4, %p128_p3 }
  0x34   : > { %s9488_s5 = scalar_lea.hbm %s12591_s2, %s9482_s22  ;;  %p9506_p10 = pneg %p9493_p6 }
  0x35   : > { %s12592_s29 = scalar_select %p9493_p6, 1, 0 }
  0x36   : > { %s8876_s23 = scalar_lea.hbm %s9488_s5, 1024  ;;  %s8881_s3 = scalar_lea.hbm %s12591_s2, 2048 }
  0x37   : > { %p8877_p9 = scmp.ne.s32.totalorder %s9488_s5, %s8876_s23  ;;  %p8882_p13 = scmp.lt.u32.totalorder %s9488_s5, %s12591_s2 }
  0x38   : > { %p8883_p2 = scmp.lt.u32.totalorder %s8881_s3, %s8876_s23  ;;  %p8885_p5 = scmp.lt.u32.totalorder %s8876_s23, %s9488_s5 }
  0x39   : > { %p8879_p11 = pnand %p9506_p10, %p8877_p9 }
  0x3a   : > { %p8884_p3 = por %p8883_p2, %p8882_p13 }
  0x3b   : > { %p8880_p12 = pneg %p8879_p11 }
  0x3c   : > { %p8886_p4 = por %p8885_p5, %p8884_p3 }
  0x3e   : > { %p8887_p0 = pnand %p8886_p4, %p8880_p12 }
  0x40   : > { %8890 = shalt.err (!%p8887_p0)
}
  0x41   : > { %s8891_s8 = scalar_lea.vmem %s9497_s11, 1024  ;;  %s9294_s9 = smov [#allocation6]  }
  0x42   : > { %p8892_p9 = scmp.ne.s32.totalorder %s9497_s11, %s8891_s8  ;;  %s8896_s12 = sshll.u32 %s9294_s9, 4  ;;  %s8897_s12 = int_to_ptr.vmem [resolvable:$false] %s8896_s12 }
  0x43   : > { %s8898_s1 = scalar_lea.vmem %s8897_s12, 2048  ;;  %p8899_p8 = scmp.lt.s32.totalorder %s9497_s11, %s8897_s12 }
  0x44   : > { %p8894_p11 = pnand %p8892_p9, %p9506_p10  ;;  %p8900_p1 = scmp.lt.s32.totalorder %s8898_s1, %s8891_s8 }
  0x46   : > { %p8895_p7 = pneg %p8894_p11  ;;  %p8901_p13 = por %p8900_p1, %p8899_p8 }
  0x48   : > { %p8902_p2 = pnand %p8901_p13, %p8895_p7 }
  0x4a   : > { %8905 = shalt.err (!%p8902_p2)
}
  0x4b   : > { %s12470_s3 = smov 64   ;;  %s12472_s13 = smov 4  }
  0x4c   : > { %s12594_s8 = scalar_lea.sflag [#allocation7], %s9471_s10  ;;  %p12595_p0 = scmp.lt.s32.totalorder %s9292_s28, 9 }
  0x4d   : > { %8571 = dma.hbm_to_vmem [thread:$0]  (!%p9493_p6), %s9488_s5, 1024, %s9497_s11, %s12594_s8, %s12470_s3, %s12470_s3, %s12472_s13  }
  0x4e   : > { %p12596_p1 = scmp.ge.s32.totalorder %s9292_s28, 1  ;;  %s12599_s4 = sld [smem:[#allocation108_spill]] }
  0x4f   : > { %s448_s2 = scalar_lea.vmem [#allocation9], %s9479_s0  ;;  %s12600_s5 = sand.u32 1, %s9252_s18  }
  0x50   : > { %p9538_p4 = pnand %p12596_p1, %p12595_p0  ;;  %s455_s14 = sshll.u32 %s448_s2, 4  ;;  %s9549_s14 = int_to_ptr.vmem [resolvable:$true] %s455_s14 }
  0x51   : > { %s9553_s11 = sshll.u32 %s12600_s5, 7  ;;  %s12478_s8 = scalar_lea.sflag [#allocation10], %s9471_s10 }
  0x52   : > { %s12597_s23 = scalar_select %p9538_p4, 1, 0 }
  0x54   : > { %12598 = sst [smem:[#allocation41_spill]] %s12597_s23  ;;  %s9546_s1 = scalar_lea.hbm %s12599_s4, %s9482_s22 }
  0x55   : > { %s8906_s3 = scalar_lea.hbm %s9546_s1, 1024  ;;  %s8911_s13 = scalar_lea.hbm %s12599_s4, 2048 }
  0x56   : > { %p8907_p7 = scmp.ne.s32.totalorder %s9546_s1, %s8906_s3  ;;  %p8912_p3 = scmp.lt.u32.totalorder %s9546_s1, %s12599_s4 }
  0x57   : > { %p8913_p5 = scmp.lt.u32.totalorder %s8911_s13, %s8906_s3  ;;  %p8915_p11 = scmp.lt.u32.totalorder %s8906_s3, %s9546_s1 }
  0x58   : > { %p8909_p8 = pnand %p8907_p7, %p9506_p10 }
  0x59   : > { %p8914_p9 = por %p8913_p5, %p8912_p3 }
  0x5a   : > { %p8910_p12 = pneg %p8909_p8 }
  0x5b   : > { %p8916_p13 = por %p8915_p11, %p8914_p9 }
  0x5d   : > { %p8917_p2 = pnand %p8916_p13, %p8910_p12 }
  0x5f   : > { %8920 = shalt.err (!%p8917_p2)
}
  0x60   : > { %s8921_s2 = scalar_lea.vmem %s9549_s14, 1024  ;;  %s9297_s5 = smov [#allocation9]  }
  0x61   : > { %p8922_p0 = scmp.ne.s32.totalorder %s9549_s14, %s8921_s2  ;;  %s8926_s9 = sshll.u32 %s9297_s5, 4  ;;  %s8927_s9 = int_to_ptr.vmem [resolvable:$false] %s8926_s9 }
  0x62   : > { %s8928_s22 = scalar_lea.vmem %s8927_s9, 2048  ;;  %p8929_p8 = scmp.lt.s32.totalorder %s9549_s14, %s8927_s9 }
  0x63   : > { %p8924_p1 = pnand %p8922_p0, %p9506_p10  ;;  %p8930_p4 = scmp.lt.s32.totalorder %s8928_s22, %s8921_s2 }
  0x65   : > { %p8925_p7 = pneg %p8924_p1  ;;  %p8931_p3 = por %p8930_p4, %p8929_p8 }
  0x67   : > { %p8932_p5 = pnand %p8931_p3, %p8925_p7 }
  0x69   : > { %8935 = shalt.err (!%p8932_p5)
}
  0x6a   : > { %s12601_s3 = smov 4   ;;  %s12602_s13 = smov 64  }
  0x6b   : > { %8577 = dma.hbm_to_vmem [thread:$0]  (!%p9493_p6), %s9546_s1, 1024, %s9549_s14, %s12478_s8, %s12602_s13, %s12602_s13, %s12601_s3  }
  0x6c   : > { %s8136_s23 = sshll.u32 %s9280_s25, 11  ;;  %s12603_s6 = sld [smem:[#allocation110_spill]] }
  0x6d   : > { %s490_s9 = scalar_lea.vmem [#allocation12], %s9553_s11  ;;  %s12481_s4 = scalar_lea.sflag [#allocation13], %s9471_s10 }
  0x6e   : > { %s497_s22 = sshll.u32 %s490_s9, 4  ;;  %s9591_s22 = int_to_ptr.vmem [resolvable:$true] %s497_s22 }
  0x72   : > { %s9588_s5 = scalar_lea.hbm %s12603_s6, %s8136_s23  ;;  %s8941_s12 = scalar_lea.hbm %s12603_s6, 4096 }
  0x73   : > { %s8936_s18 = scalar_lea.hbm %s9588_s5, 2048  ;;  %p8942_p11 = scmp.lt.u32.totalorder %s9588_s5, %s12603_s6 }
  0x74   : > { %p8937_p4 = scmp.ne.s32.totalorder %s9588_s5, %s8936_s18  ;;  %p8943_p13 = scmp.lt.u32.totalorder %s8941_s12, %s8936_s18 }
  0x75   : > { %p8945_p0 = scmp.lt.u32.totalorder %s8936_s18, %s9588_s5 }
  0x76   : > { %p8939_p12 = pnand %p8937_p4, %p9506_p10  ;;  %p8944_p2 = por %p8943_p13, %p8942_p11 }
  0x78   : > { %p8940_p9 = pneg %p8939_p12  ;;  %p8946_p1 = por %p8945_p0, %p8944_p2 }
  0x7a   : > { %p8947_p7 = pnand %p8946_p1, %p8940_p9 }
  0x7c   : > { %8950 = shalt.err (!%p8947_p7)
}
  0x7d   : > { %s8951_s9 = scalar_lea.vmem %s9591_s22, 2048  ;;  %s9298_s14 = smov [#allocation12]  }
  0x7e   : > { %p8952_p8 = scmp.ne.s32.totalorder %s9591_s22, %s8951_s9  ;;  %s8956_s1 = sshll.u32 %s9298_s14, 4  ;;  %s8957_s1 = int_to_ptr.vmem [resolvable:$false] %s8956_s1 }
  0x7f   : > { %s8958_s8 = scalar_lea.vmem %s8957_s1, 4096  ;;  %p8959_p4 = scmp.lt.s32.totalorder %s9591_s22, %s8957_s1 }
  0x80   : > { %p8954_p3 = pnand %p8952_p8, %p9506_p10  ;;  %p8960_p12 = scmp.lt.s32.totalorder %s8958_s8, %s8951_s9 }
  0x82   : > { %p8955_p5 = pneg %p8954_p3  ;;  %p8961_p11 = por %p8960_p12, %p8959_p4 }
  0x84   : > { %p8962_p13 = pnand %p8961_p11, %p8955_p5 }
  0x86   : > { %8965 = shalt.err (!%p8962_p13)
}
  0x87   : > { %s9299_s18 = smov 128   ;;  %s9300_s12 = smov 8  }
  0x88   : > { %8583 = dma.hbm_to_vmem [thread:$0]  (!%p9493_p6), %s9588_s5, 2048, %s9591_s22, %s12481_s4, %s9299_s18, %s9299_s18, %s9300_s12  }
  0x89   : > { %p132_p9 = scmp.ne.s32.totalorder %s9248_s17, %s9244_s16  ;;  %s12604_s7 = sld [smem:[#allocation111_spill]] }
  0x8a   : > { %s511_s1 = scalar_lea.vmem [#allocation14], %s9553_s11  ;;  %s9630_s6 = sadd.s32 4294967295, %s9292_s28  }
  0x8b   : > { %s9627_s8 = sshll.u32 %s511_s1, 4  ;;  %12605 = sst [smem:[#allocation42_spill]] %s9630_s6  ;;  %s9780_s8 = int_to_ptr.vmem [resolvable:$true] %s9627_s8 }
  0x8c   : > { %s7932_s10 = sadd.s32 4294967294, %s9292_s28   ;;  %s54_s5 = sadd.s32 1, %s9284_s26 }
  0x8d   : > { %p12606_p2 = scmp.ne.s32.totalorder %s12586_s30, 0  ;;  %s12607_s22 = sld [smem:[#allocation25_spill]] }
  0x8e   : > { %s58_s18 = sadd.s32 1, %s9288_s27  ;;  %s12608_s11 = sld [smem:[#allocation24_spill]] }
  0x8f   : > { %s9624_s14 = scalar_lea.hbm %s12604_s7, %s8136_s23  ;;  %s12840_s5 = smov (!%p12606_p2, %s54_s5), %s9284_s26 }
  0x90   : > { %s93_s23 = sadd.s32 1, %s9264_s21  ;;  %p56_p0 = scmp.ge.s32.totalorder %s12840_s5, 2 }
  0x91   : > { %p100_p1 = scmp.ne.s32.totalorder %s9264_s21, %s9260_s20  ;;  %p106_p7 = scmp.ne.s32.totalorder %s9260_s20, %s9256_s19 }
  0x92   : > { %p107_p8 = scmp.eq.s32.totalorder %s9630_s6, 0  ;;  %s12842_s5 = smov (%p56_p0, %s12840_s5), 0 }
  0x93   : > { %12609 = sst [smem:[#allocation43_spill]] %s12842_s5  ;;  %s12844_s18 = smov (!%p56_p0, %s58_s18), %s9288_s27 }
  0x94   : > { %p12610_p3 = scmp.eq.s32.totalorder %s9292_s28, 0  ;;  %p9653_p4 = por %p107_p8, %p106_p7 }
  0x95   : > { %p60_p12 = scmp.ge.s32.totalorder %s12844_s18, 2  ;;  %p9660_p11 = por %p132_p9, %p107_p8 }
  0x96   : > { %p9649_p5 = por %p12610_p3, %p100_p1  ;;  %s299_s2 = ssub.s32 %s9284_s26, %s12842_s5 }
  0x97   : > { %s12612_s12 = scalar_select %p9653_p4, 1, 0 }
  0x98   : > { %s12614_s19 = scalar_select %p9660_p11, 1, 0 }
  0x99   : > { %12613 = sst [smem:[#allocation44_spill]] %s12612_s12  ;;  %s303_s9 = sadd.s32 1, %s9240_s15 }
  0x9a   : > { %12615 = sst [smem:[#allocation45_spill]] %s12614_s19  ;;  %s12846_s18 = smov (%p60_p12, %s12844_s18), 0 }
  0x9b   : > { %12616 = sst [smem:[#allocation46_spill]] %s12846_s18  ;;  %p313_p13 = scmp.ne.s32.totalorder %s9240_s15, %s12607_s22 }
  0x9c   : > { %p314_p2 = scmp.eq.s32.totalorder %s9630_s6, 7  ;;  %s90_s1 = ssub.s32 %s9288_s27, %s12846_s18 }
  0x9d   : > { %p319_p0 = scmp.ne.s32.totalorder %s12607_s22, %s12608_s11  ;;  %p91_p1 = scmp.eq.s32.totalorder %s90_s1, 0 }
  0x9e   : > { %s12617_s4 = sld [smem:[#allocation40_spill]]  ;;  %s300_s16 = sor.u32 %s299_s2, %s90_s1 }
  0x9f   : > { %p301_p9 = scmp.eq.s32.totalorder %s300_s16, 0  ;;  %p9676_p7 = por %p314_p2, %p313_p13 }
  0xa0   : > { %s9681_s5 = scalar_select %p91_p1, %s9264_s21, %s93_s23  }
  0xa1   : > { %s12618_s25 = scalar_select %p9676_p7, 1, 0 }
  0xa2   : > { %12619 = sst [smem:[#allocation47_spill]] %s9681_s5  ;;  %p320_p8 = scmp.eq.s32.totalorder %s7932_s10, 7 }
  0xa3   : > { %s9684_s26 = scalar_select %p301_p9, %s9240_s15, %s303_s9  }
  0xa4   : > { %s381_s19 = sand.u32 1, %s9264_s21   ;;  %p9687_p3 = por %p320_p8, %p319_p0 }
  0xa5   : > { %12620 = sst [smem:[#allocation48_spill]] %s9684_s26  ;;  %s7935_s17 = sshll.u32 %s381_s19, 6 }
  0xa6   : > { %s12621_s22 = scalar_select %p9687_p3, 1, 0 }
  0xa7   : > { %s8131_s11 = sshll.u32 %s9288_s27, 10  ;;  %s385_s18 = scalar_lea.vmem [#allocation3], %s7935_s17 }
  0xa8   : > { %12622 = sst [smem:[#allocation40_spill]] %s12621_s22  ;;  %s392_s2 = sshll.u32 %s385_s18, 4  ;;  %s9697_s2 = int_to_ptr.vmem [resolvable:$true] %s392_s2 }
  0xa9   : > { %s12623_s6 = sld [smem:[#allocation105_spill]]  ;;  %p12624_p12 = scmp.lt.s32.totalorder %s9292_s28, 8 }
  0xaa   : > { %s12626_s18 = sld [smem:[#allocation107_spill]]  ;;  %s9716_s27 = scalar_lea.sflag [#allocation4], %s381_s19 }
  0xab   : > { %p9703_p13 = pnand %p12624_p12, %p9649_p5 }
  0xad   : > { %p8968_p5 = pneg %p9703_p13 }
  0xaf   : > { %s9695_s12 = scalar_lea.hbm %s12623_s6, %s8131_s11  ;;  %s427_s11 = scalar_lea.vmem [#allocation8], %s9479_s0 }
  0xb0   : > { %s12627_s9 = smov %s12626_s18  ;;  %s9711_s1 = scalar_lea.hbm %s12626_s18, %s12617_s4 }
  0xb1   : > { %s434_s16 = sshll.u32 %s427_s11, 4  ;;  %s8966_s30 = scalar_lea.hbm %s9695_s12, 1024  ;;  %s9714_s16 = int_to_ptr.vmem [resolvable:$true] %s434_s16 }
  0xb2   : > { %p8967_p2 = scmp.ne.s32.totalorder %s9695_s12, %s8966_s30  ;;  %s8971_s17 = scalar_lea.hbm %s12623_s6, 2048 }
  0xb3   : > { %p8972_p9 = scmp.lt.u32.totalorder %s9695_s12, %s12623_s6  ;;  %p8973_p8 = scmp.lt.u32.totalorder %s8971_s17, %s8966_s30 }
  0xb4   : > { %p8969_p0 = pnand %p8968_p5, %p8967_p2  ;;  %p8975_p3 = scmp.lt.u32.totalorder %s8966_s30, %s9695_s12 }
  0xb5   : > { %p8974_p12 = por %p8973_p8, %p8972_p9 }
  0xb6   : > { %p8970_p1 = pneg %p8969_p0 }
  0xb7   : > { %p8976_p7 = por %p8975_p3, %p8974_p12 }
  0xb9   : > { %p8977_p11 = pnand %p8976_p7, %p8970_p1 }
  0xbb   : > { %8980 = shalt.err (!%p8977_p11)
}
  0xbc   : > { %s8981_s19 = scalar_lea.vmem %s9697_s2, 1024  ;;  %s9301_s5 = smov [#allocation3]  }
  0xbd   : > { %p8982_p2 = scmp.ne.s32.totalorder %s9697_s2, %s8981_s19  ;;  %s8986_s11 = sshll.u32 %s9301_s5, 4  ;;  %s8987_s11 = int_to_ptr.vmem [resolvable:$false] %s8986_s11 }
  0xbe   : > { %s8988_s21 = scalar_lea.vmem %s8987_s11, 2048  ;;  %p8989_p6 = scmp.lt.s32.totalorder %s9697_s2, %s8987_s11 }
  0xbf   : > { %p8984_p0 = pnand %p8982_p2, %p8968_p5  ;;  %p8990_p9 = scmp.lt.s32.totalorder %s8988_s21, %s8981_s19 }
  0xc1   : > { %p8985_p4 = pneg %p8984_p0  ;;  %p8991_p8 = por %p8990_p9, %p8989_p6 }
  0xc3   : > { %p8992_p3 = pnand %p8991_p8, %p8985_p4 }
  0xc5   : > { %8995 = shalt.err (!%p8992_p3)
}
  0xc6   : > { %8568 = dma.hbm_to_vmem [thread:$0]  (!%p9703_p13), %s9695_s12, 1024, %s9697_s2, %s9716_s27, %s12602_s13, %s12602_s13, %s12601_s3  }
  0xc7   : > { %s8996_s30 = scalar_lea.hbm %s9711_s1, 1024  ;;  %s9001_s10 = scalar_lea.hbm %s12627_s9, 2048 }
  0xc8   : > { %p8997_p11 = scmp.ne.s32.totalorder %s9711_s1, %s8996_s30  ;;  %p9002_p7 = scmp.lt.u32.totalorder %s9711_s1, %s12627_s9 }
  0xc9   : > { %p9003_p5 = scmp.lt.u32.totalorder %s9001_s10, %s8996_s30  ;;  %p9005_p12 = scmp.lt.u32.totalorder %s8996_s30, %s9711_s1 }
  0xca   : > { %p8999_p6 = pnand %p8997_p11, %p9506_p10 }
  0xcb   : > { %p9004_p1 = por %p9003_p5, %p9002_p7 }
  0xcc   : > { %p9000_p4 = pneg %p8999_p6 }
  0xcd   : > { %p9006_p2 = por %p9005_p12, %p9004_p1 }
  0xcf   : > { %p9007_p0 = pnand %p9006_p2, %p9000_p4 }
  0xd1   : > { %9010 = shalt.err (!%p9007_p0)
}
  0xd2   : > { %s9011_s27 = scalar_lea.vmem %s9714_s16, 1024  ;;  %s9302_s12 = smov [#allocation8]  }
  0xd3   : > { %p9012_p13 = scmp.ne.s32.totalorder %s9714_s16, %s9011_s27  ;;  %s9016_s2 = sshll.u32 %s9302_s12, 4  ;;  %s9017_s2 = int_to_ptr.vmem [resolvable:$false] %s9016_s2 }
  0xd4   : > { %s9018_s5 = scalar_lea.vmem %s9017_s2, 2048  ;;  %p9019_p3 = scmp.lt.s32.totalorder %s9714_s16, %s9017_s2 }
  0xd5   : > { %p9014_p9 = pnand %p9012_p13, %p9506_p10  ;;  %p9020_p11 = scmp.lt.s32.totalorder %s9018_s5, %s9011_s27 }
  0xd7   : > { %p9015_p8 = pneg %p9014_p9  ;;  %p9021_p6 = por %p9020_p11, %p9019_p3 }
  0xd9   : > { %p9022_p7 = pnand %p9021_p6, %p9015_p8 }
  0xdb   : > { %9025 = shalt.err (!%p9022_p7)
}
  0xdc   : > { %p12628_p4 = scmp.ne.s32.totalorder %s12592_s29, 0  ;;  %s12629_s11 = sld [smem:[#allocation38_spill]] }
  0xdd   : > { %s12631_s17 = sld [smem:[#allocation109_spill]]  ;;  %s469_s19 = scalar_lea.vmem [#allocation11], %s9479_s0 }
  0xde   : > { %s476_s27 = sshll.u32 %s469_s19, 4  ;;  %s9783_s27 = int_to_ptr.vmem [resolvable:$true] %s476_s27 }
  0xe2   : > { %s12630_s21 = scalar_lea.sflag [#allocation7], %s12629_s11 }
  0xe3   : > { %8574 = dma.hbm_to_vmem [thread:$0]  (!%p12628_p4), %s9711_s1, 1024, %s9714_s16, %s12630_s21, %s12602_s13, %s12602_s13, %s12601_s3  }
  0xe4   : > { %s12632_s10 = smov %s12631_s17  ;;  %s9777_s18 = scalar_lea.hbm %s12631_s17, %s12617_s4 }
  0xe5   : > { %s9026_s12 = scalar_lea.hbm %s9777_s18, 1024  ;;  %s9031_s4 = scalar_lea.hbm %s12632_s10, 2048 }
  0xe6   : > { %p9027_p5 = scmp.ne.s32.totalorder %s9777_s18, %s9026_s12  ;;  %p9032_p2 = scmp.lt.u32.totalorder %s9777_s18, %s12632_s10 }
  0xe7   : > { %p9033_p0 = scmp.lt.u32.totalorder %s9031_s4, %s9026_s12  ;;  %p9035_p9 = scmp.lt.u32.totalorder %s9026_s12, %s9777_s18 }
  0xe8   : > { %p9029_p1 = pnand %p9027_p5, %p9506_p10 }
  0xe9   : > { %p9034_p13 = por %p9033_p0, %p9032_p2 }
  0xea   : > { %p9030_p12 = pneg %p9029_p1 }
  0xeb   : > { %p9036_p8 = por %p9035_p9, %p9034_p13 }
  0xed   : > { %p9037_p3 = pnand %p9036_p8, %p9030_p12 }
  0xef   : > { %9040 = shalt.err (!%p9037_p3)
}
  0xf0   : > { %s9041_s0 = scalar_lea.vmem %s9783_s27, 1024  ;;  %s9303_s21 = smov [#allocation11]  }
  0xf1   : > { %p9042_p11 = scmp.ne.s32.totalorder %s9783_s27, %s9041_s0  ;;  %s9046_s30 = sshll.u32 %s9303_s21, 4  ;;  %s9047_s30 = int_to_ptr.vmem [resolvable:$false] %s9046_s30 }
  0xf2   : > { %s9048_s23 = scalar_lea.vmem %s9047_s30, 2048  ;;  %p9049_p5 = scmp.lt.s32.totalorder %s9783_s27, %s9047_s30 }
  0xf3   : > { %p9044_p6 = pnand %p9042_p11, %p9506_p10  ;;  %p9050_p1 = scmp.lt.s32.totalorder %s9048_s23, %s9041_s0 }
  0xf5   : > { %p9045_p7 = pneg %p9044_p6  ;;  %p9051_p2 = por %p9050_p1, %p9049_p5 }
  0xf7   : > { %p9052_p0 = pnand %p9051_p2, %p9045_p7 }
  0xf9   : > { %9055 = shalt.err (!%p9052_p0)
}
  0xfa   : > { %s12633_s17 = scalar_lea.sflag [#allocation10], %s12629_s11  ;;  %s9056_s19 = scalar_lea.hbm %s9624_s14, 2048 }
  0xfb   : > { %8580 = dma.hbm_to_vmem [thread:$0]  (!%p12628_p4), %s9777_s18, 1024, %s9783_s27, %s12633_s17, %s12602_s13, %s12602_s13, %s12601_s3  }
  0xfc   : > { %p9057_p12 = scmp.ne.s32.totalorder %s9624_s14, %s9056_s19  ;;  %s9061_s16 = scalar_lea.hbm %s12604_s7, 4096 }
  0xfd   : > { %p9062_p8 = scmp.lt.u32.totalorder %s9624_s14, %s12604_s7  ;;  %p9063_p3 = scmp.lt.u32.totalorder %s9061_s16, %s9056_s19 }
  0xfe   : > { %p9059_p13 = pnand %p9057_p12, %p9506_p10  ;;  %p9065_p6 = scmp.lt.u32.totalorder %s9056_s19, %s9624_s14 }
  0xff   : > { %p9064_p11 = por %p9063_p3, %p9062_p8 }
 0x100   : > { %p9060_p9 = pneg %p9059_p13 }
 0x101   : > { %p9066_p7 = por %p9065_p6, %p9064_p11 }
 0x103   : > { %p9067_p5 = pnand %p9066_p7, %p9060_p9 }
 0x105   : > { %9070 = shalt.err (!%p9067_p5)
}
 0x106   : > { %s9071_s18 = scalar_lea.vmem %s9780_s8, 2048  ;;  %s9304_s27 = smov [#allocation14]  }
 0x107   : > { %p9072_p1 = scmp.ne.s32.totalorder %s9780_s8, %s9071_s18  ;;  %s9076_s5 = sshll.u32 %s9304_s27, 4  ;;  %s9077_s5 = int_to_ptr.vmem [resolvable:$false] %s9076_s5 }
 0x108   : > { %s9078_s0 = scalar_lea.vmem %s9077_s5, 4096  ;;  %p9079_p12 = scmp.lt.s32.totalorder %s9780_s8, %s9077_s5 }
 0x109   : > { %p9074_p2 = pnand %p9072_p1, %p9506_p10  ;;  %p9080_p13 = scmp.lt.s32.totalorder %s9078_s0, %s9071_s18 }
 0x10b   : > { %p9075_p0 = pneg %p9074_p2  ;;  %p9081_p8 = por %p9080_p13, %p9079_p12 }
 0x10d   : > { %p9082_p3 = pnand %p9081_p8, %p9075_p0 }
 0x10f   : > { %9085 = shalt.err (!%p9082_p3)
}
 0x110   : > { %s12634_s21 = scalar_lea.sflag [#allocation13], %s12629_s11  ;;  %s12635_s24 = sld [smem:[#allocation41_spill]] }
 0x111   : > { %8586 = dma.hbm_to_vmem [thread:$0]  (!%p12628_p4), %s9624_s14, 2048, %s9780_s8, %s12634_s21, %s12602_s13, %s12602_s13, %s12601_s3  }
 0x116   : > { %p12636_p10 = scmp.ne.s32.totalorder %s12635_s24, 0 }
 0x118   : > { %538 = sbr.rel (%p12636_p10) target bundleno = 3170 (0xc62), region = 56 }
 0x11f   : > { %s12637_s30 = sld [smem:[#allocation44_spill]]  ;;  %s540_s23 = sand.u32 1, %s9260_s20  }
 0x120   : > { %s7957_s17 = sshll.u32 %s540_s23, 6  ;;  %s541_s19 = scalar_lea.sflag [#allocation4], %s540_s23 }
 0x121   : > { %s9840_s12 = scalar_lea.vmem [#allocation3], %s7957_s17 }
 0x125   : > { %p12638_p9 = scmp.ne.s32.totalorder %s12637_s30, 0 }
 0x127   : > { %9207 = dma.done.wait (%p12638_p9), %s541_s19, 1024  }
 0x128   : > { %9209 = vsyncadd (%p12638_p9), %s541_s19, 4294966272  ;;  %s12639_s29 = sld [smem:[#allocation42_spill]]  ;;  %s12640_s11 = sld [smem:[#allocation27_spill]] }
 0x129   : > { %s12641_s1 = sld [smem:[#allocation45_spill]] }
 0x12e   : > { %s549_s16 = sand.u32 1, %s12639_s29   ;;  %s551_s3 = sand.u32 1, %s12640_s11  }
 0x12f   : > { %s7958_s13 = sshll.u32 %s551_s3, 6  ;;  %s550_s14 = scalar_lea.sflag [#allocation7], %s549_s16 }
 0x130   : > { %s9848_s8 = scalar_lea.vmem [#allocation6], %s7958_s13  ;;  %p12642_p4 = scmp.ne.s32.totalorder %s12641_s1, 0 }
 0x132   : > { %9211 = dma.done.wait (%p12642_p4), %s550_s14, 2048  }
 0x133   : > { %9213 = vsyncadd (%p12642_p4), %s550_s14, 4294965248  ;;  %s9854_s4 = scalar_lea.vmem [#allocation8], %s7958_s13  ;;  %s568_s2 = scalar_lea.sflag [#allocation10], %s549_s16 }
 0x134   : > { %s9856_s18 = scalar_lea.vmem [#allocation9], %s7958_s13 }
 0x135   : > { %9215 = dma.done.wait (%p12642_p4), %s568_s2, 2048  }
 0x136   : > { %9217 = vsyncadd (%p12642_p4), %s568_s2, 4294965248  ;;  %s7962_s27 = sshll.u32 %s551_s3, 7  ;;  %s9862_s5 = scalar_lea.vmem [#allocation11], %s7958_s13 }
 0x137   : > { %s586_s0 = scalar_lea.sflag [#allocation13], %s549_s16  ;;  %s9864_s21 = scalar_lea.vmem [#allocation12], %s7962_s27 }
 0x138   : > { %9219 = dma.done.wait (%p12642_p4), %s586_s0, 4096  }
 0x139   : > { %9221 = vsyncadd (%p12642_p4), %s586_s0, 4294963200  ;;  %s12643_s24 = sld [smem:[#allocation25_spill]]  ;;  %s12644_s30 = sld [smem:[#allocation32_spill]] }
 0x13a   : > { %s12645_s23 = sld [smem:[#allocation33_spill]]  ;;  %s12646_s17 = sld [smem:[#allocation31_spill]] }
 0x13b   : > { %s12647_s0 = sld [smem:[#allocation104_spill]]  ;;  %s9891_s26 = scalar_lea.vmem [#allocation14], %s7962_s27 }
 0x13f   : > { %s9871_s19 = sand.u32 1, %s12643_s24   ;;  %s9875_s11 = sshll.u32 %s12644_s30, 1 }
 0x140   : > { %s7964_s29 = sshll.u32 %s9871_s19, 4  ;;  %p685_p11 = scmp.lt.s32.totalorder %s12645_s23, 1 }
 0x141   : > { %p687_p6 = scmp.lt.s32.totalorder %s9875_s11, 3  ;;  %p694_p7 = scmp.lt.s32.totalorder %s12646_s17, 1 }
 0x142   : > { %s12848_s23 = smov (!%p685_p11, %s12645_s23), 1  ;;  %s12648_s30 = sld [smem:[#allocation112_spill]] }
 0x143   : > { %s688_s16 = scalar_select %p687_p6, %s9875_s11, 3 }
 0x144   : > { %s7967_s1 = sshll.u32 %s12848_s23, 2  ;;  %s9893_s15 = scalar_lea.vmem [#allocation15], %s7964_s29 }
 0x145   : > { %s690_s3 = sadd.s32 %s7967_s1, %s688_s16  ;;  %s9895_s22 = scalar_lea.vmem [#allocation16], %s7964_s29 }
 0x146   : > { %s7968_s13 = sshll.u32 %s690_s3, 3  ;;  %p7971_p5 = scmp.ne.s32.totalorder %s12646_s17, 0 }
 0x147   : > { %s692_s6 = scalar_lea.vmem %s12647_s0, %s7968_s13 }
 0x148   : > { %s695_s24 = scalar_select %p694_p7, %s12646_s17, 1 }
 0x149   : > { %705 = sbr.rel (%p7971_p5) target bundleno = 336 (0x150), region = 88  ;;  %v706_v0 = vld [vmem:[%s692_s6] sm:$0xff] (!%p7971_p5)  ;;  %v707_v1 = vld [vmem:[%s692_s6 + $0x8] sm:$0xff] (!%p7971_p5) }
 0x14a   : > { %s8138_s7 = sshll.u32 %s695_s24, 5  ;;  %708 = vst [vmem:[#allocation2] sm:$0xff] (!%p7971_p5), %v706_v0  ;;  %709 = vst [vmem:[#allocation2 + $0x8] sm:$0xff] (!%p7971_p5), %v707_v1 }
 0x14b   : > { %s9889_s20 = scalar_lea.vmem %s12648_s30, %s8138_s7 }
 0x150 PF: > { %v8753_v2 = vld [vmem:[%s9854_s4] sm:$0xff]   ;;  %v8754_v3 = vld [vmem:[%s9854_s4 + $0x8] sm:$0xff]   ;;  %v12507_v4 = vmov 0.0   ;;  %vm9306_vm0 = vmmov 0   ;;  %v8755_v5 = vld [vmem:[%s9854_s4 + $0x10] sm:$0xff]   ;;  %v748_v38 = vlaneseq  ;;  %s9307_s6 = smov 96  }
 0x151   : > { %8283 = vmatprep.subr.bf16.mxu0 %v12507_v4  ;;  %8303 = vmatprep.subr.bf16.mxu1 %v8753_v2  ;;  %v8756_v6 = vld [vmem:[%s9854_s4 + $0x18] sm:$0xff]   ;;  %v8761_v7 = vld [vmem:[%s9840_s12] sm:$0xff]   ;;  %v8758_v10 = vld [vmem:[%s9854_s4 + $0x28] sm:$0xff]   ;;  %s9308_s7 = smov 64   ;;  %s9309_s9 = smov 32   ;;  %vm6251_vm1 = vcmask 261120  }
 0x152   : > { %8299 = vmatprep.mubr.msk.bf16.mxu0 %vm9306_vm0, %v12507_v4  ;;  %8304 = vmatpush3.bf16.msra.mxu1 %v8753_v2  ;;  %v8757_v8 = vld [vmem:[%s9854_s4 + $0x20] sm:$0xff]   ;;  %v8768_v11 = vld [vmem:[%s9848_s8 + $0x8] sm:$0xff]   ;;  %v8759_v12 = vld [vmem:[%s9854_s4 + $0x30] sm:$0xff]   ;;  %v9946_v39 = vshrl.u32 %v748_v38, 7  ;;  %vm7070_vm2 = vcmask 523264   ;;  %vm7073_vm3 = vcmask 785408  }
 0x153   : > { %8305 = vmatprep.subr.bf16.mxu1 %v8754_v3  ;;  %8319 = vmatprep.mubr.bf16.mxu1 %v8761_v7  ;;  %v8767_v9 = vld [vmem:[%s9848_s8] sm:$0xff]   ;;  %v8771_v13 = vld [vmem:[%s9848_s8 + $0x10] sm:$0xff]   ;;  %v8760_v14 = vld [vmem:[%s9854_s4 + $0x38] sm:$0xff]  }
 0x154   : > { %8284 = vmatpush3.bf16.msra.mxu0 %v8767_v9  ;;  %v8772_v15 = vld [vmem:[%s9848_s8 + $0x18] sm:$0xff]   ;;  %v8773_v16 = vld [vmem:[%s9848_s8 + $0x20] sm:$0xff]   ;;  %v8762_v17 = vld [vmem:[%s9840_s12 + $0x8] sm:$0xff]   ;;  %12649 = vst [vmem:[#allocation49_spill] sm:$0xff] %v9946_v39  ;;  %v12505_v40 = vsub.s32 1, %v9946_v39 }
 0x155   : > { %8285 = vmatprep.subr.bf16.mxu0 %v12507_v4  ;;  %v8763_v18 = vld [vmem:[%s9840_s12 + $0x10] sm:$0xff]   ;;  %v8774_v19 = vld [vmem:[%s9848_s8 + $0x28] sm:$0xff]   ;;  %v8764_v21 = vld [vmem:[%s9840_s12 + $0x18] sm:$0xff]  }
 0x156   : > { %8306 = vmatpush3.bf16.msra.mxu1 %v8754_v3  ;;  %v8775_v20 = vld [vmem:[%s9848_s8 + $0x30] sm:$0xff]   ;;  %v8765_v22 = vld [vmem:[%s9840_s12 + $0x20] sm:$0xff]   ;;  %v8776_v23 = vld [vmem:[%s9848_s8 + $0x38] sm:$0xff]  }
 0x157   : > { %8307 = vmatprep.subr.bf16.mxu1 %v8755_v5  ;;  %v710_v24 = vld [vmem:[#allocation2] sm:$0xff]  ;;  %v711_v25 = vld [vmem:[#allocation2 + $0x8] sm:$0xff]  ;;  %v8777_v26 = vld [vmem:[%s9856_s18] sm:$0xff]  }
 0x158   : > { %8286 = vmatpush3.bf16.msra.mxu0 %v8768_v11  ;;  %v712_v27 = vpack.c.bf16 %v711_v25, %v710_v24  ;;  %v8778_v28 = vld [vmem:[%s9856_s18 + $0x8] sm:$0xff]   ;;  %v8769_v30 = vld [vmem:[%s9840_s12 + $0x30] sm:$0xff]   ;;  %v8780_v32 = vld [vmem:[%s9856_s18 + $0x18] sm:$0xff]  }
 0x159   : > { %8287 = vmatprep.subr.bf16.mxu0 %v12507_v4  ;;  %v8766_v29 = vld [vmem:[%s9840_s12 + $0x28] sm:$0xff]   ;;  %v8779_v31 = vld [vmem:[%s9856_s18 + $0x10] sm:$0xff]   ;;  %v8770_v33 = vld [vmem:[%s9840_s12 + $0x38] sm:$0xff]  }
 0x15a   : > { %8308 = vmatpush3.bf16.msra.mxu1 %v8755_v5  ;;  %v8781_v34 = vld [vmem:[%s9856_s18 + $0x20] sm:$0xff]   ;;  %v8782_v35 = vld [vmem:[%s9856_s18 + $0x28] sm:$0xff]   ;;  %v8783_v36 = vld [vmem:[%s9856_s18 + $0x30] sm:$0xff]  }
 0x15b   : > { %8309 = vmatprep.subr.bf16.mxu1 %v8756_v6  ;;  %v8784_v37 = vld [vmem:[%s9856_s18 + $0x38] sm:$0xff]   ;;  %v9950_v41 = vld [vmem:[%s9889_s20] sm:$0xff] }
 0x15c   : > { %8288 = vmatpush3.bf16.msra.mxu0 %v8771_v13  ;;  %v9955_v42 = vrot.slane %v9950_v41, %v12505_v40 }
 0x15d   : > { %8289 = vmatprep.subr.bf16.mxu0 %v12507_v4 }
 0x15e   : > { %8310 = vmatpush3.bf16.msra.mxu1 %v8756_v6 }
 0x15f   : > { %8311 = vmatprep.subr.bf16.mxu1 %v8757_v8 }
 0x160   : > { %8290 = vmatpush3.bf16.msra.mxu0 %v8772_v15 }
 0x161   : > { %8291 = vmatprep.subr.bf16.mxu0 %v12507_v4 }
 0x162   : > { %8312 = vmatpush3.bf16.msra.mxu1 %v8757_v8 }
 0x163   : > { %8313 = vmatprep.subr.bf16.mxu1 %v8758_v10 }
 0x164   : > { %8292 = vmatpush3.bf16.msra.mxu0 %v8773_v16  ;;  %v12506_v16 = vsub.s32 0, %v9946_v39 }
 0x165   : > { %8293 = vmatprep.subr.bf16.mxu0 %v12507_v4 }
 0x166   : > { %8314 = vmatpush3.bf16.msra.mxu1 %v8758_v10 }
 0x167   : > { %8315 = vmatprep.subr.bf16.mxu1 %v8759_v12 }
 0x168   : > { %8294 = vmatpush3.bf16.msra.mxu0 %v8774_v19 }
 0x169   : > { %8295 = vmatprep.subr.bf16.mxu0 %v12507_v4 }
 0x16a   : > { %8316 = vmatpush3.bf16.msra.mxu1 %v8759_v12 }
 0x16b   : > { %8317 = vmatprep.subr.bf16.mxu1 %v8760_v14 }
 0x16c   : > { %8296 = vmatpush3.bf16.msra.mxu0 %v8775_v20 }
 0x16d   : > { %8297 = vmatprep.subr.bf16.mxu0 %v12507_v4 }
 0x16e   : > { %8318 = vmatpush3.bf16.msra.mxu1 %v8760_v14 }
 0x16f   : > { %8367 = vmatprep.subr.bf16.mxu1 %v12507_v4 }
 0x170   : > { %8298 = vmatpush3.bf16.msra.mxu0 %v8776_v23 }
 0x171   : > { %8320 = vmatmul.mubr.bf16.vlgmr.msra.gmra.mrb[0].mxu1 %v8762_v17  ;;  %8335 = vmatprep.subr.bf16.mxu0 %v8777_v26 }
 0x172   : > { %8323 = vmatprep.mubr.bf16.mxu1 %v8763_v18 }
 0x173   : > { %8300 = vmatmul.mubr.bf16.vlgmr.msra.gmra.mrb[0].mxu0 %v712_v27 }
 0x174   : > { %8336 = vmatpush3.bf16.msra.mxu0 %v8777_v26  ;;  %8351 = vmatprep.mubr.bf16.mxu0 %v8761_v7 }
 0x175   : > { %8337 = vmatprep.subr.bf16.mxu0 %v8778_v28 }
 0x178   : > { %8338 = vmatpush3.bf16.msra.mxu0 %v8778_v28 }
 0x179   : > { %8324 = vmatmul.mubr.bf16.gmra.mrb[4].mxu1 %v8764_v21  ;;  %8339 = vmatprep.subr.bf16.mxu0 %v8779_v31 }
 0x17a   : > { %8327 = vmatprep.mubr.bf16.mxu1 %v8765_v22 }
 0x17c   : > { %8340 = vmatpush3.bf16.msra.mxu0 %v8779_v31 }
 0x17d   : > { %8341 = vmatprep.subr.bf16.mxu0 %v8780_v32 }
 0x180   : > { %8342 = vmatpush3.bf16.msra.mxu0 %v8780_v32  ;;  %v9311_v32 = vmov 1934713408  }
 0x181   : > { %8328 = vmatmul.mubr.bf16.gmra.mrb[8].mxu1 %v8766_v29  ;;  %8343 = vmatprep.subr.bf16.mxu0 %v8781_v34 }
 0x182   : > { %8331 = vmatprep.mubr.bf16.mxu1 %v8769_v30 }
 0x184   : > { %8344 = vmatpush3.bf16.msra.mxu0 %v8781_v34 }
 0x185   : > { %8345 = vmatprep.subr.bf16.mxu0 %v8782_v35 }
 0x188   : > { %8346 = vmatpush3.bf16.msra.mxu0 %v8782_v35 }
 0x189   : > { %8332 = vmatmul.mubr.bf16.gmra.mrb[12].mxu1 %v8770_v33  ;;  %8347 = vmatprep.subr.bf16.mxu0 %v8783_v36 }
 0x18a   : > { %8383 = vmatprep.mubr.msk.bf16.mxu1 %vm9306_vm0, %v12507_v4 }
 0x18c   : > { %8348 = vmatpush3.bf16.msra.mxu0 %v8783_v36 }
 0x18d   : > { %8349 = vmatprep.subr.bf16.mxu0 %v8784_v37 }
 0x190   : > { %8350 = vmatpush3.bf16.msra.mxu0 %v8784_v37 }
 0x191   : > { %8387 = vmatprep.subr.bf16.mxu0 %v12507_v4 }
 0x193   : > { %8352 = vmatmul.mubr.bf16.vlgmr.msra.gmra.mrb[4].mxu0 %v8762_v17  ;;  %v751_v17 = vrot.slane %v9950_v41, %v12506_v16 }
 0x194   : > { %8355 = vmatprep.mubr.bf16.mxu0 %v8763_v18 }
 0x19b   : > { %8356 = vmatmul.mubr.bf16.gmra.mrb[8].mxu0 %v8764_v21 }
 0x19c   : > { %8359 = vmatprep.mubr.bf16.mxu0 %v8765_v22  ;;  %v1072_v22 = vsub.s32 2, %v9946_v39 }
 0x19e   : > { %v10125_v24 = vrot.slane %v9950_v41, %v1072_v22 }
 0x1a3   : > { %8360 = vmatmul.mubr.bf16.gmra.mrb[12].mxu0 %v8766_v29  ;;  %v9310_v29 = vmov 1983009808  }
 0x1a4   : > { %8363 = vmatprep.mubr.bf16.mxu0 %v8769_v30  ;;  %v1242_v30 = vunpack.c.l.s4 %v9310_v29 }
 0x1a6   : > { %v1243_v35 = vunpack.c.0.s8 %v1242_v30 }
 0x1ab   : > { %8364 = vmatmul.mubr.bf16.gmra.mrb[16].mxu0 %v8770_v33  ;;  %v1274_v33 = vunpack.c.l.s4 %v9311_v32 }
 0x1ac   : > { %8403 = vmatprep.mubr.msk.bf16.mxu0 %vm9306_vm0, %v12507_v4 }
 0x1ad   : > { %v1275_v38 = vunpack.c.0.s8 %v1274_v33 }
 0x244   : > { %v8321_v43 = vpop.f32.mrb[0].mxu1 }
 0x245   : > { %v9958_v44 = vadd.f32 %v8321_v43, %v9955_v42  ;;  %v991_v45 = vpop.f32.mrb[1].mxu1 }
 0x246   : > { %v9961_v46 = vadd.f32 %v991_v45, %v9955_v42  ;;  %v8322_v47 = vpop.f32.mrb[2].mxu1  ;;  %v9978_v54 = vpop.f32.mrb[0].mxu0 }
 0x247   : > { %1535 = vrot.lane.b32.xlu0 %v9958_v44, %s9307_s6  ;;  %v994_v48 = vpop.f32.mrb[3].mxu1  ;;  %v9968_v49 = vadd.f32 %v8322_v47, %v9955_v42  ;;  %v8301_v55 = vpop.f32.mrb[1].mxu0  ;;  %v10106_v20 = vadd.f32 %v9978_v54, %v751_v17 }
 0x248   : > { %1579 = vrot.lane.b32.xlu1 %v9961_v46, %s9308_s7  ;;  %v9982_v56 = vpop.f32.mrb[2].mxu0  ;;  %v9987_v60 = vadd.f32 %v994_v48, %v9955_v42 }
 0x249   : > { %v8302_v58 = vpop.f32.mrb[3].mxu0  ;;  %v10113_v21 = vadd.f32 %v9982_v56, %v751_v17 }
 0x24b   : > { %1583 = vrot.lane.b32.xlu0 %v9958_v44, %s9308_s7 }
 0x24c   : > { %1537 = vrot.lane.b32.xlu1 %v9968_v49, %s9307_s6  ;;  %v8325_v50 = vpop.f32.mrb[4].mxu1 }
 0x24d   : > { %v1007_v51 = vpop.f32.mrb[5].mxu1  ;;  %v9994_v63 = vadd.f32 %v8325_v50, %v9955_v42 }
 0x24e   : > { %v8326_v52 = vpop.f32.mrb[6].mxu1  ;;  %v10028_v10 = vadd.f32 %v1007_v51, %v9955_v42 }
 0x24f   : > { %1631 = vrot.lane.b32.xlu0 %v9958_v44, %s9309_s9  ;;  %v1010_v53 = vpop.f32.mrb[7].mxu1  ;;  %v10004_v3 = vadd.f32 %v8326_v52, %v9955_v42 }
 0x250   : > { %1585 = vrot.lane.b32.xlu1 %v9968_v49, %s9308_s7  ;;  %v10031_v11 = vadd.f32 %v1010_v53, %v9955_v42 }
 0x253   : > { %1531 = vrot.lane.b32.xlu0 %v9961_v46, %s9307_s6 }
 0x254   : > { %1633 = vrot.lane.b32.xlu1 %v9968_v49, %s9309_s9  ;;  %v8329_v57 = vpop.f32.mrb[8].mxu1 }
 0x255   : > { %v1023_v59 = vpop.f32.mrb[9].mxu1  ;;  %v10042_v12 = vadd.f32 %v8329_v57, %v9955_v42 }
 0x256   : > { %v8330_v61 = vpop.f32.mrb[10].mxu1  ;;  %v10064_v14 = vadd.f32 %v1023_v59, %v9955_v42 }
 0x257   : > { %1627 = vrot.lane.b32.xlu0 %v9961_v46, %s9309_s9  ;;  %v1026_v62 = vpop.f32.mrb[11].mxu1  ;;  %v10049_v13 = vadd.f32 %v8330_v61, %v9955_v42 }
 0x258   : > { %1581 = vrot.lane.b32.xlu1 %v9987_v60, %s9308_s7  ;;  %v10067_v15 = vadd.f32 %v1026_v62, %v9955_v42 }
 0x25b   : > { %1533 = vrot.lane.b32.xlu0 %v9987_v60, %s9307_s6 }
 0x25c   : > { %1629 = vrot.lane.b32.xlu1 %v9987_v60, %s9309_s9  ;;  %v8333_v0 = vpop.f32.mrb[12].mxu1 }
 0x25d   : > { %v10001_v1 = vadd.f32 %v8333_v0, %v9955_v42  ;;  %v1039_v2 = vpop.f32.mrb[13].mxu1 }
 0x25e   : > { %v10007_v5 = vadd.f32 %v1039_v2, %v9955_v42  ;;  %v8334_v6 = vpop.f32.mrb[14].mxu1 }
 0x25f   : > { %1543 = vrot.lane.b32.xlu0 %v9994_v63, %s9307_s6  ;;  %v10012_v7 = vadd.f32 %v8334_v6, %v9955_v42  ;;  %v1042_v8 = vpop.f32.mrb[15].mxu1 }
 0x260   : > { %1545 = vrot.lane.b32.xlu1 %v10004_v3, %s9307_s6  ;;  %v10017_v9 = vadd.f32 %v1042_v8, %v9955_v42  ;;  %v10158_v42 = vsub.s32 %v1243_v35, %v9946_v39 }
 0x262   : > { %12653 = vst [vmem:[#allocation53_spill] sm:$0xff] %v10158_v42 }
 0x263   : > { %1591 = vrot.lane.b32.xlu0 %v9994_v63, %s9308_s7 }
 0x264   : > { %1593 = vrot.lane.b32.xlu1 %v10004_v3, %s9308_s7 }
 0x266   : > { %v8353_v18 = vpop.f32.mrb[4].mxu0 }
 0x267   : > { %1639 = vrot.lane.b32.xlu0 %v9994_v63, %s9309_s9  ;;  %v1156_v19 = vpop.f32.mrb[5].mxu0  ;;  %v10130_v25 = vadd.f32 %v8353_v18, %v10125_v24 }
 0x268   : > { %1641 = vrot.lane.b32.xlu1 %v10004_v3, %s9309_s9  ;;  %v8354_v23 = vpop.f32.mrb[6].mxu0  ;;  %v10135_v26 = vadd.f32 %v1156_v19, %v10125_v24 }
 0x269   : > { %12650 = vst [vmem:[#allocation50_spill] sm:$0xff] %v10130_v25  ;;  %v10146_v27 = vadd.f32 %v8354_v23, %v10125_v24  ;;  %v1159_v50 = vpop.f32.mrb[7].mxu0 }
 0x26a   : > { %12651 = vst [vmem:[#allocation51_spill] sm:$0xff] %v10135_v26  ;;  %v10162_v51 = vadd.f32 %v1159_v50, %v10125_v24 }
 0x26b   : > { %1539 = vrot.lane.b32.xlu0 %v10028_v10, %s9307_s6  ;;  %12652 = vst [vmem:[#allocation52_spill] sm:$0xff] %v10146_v27 }
 0x26c   : > { %1541 = vrot.lane.b32.xlu1 %v10031_v11, %s9307_s6  ;;  %12654 = vst [vmem:[#allocation54_spill] sm:$0xff] %v10162_v51 }
 0x26f   : > { %1587 = vrot.lane.b32.xlu0 %v10028_v10, %s9308_s7 }
 0x270   : > { %1589 = vrot.lane.b32.xlu1 %v10031_v11, %s9308_s7 }
 0x273   : > { %1635 = vrot.lane.b32.xlu0 %v10028_v10, %s9309_s9 }
 0x274   : > { %1637 = vrot.lane.b32.xlu1 %v10031_v11, %s9309_s9 }
 0x277   : > { %1551 = vrot.lane.b32.xlu0 %v10042_v12, %s9307_s6 }
 0x278   : > { %1553 = vrot.lane.b32.xlu1 %v10049_v13, %s9307_s6 }
 0x27b   : > { %1599 = vrot.lane.b32.xlu0 %v10042_v12, %s9308_s7 }
 0x27c   : > { %1601 = vrot.lane.b32.xlu1 %v10049_v13, %s9308_s7 }
 0x27f   : > { %1647 = vrot.lane.b32.xlu0 %v10042_v12, %s9309_s9 }
 0x280   : > { %1649 = vrot.lane.b32.xlu1 %v10049_v13, %s9309_s9 }
 0x283   : > { %1547 = vrot.lane.b32.xlu0 %v10064_v14, %s9307_s6 }
 0x284   : > { %1549 = vrot.lane.b32.xlu1 %v10067_v15, %s9307_s6 }
 0x287   : > { %1595 = vrot.lane.b32.xlu0 %v10064_v14, %s9308_s7 }
 0x288   : > { %1597 = vrot.lane.b32.xlu1 %v10067_v15, %s9308_s7 }
 0x28b   : > { %1643 = vrot.lane.b32.xlu0 %v10064_v14, %s9309_s9 }
 0x28c   : > { %1645 = vrot.lane.b32.xlu1 %v10067_v15, %s9309_s9 }
 0x28f   : > { %1559 = vrot.lane.b32.xlu0 %v10001_v1, %s9307_s6 }
 0x290   : > { %1561 = vrot.lane.b32.xlu1 %v10012_v7, %s9307_s6 }
 0x293   : > { %1555 = vrot.lane.b32.xlu0 %v10007_v5, %s9307_s6 }
 0x294   : > { %1557 = vrot.lane.b32.xlu1 %v10017_v9, %s9307_s6 }
 0x297   : > { %1603 = vrot.lane.b32.xlu0 %v10007_v5, %s9308_s7 }
 0x298   : > { %1605 = vrot.lane.b32.xlu1 %v10017_v9, %s9308_s7 }
 0x29b   : > { %1651 = vrot.lane.b32.xlu0 %v10007_v5, %s9309_s9 }
 0x29c   : > { %1653 = vrot.lane.b32.xlu1 %v10017_v9, %s9309_s9 }
 0x29f   : > { %1607 = vrot.lane.b32.xlu0 %v10001_v1, %s9308_s7 }
 0x2a0   : > { %1609 = vrot.lane.b32.xlu1 %v10012_v7, %s9308_s7 }
 0x2a3   : > { %1655 = vrot.lane.b32.xlu0 %v10001_v1, %s9309_s9 }
 0x2a4   : > { %1657 = vrot.lane.b32.xlu1 %v10012_v7, %s9309_s9 }
 0x2a7   : > { %1221 = vrot.lane.b32.xlu0 %v10106_v20, %s9307_s6 }
 0x2a8   : > { %1223 = vrot.lane.b32.xlu1 %v10113_v21, %s9307_s6 }
 0x2ab   : > { %1227 = vrot.lane.b32.xlu0 %v10106_v20, %s9308_s7 }
 0x2ac   : > { %1229 = vrot.lane.b32.xlu1 %v10113_v21, %s9308_s7 }
 0x2af   : > { %1233 = vrot.lane.b32.xlu0 %v10106_v20, %s9309_s9 }
 0x2b0   : > { %1235 = vrot.lane.b32.xlu1 %v10113_v21, %s9309_s9 }
 0x2b3   : > { %3903 = vrot.lane.b32.xlu0 %v10130_v25, %s9307_s6 }
 0x2b4   : > { %3899 = vrot.lane.b32.xlu1 %v10135_v26, %s9307_s6 }
 0x2b7   : > { %3951 = vrot.lane.b32.xlu0 %v10130_v25, %s9308_s7 }
 0x2b8   : > { %3947 = vrot.lane.b32.xlu1 %v10135_v26, %s9308_s7 }
 0x2b9   : > { %v1536_v28 = vpop.permute.xlu0 %1535 }
 0x2ba   : > { %v1580_v31 = vpop.permute.xlu1 %1579 }
 0x2bb   : > { %3999 = vrot.lane.b32.xlu0 %v10130_v25, %s9309_s9  ;;  %v1675_v62 = vcombine.low %v9961_v46, %v1580_v31  ;;  %v1676_v6 = vcombine.high %v9961_v46, %v1580_v31 }
 0x2bc   : > { %3905 = vrot.lane.b32.xlu1 %v10146_v27, %s9307_s6 }
 0x2bd   : > { %v1584_v34 = vpop.permute.xlu0 %1583  ;;  %v1690_v33 = vrot.slane %v1676_v6, %v10158_v42 }
 0x2be   : > { %v1538_v36 = vpop.permute.xlu1 %1537  ;;  %v1811_v37 = vcombine.low %v9958_v44, %v1584_v34  ;;  %v1812_v43 = vcombine.high %v9958_v44, %v1584_v34  ;;  %v10171_v44 = vsub.s32 %v1275_v38, %v9946_v39 }
 0x2bf   : > { %3995 = vrot.lane.b32.xlu0 %v10135_v26, %s9309_s9 }
 0x2c0   : > { %3953 = vrot.lane.b32.xlu1 %v10146_v27, %s9308_s7  ;;  %v1819_v52 = vrot.slane %v1811_v37, %v10158_v42  ;;  %v1826_v57 = vrot.slane %v1812_v43, %v10158_v42 }
 0x2c1   : > { %v1632_v41 = vpop.permute.xlu0 %1631 }
 0x2c2   : > { %v1827_v45 = vcombine.low %v1536_v28, %v1632_v41  ;;  %v1828_v47 = vcombine.high %v1536_v28, %v1632_v41  ;;  %v1586_v48 = vpop.permute.xlu1 %1585 }
 0x2c3   : > { %v1879_v55 = vcombine.low %v9968_v49, %v1586_v48  ;;  %3901 = vrot.lane.b32.xlu0 %v10162_v51, %s9307_s6  ;;  %v1880_v17 = vcombine.high %v9968_v49, %v1586_v48  ;;  %v1683_v49 = vrot.slane %v1675_v62, %v10158_v42 }
 0x2c4   : > { %v1835_v53 = vrot.slane %v1827_v45, %v10158_v42  ;;  %v1842_v54 = vrot.slane %v1828_v47, %v10158_v42  ;;  %4001 = vrot.lane.b32.xlu1 %v10146_v27, %s9309_s9 }
 0x2c5   : > { %v1532_v56 = vpop.permute.xlu0 %1531  ;;  %v1887_v18 = vrot.slane %v1879_v55, %v10158_v42  ;;  %v1894_v34 = vrot.slane %v1880_v17, %v10158_v42 }
 0x2c6   : > { %v1843_v58 = vcombine.low %v1819_v52, %v1835_v53  ;;  %v1844_v59 = vcombine.high %v1819_v52, %v1835_v53  ;;  %v1634_v61 = vpop.permute.xlu1 %1633  ;;  %v1859_v8 = vcombine.low %v1826_v57, %v1842_v54  ;;  %v1860_v23 = vcombine.high %v1826_v57, %v1842_v54 }
 0x2c7   : > { %v1895_v0 = vcombine.low %v1538_v36, %v1634_v61  ;;  %v1896_v2 = vcombine.high %v1538_v36, %v1634_v61 }
 0x2c8   : > { %3949 = vrot.lane.b32.xlu1 %v10162_v51, %s9308_s7  ;;  %v10183_v19 = vrot.slane %v1843_v58, %v10171_v44  ;;  %v10186_v22 = vrot.slane %v1844_v59, %v10171_v44  ;;  %v10196_v37 = vrot.slane %v1859_v8, %v10171_v44  ;;  %v10199_v38 = vrot.slane %v1860_v23, %v10171_v44 }
 0x2c9   : > { %v1903_v28 = vrot.slane %v1895_v0, %v10158_v42  ;;  %v1628_v29 = vpop.permute.xlu0 %1627  ;;  %v1910_v46 = vrot.slane %v1896_v2, %v10158_v42 }
 0x2ca   : > { %v1582_v30 = vpop.permute.xlu1 %1581  ;;  %v1691_v35 = vcombine.low %v1532_v56, %v1628_v29  ;;  %v1692_v36 = vcombine.high %v1532_v56, %v1628_v29  ;;  %v2899_v41 = vcombine.low %v10183_v19, %v10186_v22  ;;  %v8012_v43 = vcombine.high %v10183_v19, %v10186_v22 }
 0x2cb   : > { %v1911_v31 = vcombine.low %v1887_v18, %v1903_v28  ;;  %v1912_v32 = vcombine.high %v1887_v18, %v1903_v28  ;;  %v1927_v47 = vcombine.low %v1894_v34, %v1910_v46  ;;  %v1928_v48 = vcombine.high %v1894_v34, %v1910_v46 }
 0x2cc   : > { %3997 = vrot.lane.b32.xlu1 %v10162_v51, %s9309_s9  ;;  %v1699_v50 = vrot.slane %v1691_v35, %v10158_v42  ;;  %v1706_v52 = vrot.slane %v1692_v36, %v10158_v42  ;;  %v1743_v56 = vcombine.low %v9987_v60, %v1582_v30  ;;  %v1744_v57 = vcombine.high %v9987_v60, %v1582_v30 }
 0x2cd   : > { %v1534_v45 = vpop.permute.xlu0 %1533  ;;  %v10208_v54 = vrot.slane %v1911_v31, %v10171_v44  ;;  %v10211_v55 = vrot.slane %v1912_v32, %v10171_v44  ;;  %v2915_v0 = vcombine.low %v10196_v37, %v10199_v38  ;;  %v10220_v18 = vrot.slane %v1927_v47, %v10171_v44 }
 0x2ce   : > { %v1630_v53 = vpop.permute.xlu1 %1629  ;;  %v1707_v58 = vcombine.low %v1683_v49, %v1699_v50  ;;  %v1708_v59 = vcombine.high %v1683_v49, %v1699_v50  ;;  %v1723_v61 = vcombine.low %v1690_v33, %v1706_v52  ;;  %v1724_v62 = vcombine.high %v1690_v33, %v1706_v52 }
 0x2cf   : > { %v1759_v6 = vcombine.low %v1534_v45, %v1630_v53  ;;  %v1760_v8 = vcombine.high %v1534_v45, %v1630_v53  ;;  %v10223_v19 = vrot.slane %v1928_v48, %v10171_v44  ;;  %v1751_v28 = vrot.slane %v1743_v56, %v10158_v42 }
 0x2d0   : > { %v1715_v60 = vrot.slane %v1707_v58, %v10171_v44  ;;  %v1722_v22 = vrot.slane %v1708_v59, %v10171_v44  ;;  %v1758_v29 = vrot.slane %v1744_v57, %v10158_v42  ;;  %v1731_v32 = vrot.slane %v1723_v61, %v10171_v44 }
 0x2d1   : > { %v1544_v17 = vpop.permute.xlu0 %1543  ;;  %v1767_v46 = vrot.slane %v1759_v6, %v10158_v42  ;;  %v1774_v30 = vrot.slane %v1760_v8, %v10158_v42  ;;  %v1738_v33 = vrot.slane %v1724_v62, %v10171_v44  ;;  %v10244_v59 = vrot.slane %v2899_v41, %v10158_v42  ;;  %v10249_v62 = vpop.f32.mrb[8].mxu0 }
 0x2d2   : > { %v1546_v23 = vpop.permute.xlu1 %1545  ;;  %v2763_v34 = vcombine.low %v1715_v60, %v1722_v22  ;;  %v8008_v35 = vcombine.high %v1715_v60, %v1722_v22  ;;  %v10247_v61 = vrot.slane %v8012_v43, %v10158_v42 }
 0x2d3   : > { %v1775_v36 = vcombine.low %v1751_v28, %v1767_v46  ;;  %v1776_v45 = vcombine.high %v1751_v28, %v1767_v46  ;;  %v1791_v52 = vcombine.low %v1758_v29, %v1774_v30  ;;  %v1792_v53 = vcombine.high %v1758_v29, %v1774_v30  ;;  %12655 = vst [vmem:[#allocation55_spill] sm:$0xff] %v10244_v59  ;;  %v10253_v28 = vpop.f32.mrb[9].mxu0 }
 0x2d4   : > { %12656 = vst [vmem:[#allocation56_spill] sm:$0xff] %v10247_v61  ;;  %v2779_v6 = vcombine.low %v1731_v32, %v1738_v33  ;;  %v8009_v8 = vcombine.high %v1731_v32, %v1738_v33  ;;  %12657 = vst [vmem:[#allocation57_spill] sm:$0xff] %v10253_v28  ;;  %v10258_v41 = vrot.slane %v2763_v34, %v10158_v42  ;;  %v10263_v30 = vpop.f32.mrb[10].mxu0 }
 0x2d5   : > { %v1592_v47 = vpop.permute.xlu0 %1591  ;;  %v1783_v29 = vrot.slane %v1775_v36, %v10171_v44  ;;  %v10261_v43 = vrot.slane %v8008_v35, %v10158_v42  ;;  %v1799_v32 = vrot.slane %v1791_v52, %v10171_v44  ;;  %v1806_v33 = vrot.slane %v1792_v53, %v10171_v44 }
 0x2d6   : > { %v1594_v56 = vpop.permute.xlu1 %1593  ;;  %v2083_v57 = vcombine.low %v9994_v63, %v1592_v47  ;;  %v2084_v58 = vcombine.high %v9994_v63, %v1592_v47  ;;  %v1790_v63 = vrot.slane %v1776_v45, %v10171_v44 }
 0x2d7   : > { %v2151_v60 = vcombine.low %v10004_v3, %v1594_v56  ;;  %v2152_v22 = vcombine.high %v10004_v3, %v1594_v56  ;;  %v2847_v2 = vcombine.low %v1799_v32, %v1806_v33 }
 0x2d8   : > { %v2091_v36 = vrot.slane %v2083_v57, %v10158_v42  ;;  %v2098_v45 = vrot.slane %v2084_v58, %v10158_v42  ;;  %v10279_v57 = vrot.slane %v8009_v8, %v10158_v42  ;;  %v8010_v31 = vcombine.high %v1783_v29, %v1790_v63 }
 0x2d9   : > { %v1640_v46 = vpop.permute.xlu0 %1639  ;;  %v2159_v34 = vrot.slane %v2151_v60, %v10158_v42  ;;  %v2166_v35 = vrot.slane %v2152_v22, %v10158_v42 }
 0x2da   : > { %v2099_v3 = vcombine.low %v1544_v17, %v1640_v46  ;;  %v2100_v47 = vcombine.high %v1544_v17, %v1640_v46  ;;  %v1642_v56 = vpop.permute.xlu1 %1641  ;;  %v10276_v46 = vrot.slane %v2779_v6, %v10158_v42 }
 0x2db   : > { %v2167_v40 = vcombine.low %v1546_v23, %v1642_v56  ;;  %v2168_v16 = vcombine.high %v1546_v23, %v1642_v56 }
 0x2dc   : > { %v2107_v50 = vrot.slane %v2099_v3, %v10158_v42  ;;  %v2114_v48 = vrot.slane %v2100_v47, %v10158_v42  ;;  %12658 = vst [vmem:[#allocation58_spill] sm:$0xff] %v10276_v46  ;;  %v2831_v3 = vcombine.low %v1783_v29, %v1790_v63  ;;  %v12661_v29 = vcombine.high %v10196_v37, %v10199_v38 }
 0x2dd   : > { %v2175_v52 = vrot.slane %v2167_v40, %v10158_v42  ;;  %v2182_v53 = vrot.slane %v2168_v16, %v10158_v42  ;;  %v1540_v17 = vpop.permute.xlu0 %1539  ;;  %v10283_v40 = vpop.f32.mrb[11].mxu0 }
 0x2de   : > { %v2115_v23 = vcombine.low %v2091_v36, %v2107_v50  ;;  %v2116_v58 = vcombine.high %v2091_v36, %v2107_v50  ;;  %v2131_v60 = vcombine.low %v2098_v45, %v2114_v48  ;;  %v2132_v56 = vcombine.high %v2098_v45, %v2114_v48  ;;  %v10281_v22 = vpop.permute.xlu1 %1541  ;;  %12659 = vst [vmem:[#allocation59_spill] sm:$0xff] %v10283_v40 }
 0x2df   : > { %v2183_v47 = vcombine.low %v2159_v34, %v2175_v52  ;;  %v2184_v49 = vcombine.high %v2159_v34, %v2175_v52  ;;  %v2199_v8 = vcombine.low %v2166_v35, %v2182_v53  ;;  %v2200_v4 = vcombine.high %v2166_v35, %v2182_v53 }
 0x2e0   : > { %v10286_v16 = vrot.slane %v2115_v23, %v10171_v44  ;;  %v10289_v6 = vrot.slane %v2116_v58, %v10171_v44  ;;  %v8011_v50 = vcombine.high %v1799_v32, %v1806_v33  ;;  %v10295_v48 = vrot.slane %v2915_v0, %v10158_v42 }
 0x2e1   : > { %v1588_v36 = vpop.permute.xlu0 %1587  ;;  %v10301_v63 = vrot.slane %v12661_v29, %v10158_v42  ;;  %v10304_v45 = vrot.slane %v2131_v60, %v10171_v44  ;;  %v10307_v34 = vrot.slane %v2132_v56, %v10171_v44  ;;  %v2795_v33 = vcombine.low %v10258_v41, %v10261_v43 }
 0x2e2   : > { %12660 = vst [vmem:[#allocation60_spill] sm:$0xff] %v10295_v48  ;;  %v10309_v32 = vpop.permute.xlu1 %1589  ;;  %v2811_v0 = vcombine.low %v10276_v46, %v10279_v57  ;;  %v10316_v35 = vrot.slane %v2183_v47, %v10171_v44  ;;  %v10319_v37 = vrot.slane %v2184_v49, %v10171_v44  ;;  %v10322_v38 = vrot.slane %v2831_v3, %v10158_v42 }
 0x2e3   : > { %12662 = vst [vmem:[#allocation61_spill] sm:$0xff] %v10301_v63  ;;  %v10325_v52 = vrot.slane %v8010_v31, %v10158_v42  ;;  %v10332_v58 = vrot.slane %v2199_v8, %v10171_v44  ;;  %v10335_v60 = vrot.slane %v2200_v4, %v10171_v44  ;;  %v1947_v49 = vcombine.low %v10028_v10, %v1588_v36 }
 0x2e4   : > { %12663 = vst [vmem:[#allocation62_spill] sm:$0xff] %v10322_v38  ;;  %v1948_v56 = vcombine.high %v10028_v10, %v1588_v36  ;;  %v10340_v3 = vrot.slane %v2847_v2, %v10158_v42  ;;  %v10343_v31 = vrot.slane %v8011_v50, %v10158_v42  ;;  %v2803_v4 = vrot.slane %v2795_v33, %v10171_v44 }
 0x2e5   : > { %12664 = vst [vmem:[#allocation63_spill] sm:$0xff] %v10325_v52  ;;  %v1636_v47 = vpop.permute.xlu0 %1635  ;;  %v2819_v23 = vrot.slane %v2811_v0, %v10171_v44  ;;  %v2015_v2 = vcombine.low %v10031_v11, %v10309_v32  ;;  %v2863_v50 = vcombine.low %v10322_v38, %v10325_v52  ;;  %v2016_v8 = vcombine.high %v10031_v11, %v10309_v32 }
 0x2e6   : > { %12665 = vst [vmem:[#allocation64_spill] sm:$0xff] %v10340_v3  ;;  %12666 = vst [vmem:[#allocation65_spill] sm:$0xff] %v10343_v31  ;;  %v1638_v53 = vpop.permute.xlu1 %1637  ;;  %v2879_v36 = vcombine.low %v10340_v3, %v10343_v31  ;;  %v1963_v33 = vcombine.low %v1540_v17, %v1636_v47  ;;  %v1964_v29 = vcombine.high %v1540_v17, %v1636_v47 }
 0x2e7   : > { %v2031_v0 = vcombine.low %v10281_v22, %v1638_v53  ;;  %v1955_v39 = vrot.slane %v1947_v49, %v10158_v42  ;;  %v1962_v10 = vrot.slane %v1948_v56, %v10158_v42  ;;  %v2871_v51 = vrot.slane %v2863_v50, %v10171_v44 }
 0x2e8   : > { %v2887_v27 = vrot.slane %v2879_v36, %v10171_v44  ;;  %v2827_v25 = vcombine.low %v2803_v4, %v2819_v23  ;;  %v1971_v3 = vrot.slane %v1963_v33, %v10158_v42  ;;  %v1978_v31 = vrot.slane %v1964_v29, %v10158_v42 }
 0x2e9   : > { %v10366_v26 = vpop.permute.xlu0 %1551  ;;  %v2032_v11 = vcombine.high %v10281_v22, %v1638_v53  ;;  %v2828_v47 = vcombine.high %v2803_v4, %v2819_v23  ;;  %v2039_v56 = vrot.slane %v2031_v0, %v10158_v42  ;;  %v2023_v50 = vrot.slane %v2015_v2, %v10158_v42  ;;  %v10390_v4 = vpop.f32.mrb[12].mxu0 }
 0x2ea   : > { %v10371_v17 = vpop.permute.xlu1 %1553  ;;  %v2895_v32 = vcombine.low %v2871_v51, %v2887_v27  ;;  %v2896_v49 = vcombine.high %v2871_v51, %v2887_v27  ;;  %v1979_v38 = vcombine.low %v1955_v39, %v1971_v3  ;;  %v1980_v36 = vcombine.high %v1955_v39, %v1971_v3  ;;  %12667 = vst [vmem:[#allocation66_spill] sm:$0xff] %v10390_v4 }
 0x2eb   : > { %v2931_v52 = vcombine.low %v10244_v59, %v10247_v61  ;;  %v1995_v28 = vcombine.low %v1962_v10, %v1978_v31  ;;  %v1996_v29 = vcombine.high %v1962_v10, %v1978_v31  ;;  %v2046_v51 = vrot.slane %v2032_v11, %v10158_v42  ;;  %v10394_v11 = vpop.f32.mrb[13].mxu0 }
 0x2ec   : > { %v3851_v40 = vpack.c.bf16 %v2895_v32, %v2827_v25  ;;  %v3859_v33 = vpack.c.bf16 %v2896_v49, %v2828_v47  ;;  %v2947_v53 = vcombine.low %v10295_v48, %v10301_v63  ;;  %v2047_v31 = vcombine.low %v2023_v50, %v2039_v56  ;;  %12668 = vst [vmem:[#allocation67_spill] sm:$0xff] %v10394_v11 }
 0x2ed   : > { %v1600_v46 = vpop.permute.xlu0 %1599  ;;  %v2030_v10 = vrot.slane %v2016_v8, %v10158_v42  ;;  %v2048_v2 = vcombine.high %v2023_v50, %v2039_v56  ;;  %v2939_v0 = vrot.slane %v2931_v52, %v10171_v44  ;;  %v10397_v32 = vrot.slane %v1979_v38, %v10171_v44  ;;  %v10409_v56 = vpop.f32.mrb[14].mxu0 }
 0x2ee   : > { %v10384_v39 = vpop.permute.xlu1 %1601  ;;  %v6256_v23 = vsel %vm6251_vm1, %v3851_v40, 0  ;;  %v6324_v3 = vsel %vm6251_vm1, %v3859_v33, 0  ;;  %v10400_v47 = vrot.slane %v1980_v36, %v10171_v44  ;;  %v10403_v40 = vrot.slane %v1995_v28, %v10171_v44  ;;  %12670 = vst [vmem:[#allocation68_spill] sm:$0xff] %v10409_v56 }
 0x2ef   : > { %8368 = vmatpush3.bf16.xpose.msra.mxu1 %v6256_v23  ;;  %8388 = vmatpush3.bf16.xpose.msra.mxu0 %v6324_v3  ;;  %v10406_v49 = vrot.slane %v1996_v29, %v10171_v44  ;;  %v12669_v8 = vmov 0.0   ;;  %v2063_v52 = vcombine.low %v2030_v10, %v2046_v51  ;;  %v2955_v38 = vrot.slane %v2947_v53, %v10171_v44 }
 0x2f0   : > { %8369 = vmatprep.subr.bf16.mxu1 %v12669_v8  ;;  %8389 = vmatprep.subr.bf16.mxu0 %v12669_v8  ;;  %v12671_v50 = vcombine.low %v10208_v54, %v10211_v55  ;;  %v12673_v28 = vcombine.high %v10208_v54, %v10211_v55  ;;  %v10426_v3 = vrot.slane %v2047_v31, %v10171_v44 }
 0x2f1   : > { %v1648_v33 = vpop.permute.xlu0 %1647  ;;  %v2064_v25 = vcombine.high %v2030_v10, %v2046_v51  ;;  %v12675_v53 = vcombine.low %v10220_v18, %v10223_v19  ;;  %v10441_v54 = vrot.slane %v2048_v2, %v10171_v44  ;;  %v2355_v51 = vcombine.low %v10042_v12, %v1600_v46 }
 0x2f2   : > { %v10417_v36 = vrot.slane %v12671_v50, %v10158_v42  ;;  %v10423_v29 = vrot.slane %v12673_v28, %v10158_v42  ;;  %v1650_v23 = vpop.permute.xlu1 %1649  ;;  %v12677_v50 = vcombine.high %v10220_v18, %v10223_v19  ;;  %v2356_v31 = vcombine.high %v10042_v12, %v1600_v46 }
 0x2f3   : > { %v10432_v27 = vrot.slane %v12675_v53, %v10158_v42  ;;  %v3035_v10 = vcombine.low %v10397_v32, %v10400_v47  ;;  %v10458_v53 = vrot.slane %v2063_v52, %v10171_v44  ;;  %v2423_v46 = vcombine.low %v10049_v13, %v10384_v39 }
 0x2f4   : > { %12672 = vst [vmem:[#allocation69_spill] sm:$0xff] %v10417_v36  ;;  %12674 = vst [vmem:[#allocation70_spill] sm:$0xff] %v10423_v29  ;;  %v10438_v22 = vrot.slane %v12677_v50, %v10158_v42  ;;  %v2999_v55 = vcombine.low %v10417_v36, %v10423_v29  ;;  %v2963_v50 = vcombine.low %v2939_v0, %v2955_v38 }
 0x2f5   : > { %12676 = vst [vmem:[#allocation71_spill] sm:$0xff] %v10432_v27  ;;  %v10455_v2 = vpop.permute.xlu0 %1547  ;;  %v10466_v28 = vrot.slane %v2064_v25, %v10171_v44  ;;  %v2371_v11 = vcombine.low %v10366_v26, %v1648_v33  ;;  %v2372_v4 = vcombine.high %v10366_v26, %v1648_v33  ;;  %v2964_v52 = vcombine.high %v2939_v0, %v2955_v38 }
 0x2f6   : > { %12678 = vst [vmem:[#allocation72_spill] sm:$0xff] %v10438_v22  ;;  %v3015_v19 = vcombine.low %v10432_v27, %v10438_v22  ;;  %v3007_v12 = vrot.slane %v2999_v55, %v10171_v44  ;;  %v10463_v56 = vpop.permute.xlu1 %1549  ;;  %v10471_v27 = vpop.f32.mrb[15].mxu0  ;;  %v2363_v22 = vrot.slane %v2355_v51, %v10158_v42  ;;  %v2370_v55 = vrot.slane %v2356_v31, %v10158_v42 }
 0x2f7   : > { %12679 = vst [vmem:[#allocation73_spill] sm:$0xff] %v10471_v27  ;;  %v2439_v36 = vcombine.low %v10371_v17, %v1650_v23  ;;  %v2379_v25 = vrot.slane %v2371_v11, %v10158_v42  ;;  %v2386_v63 = vrot.slane %v2372_v4, %v10158_v42  ;;  %v2424_v59 = vcombine.high %v10049_v13, %v10384_v39 }
 0x2f8   : > { %v3023_v18 = vrot.slane %v3015_v19, %v10171_v44  ;;  %v2431_v26 = vrot.slane %v2423_v46, %v10158_v42  ;;  %v2440_v0 = vcombine.high %v10371_v17, %v1650_v23  ;;  %v8017_v11 = vcombine.high %v10403_v40, %v10406_v49 }
 0x2f9   : > { %v1596_v19 = vpop.permute.xlu0 %1595  ;;  %v2447_v33 = vrot.slane %v2439_v36, %v10158_v42  ;;  %v2387_v27 = vcombine.low %v2363_v22, %v2379_v25  ;;  %v2403_v4 = vcombine.low %v2370_v55, %v2386_v63  ;;  %v8018_v23 = vcombine.high %v10426_v3, %v10441_v54 }
 0x2fa   : > { %v3031_v29 = vcombine.low %v3007_v12, %v3023_v18  ;;  %v3032_v48 = vcombine.high %v3007_v12, %v3023_v18  ;;  %v10483_v38 = vpop.permute.xlu1 %1597  ;;  %v2388_v18 = vcombine.high %v2363_v22, %v2379_v25  ;;  %v2404_v12 = vcombine.high %v2370_v55, %v2386_v63 }
 0x2fb   : > { %v2455_v61 = vcombine.low %v2431_v26, %v2447_v33  ;;  %v10490_v17 = vrot.slane %v2387_v27, %v10171_v44  ;;  %v2454_v22 = vrot.slane %v2440_v0, %v10158_v42  ;;  %v2456_v63 = vcombine.high %v2431_v26, %v2447_v33 }
 0x2fc   : > { %v3852_v51 = vpack.c.bf16 %v3031_v29, %v2963_v50  ;;  %v3860_v31 = vpack.c.bf16 %v3032_v48, %v2964_v52  ;;  %v10493_v36 = vrot.slane %v2388_v18, %v10171_v44  ;;  %v3103_v48 = vcombine.low %v10426_v3, %v10441_v54 }
 0x2fd   : > { %v1644_v29 = vpop.permute.xlu0 %1643  ;;  %v3119_v50 = vcombine.low %v10458_v53, %v10466_v28  ;;  %v8019_v27 = vcombine.high %v10458_v53, %v10466_v28  ;;  %v2438_v46 = vrot.slane %v2424_v59, %v10158_v42  ;;  %v10507_v52 = vrot.slane %v2403_v4, %v10171_v44 }
 0x2fe   : > { %v6259_v13 = vsel %vm6251_vm1, %v3852_v51, 0  ;;  %v6327_v39 = vsel %vm6251_vm1, %v3860_v31, 0  ;;  %v2219_v55 = vcombine.low %v10064_v14, %v1596_v19  ;;  %v2220_v25 = vcombine.high %v10064_v14, %v1596_v19  ;;  %v1646_v54 = vpop.permute.xlu1 %1645 }
 0x2ff   : > { %8370 = vmatpush3.bf16.xpose.msra.mxu1 %v6259_v13  ;;  %8390 = vmatpush3.bf16.xpose.msra.mxu0 %v6327_v39  ;;  %v10513_v3 = vrot.slane %v3035_v10, %v10158_v42  ;;  %v10516_v26 = vrot.slane %v2404_v12, %v10171_v44  ;;  %v10523_v53 = vrot.slane %v2455_v61, %v10171_v44 }
 0x300   : > { %8371 = vmatprep.subr.bf16.mxu1 %v12669_v8  ;;  %8391 = vmatprep.subr.bf16.mxu0 %v12669_v8  ;;  %v10526_v14 = vrot.slane %v2456_v63, %v10171_v44  ;;  %v2471_v19 = vcombine.low %v2438_v46, %v2454_v22  ;;  %v2472_v0 = vcombine.high %v2438_v46, %v2454_v22 }
 0x301   : > { %v12680_v10 = vcombine.high %v10397_v32, %v10400_v47  ;;  %v12681_v51 = vcombine.low %v10403_v40, %v10406_v49  ;;  %v10541_v61 = vrot.slane %v8017_v11, %v10158_v42  ;;  %v10544_v18 = vrot.slane %v3103_v48, %v10158_v42  ;;  %v10549_v12 = vpop.permute.xlu0 %1559 }
 0x302   : > { %v10547_v4 = vrot.slane %v8018_v23, %v10158_v42  ;;  %v2227_v32 = vrot.slane %v2219_v55, %v10158_v42  ;;  %v2234_v47 = vrot.slane %v2220_v25, %v10158_v42  ;;  %v2287_v40 = vcombine.low %v10067_v15, %v10483_v38 }
 0x303   : > { %v10532_v33 = vrot.slane %v12680_v10, %v10158_v42  ;;  %v10538_v31 = vrot.slane %v12681_v51, %v10158_v42  ;;  %12682 = vst [vmem:[#allocation74_spill] sm:$0xff] %v10544_v18  ;;  %v2288_v49 = vcombine.high %v10067_v15, %v10483_v38  ;;  %v10562_v39 = vrot.slane %v3119_v50, %v10158_v42  ;;  %v10572_v38 = vpop.permute.xlu1 %1561 }
 0x304   : > { %12683 = vst [vmem:[#allocation75_spill] sm:$0xff] %v10547_v4  ;;  %v10565_v48 = vrot.slane %v8019_v27, %v10158_v42  ;;  %v3135_v22 = vcombine.low %v10544_v18, %v10547_v4  ;;  %v2235_v63 = vcombine.low %v10455_v2, %v1644_v29  ;;  %v2236_v23 = vcombine.high %v10455_v2, %v1644_v29 }
 0x305   : > { %v3067_v11 = vcombine.low %v10513_v3, %v10532_v33  ;;  %v3083_v13 = vcombine.low %v10538_v31, %v10541_v61  ;;  %12684 = vst [vmem:[#allocation76_spill] sm:$0xff] %v10562_v39  ;;  %v2303_v15 = vcombine.low %v10463_v56, %v1646_v54  ;;  %v2304_v27 = vcombine.high %v10463_v56, %v1646_v54  ;;  %v10586_v59 = vpop.permute.xlu0 %1555 }
 0x306   : > { %12685 = vst [vmem:[#allocation77_spill] sm:$0xff] %v10565_v48  ;;  %v3151_v50 = vcombine.low %v10562_v39, %v10565_v48  ;;  %v3143_v25 = vrot.slane %v3135_v22, %v10171_v44  ;;  %v2243_v10 = vrot.slane %v2235_v63, %v10158_v42  ;;  %v2250_v51 = vrot.slane %v2236_v23, %v10158_v42 }
 0x307   : > { %v3075_v46 = vrot.slane %v3067_v11, %v10171_v44  ;;  %v3091_v55 = vrot.slane %v3083_v13, %v10171_v44  ;;  %v2311_v2 = vrot.slane %v2303_v15, %v10158_v42  ;;  %v2295_v39 = vrot.slane %v2287_v40, %v10158_v42 }
 0x308   : > { %v3159_v11 = vrot.slane %v3151_v50, %v10171_v44  ;;  %v2251_v56 = vcombine.low %v2227_v32, %v2243_v10  ;;  %v2252_v54 = vcombine.high %v2227_v32, %v2243_v10  ;;  %v2267_v22 = vcombine.low %v2234_v47, %v2250_v51  ;;  %v10597_v50 = vpop.permute.xlu1 %1557 }
 0x309   : > { %v3099_v28 = vcombine.low %v3075_v46, %v3091_v55  ;;  %v3100_v13 = vcombine.high %v3075_v46, %v3091_v55  ;;  %v2268_v18 = vcombine.high %v2234_v47, %v2250_v51  ;;  %v2318_v23 = vrot.slane %v2304_v27, %v10158_v42  ;;  %v1604_v51 = vpop.permute.xlu0 %1603 }
 0x30a   : > { %v3167_v48 = vcombine.low %v3143_v25, %v3159_v11  ;;  %v3168_v63 = vcombine.high %v3143_v25, %v3159_v11  ;;  %v10591_v15 = vrot.slane %v2471_v19, %v10171_v44  ;;  %v10594_v29 = vrot.slane %v2472_v0, %v10171_v44  ;;  %v10613_v11 = vpop.f32.mrb[16].mxu0 }
 0x30b   : > { %v2302_v46 = vrot.slane %v2288_v49, %v10158_v42  ;;  %v2319_v55 = vcombine.low %v2295_v39, %v2311_v2  ;;  %v2259_v32 = vrot.slane %v2251_v56, %v10171_v44  ;;  %v2266_v25 = vrot.slane %v2252_v54, %v10171_v44  ;;  %12686 = vst [vmem:[#allocation78_spill] sm:$0xff] %v10613_v11 }
 0x30c   : > { %v3853_v40 = vpack.c.bf16 %v3167_v48, %v3099_v28  ;;  %v3861_v4 = vpack.c.bf16 %v3168_v63, %v3100_v13  ;;  %v10606_v0 = vrot.slane %v2267_v22, %v10171_v44  ;;  %v2320_v27 = vcombine.high %v2295_v39, %v2311_v2  ;;  %v10619_v2 = vpop.f32.mrb[17].mxu0 }
 0x30d   : > { %v10611_v28 = vrot.slane %v2268_v18, %v10171_v44  ;;  %v2335_v48 = vcombine.low %v2302_v46, %v2318_v23  ;;  %v2336_v39 = vcombine.high %v2302_v46, %v2318_v23  ;;  %12687 = vst [vmem:[#allocation79_spill] sm:$0xff] %v10619_v2  ;;  %v3307_v18 = vcombine.low %v2259_v32, %v2266_v25  ;;  %v1652_v19 = vpop.permute.xlu0 %1651 }
 0x30e   : > { %v6262_v49 = vsel %vm6251_vm1, %v3853_v40, 0  ;;  %v6330_v10 = vsel %vm6251_vm1, %v3861_v4, 0  ;;  %v8024_v54 = vcombine.high %v2259_v32, %v2266_v25  ;;  %v10624_v22 = vrot.slane %v2319_v55, %v10171_v44 }
 0x30f   : > { %8372 = vmatpush3.bf16.xpose.msra.mxu1 %v6262_v49  ;;  %8392 = vmatpush3.bf16.xpose.msra.mxu0 %v6330_v10  ;;  %v10628_v63 = vrot.slane %v2320_v27, %v10171_v44  ;;  %v12688_v23 = vcombine.low %v10286_v16, %v10289_v6  ;;  %v12690_v40 = vcombine.high %v10286_v16, %v10289_v6  ;;  %v1606_v27 = vpop.permute.xlu1 %1605  ;;  %v10709_v49 = vpop.f32.mrb[18].mxu0 }
 0x310   : > { %8373 = vmatprep.subr.bf16.mxu1 %v12669_v8  ;;  %8393 = vmatprep.subr.bf16.mxu0 %v12669_v8  ;;  %v12691_v55 = vcombine.low %v10304_v45, %v10307_v34  ;;  %v12693_v16 = vcombine.high %v10304_v45, %v10307_v34  ;;  %v12695_v4 = vcombine.low %v10316_v35, %v10319_v37 }
 0x311   : > { %v10635_v46 = vrot.slane %v12688_v23, %v10158_v42  ;;  %v10641_v32 = vrot.slane %v12690_v40, %v10158_v42  ;;  %v10654_v23 = vrot.slane %v2335_v48, %v10171_v44  ;;  %v10663_v40 = vrot.slane %v2336_v39, %v10171_v44  ;;  %12703 = vst [vmem:[#allocation87_spill] sm:$0xff] %v10709_v49 }
 0x312   : > { %v10647_v25 = vrot.slane %v12691_v55, %v10158_v42  ;;  %v10660_v6 = vrot.slane %v12693_v16, %v10158_v42  ;;  %v10671_v56 = vrot.slane %v12695_v4, %v10158_v42  ;;  %v12697_v48 = vcombine.high %v10316_v35, %v10319_v37 }
 0x313   : > { %12689 = vst [vmem:[#allocation80_spill] sm:$0xff] %v10635_v46  ;;  %v3203_v55 = vcombine.low %v10635_v46, %v10641_v32  ;;  %v10680_v45 = vrot.slane %v3307_v18, %v10158_v42  ;;  %v10683_v34 = vrot.slane %v8024_v54, %v10158_v42  ;;  %v12699_v4 = vcombine.low %v10332_v58, %v10335_v60  ;;  %v1654_v11 = vpop.permute.xlu1 %1653 }
 0x314   : > { %12692 = vst [vmem:[#allocation81_spill] sm:$0xff] %v10647_v25  ;;  %12694 = vst [vmem:[#allocation82_spill] sm:$0xff] %v10660_v6  ;;  %v10677_v13 = vrot.slane %v12697_v48, %v10158_v42  ;;  %v3219_v39 = vcombine.low %v10647_v25, %v10660_v6  ;;  %v12701_v37 = vcombine.high %v10332_v58, %v10335_v60 }
 0x315   : > { %12696 = vst [vmem:[#allocation83_spill] sm:$0xff] %v10671_v56  ;;  %v10691_v16 = vrot.slane %v12699_v4, %v10158_v42  ;;  %v3211_v35 = vrot.slane %v3203_v55, %v10171_v44  ;;  %v2491_v48 = vcombine.low %v10007_v5, %v1604_v51  ;;  %v3375_v47 = vcombine.low %v10624_v22, %v10628_v63 }
 0x316   : > { %12698 = vst [vmem:[#allocation84_spill] sm:$0xff] %v10677_v13  ;;  %v10698_v18 = vrot.slane %v12701_v37, %v10158_v42  ;;  %v3271_v54 = vcombine.low %v10671_v56, %v10677_v13  ;;  %v8026_v4 = vcombine.high %v10624_v22, %v10628_v63  ;;  %v3227_v10 = vrot.slane %v3219_v39, %v10171_v44  ;;  %v10717_v56 = vpop.f32.mrb[19].mxu0 }
 0x317   : > { %12700 = vst [vmem:[#allocation85_spill] sm:$0xff] %v10691_v16  ;;  %v2492_v55 = vcombine.high %v10007_v5, %v1604_v51  ;;  %v3391_v58 = vcombine.low %v10654_v23, %v10663_v40  ;;  %v2507_v2 = vcombine.low %v10586_v59, %v1652_v19  ;;  %12704 = vst [vmem:[#allocation88_spill] sm:$0xff] %v10717_v56 }
 0x318   : > { %12702 = vst [vmem:[#allocation86_spill] sm:$0xff] %v10698_v18  ;;  %v3279_v60 = vrot.slane %v3271_v54, %v10171_v44  ;;  %v3287_v37 = vcombine.low %v10691_v16, %v10698_v18  ;;  %v3235_v22 = vcombine.low %v3211_v35, %v3227_v10  ;;  %v2499_v63 = vrot.slane %v2491_v48, %v10158_v42 }
 0x319   : > { %v2559_v5 = vcombine.low %v10017_v9, %v1606_v27  ;;  %v2560_v51 = vcombine.high %v10017_v9, %v1606_v27  ;;  %v3236_v49 = vcombine.high %v3211_v35, %v3227_v10  ;;  %v2508_v54 = vcombine.high %v10586_v59, %v1652_v19 }
 0x31a   : > { %v3295_v39 = vrot.slane %v3287_v37, %v10171_v44  ;;  %v2515_v13 = vrot.slane %v2507_v2, %v10158_v42  ;;  %v8027_v16 = vcombine.high %v10654_v23, %v10663_v40  ;;  %v2506_v18 = vrot.slane %v2492_v55, %v10158_v42  ;;  %v1608_v37 = vpop.permute.xlu0 %1607 }
 0x31b   : > { %v2575_v56 = vcombine.low %v10597_v50, %v1654_v11  ;;  %v2576_v48 = vcombine.high %v10597_v50, %v1654_v11  ;;  %v2522_v9 = vrot.slane %v2508_v54, %v10158_v42  ;;  %v2567_v10 = vrot.slane %v2559_v5, %v10158_v42 }
 0x31c   : > { %v3303_v25 = vcombine.low %v3279_v60, %v3295_v39  ;;  %v3304_v6 = vcombine.high %v3279_v60, %v3295_v39  ;;  %v2523_v27 = vcombine.low %v2499_v63, %v2515_v13  ;;  %v2524_v59 = vcombine.high %v2499_v63, %v2515_v13 }
 0x31d   : > { %v2583_v19 = vrot.slane %v2575_v56, %v10158_v42  ;;  %v2590_v2 = vrot.slane %v2576_v48, %v10158_v42  ;;  %v2574_v35 = vrot.slane %v2560_v51, %v10158_v42  ;;  %v2539_v55 = vcombine.low %v2506_v18, %v2522_v9 }
 0x31e   : > { %v3854_v23 = vpack.c.bf16 %v3303_v25, %v3235_v22  ;;  %v3862_v40 = vpack.c.bf16 %v3304_v6, %v3236_v49  ;;  %v2540_v46 = vcombine.high %v2506_v18, %v2522_v9  ;;  %v2627_v60 = vcombine.low %v10001_v1, %v1608_v37  ;;  %v1610_v18 = vpop.permute.xlu1 %1609 }
 0x31f   : > { %v2591_v50 = vcombine.low %v2567_v10, %v2583_v19  ;;  %v2592_v11 = vcombine.high %v2567_v10, %v2583_v19  ;;  %v10739_v13 = vrot.slane %v2523_v27, %v10171_v44  ;;  %v2607_v56 = vcombine.low %v2574_v35, %v2590_v2 }
 0x320   : > { %v6265_v39 = vsel %vm6251_vm1, %v3854_v23, 0  ;;  %v6333_v54 = vsel %vm6251_vm1, %v3862_v40, 0  ;;  %v10742_v25 = vrot.slane %v2524_v59, %v10171_v44  ;;  %v10745_v49 = vrot.slane %v2539_v55, %v10171_v44 }
 0x321   : > { %8374 = vmatpush3.bf16.xpose.msra.mxu1 %v6265_v39  ;;  %8394 = vmatpush3.bf16.xpose.msra.mxu0 %v6333_v54  ;;  %v10748_v6 = vrot.slane %v2540_v46, %v10171_v44  ;;  %v10751_v22 = vrot.slane %v2591_v50, %v10171_v44  ;;  %v10754_v63 = vrot.slane %v2592_v11, %v10171_v44 }
 0x322   : > { %v2608_v5 = vcombine.high %v2574_v35, %v2590_v2  ;;  %v2628_v51 = vcombine.high %v10001_v1, %v1608_v37  ;;  %8375 = vmatprep.subr.bf16.mxu1 %v12669_v8  ;;  %v12705_v48 = vcombine.low %v10606_v0, %v10611_v28  ;;  %v12706_v46 = vcombine.high %v10606_v0, %v10611_v28  ;;  %v1656_v35 = vpop.permute.xlu0 %1655  ;;  %v1658_v39 = vpop.permute.xlu1 %1657 }
 0x323   : > { %v10771_v10 = vrot.slane %v3375_v47, %v10158_v42  ;;  %v10774_v59 = vrot.slane %v8026_v4, %v10158_v42  ;;  %8395 = vmatprep.subr.bf16.mxu0 %v12669_v8  ;;  %v10778_v1 = vrot.slane %v3391_v58, %v10158_v42  ;;  %v10781_v37 = vrot.slane %v8027_v16, %v10158_v42 }
 0x324   : > { %v10762_v9 = vrot.slane %v12705_v48, %v10158_v42  ;;  %v10768_v27 = vrot.slane %v12706_v46, %v10158_v42  ;;  %v10784_v19 = vrot.slane %v2607_v56, %v10171_v44  ;;  %v10787_v0 = vrot.slane %v2608_v5, %v10171_v44 }
 0x325   : > { %12707 = vst [vmem:[#allocation89_spill] sm:$0xff] %v10771_v10  ;;  %12708 = vst [vmem:[#allocation90_spill] sm:$0xff] %v10778_v1  ;;  %v3579_v47 = vcombine.low %v10739_v13, %v10742_v25  ;;  %v8032_v28 = vcombine.high %v10739_v13, %v10742_v25  ;;  %v3595_v4 = vcombine.low %v10745_v49, %v10748_v6 }
 0x326   : > { %12709 = vst [vmem:[#allocation91_spill] sm:$0xff] %v10781_v37  ;;  %v2635_v58 = vrot.slane %v2627_v60, %v10158_v42  ;;  %v8033_v16 = vcombine.high %v10745_v49, %v10748_v6  ;;  %v3647_v2 = vcombine.low %v10751_v22, %v10754_v63  ;;  %v8034_v23 = vcombine.high %v10751_v22, %v10754_v63 }
 0x327   : > { %v2642_v40 = vrot.slane %v2628_v51, %v10158_v42  ;;  %v2695_v55 = vcombine.low %v10012_v7, %v1610_v18  ;;  %v2696_v50 = vcombine.high %v10012_v7, %v1610_v18  ;;  %v3339_v11 = vcombine.low %v10680_v45, %v10683_v34 }
 0x328   : > { %v3355_v60 = vcombine.low %v10762_v9, %v10768_v27  ;;  %v3663_v54 = vcombine.low %v10784_v19, %v10787_v0  ;;  %v8035_v13 = vcombine.high %v10784_v19, %v10787_v0  ;;  %v3407_v56 = vcombine.low %v10771_v10, %v10774_v59 }
 0x329   : > { %v3423_v25 = vcombine.low %v10778_v1, %v10781_v37  ;;  %v3347_v7 = vrot.slane %v3339_v11, %v10171_v44  ;;  %v2643_v6 = vcombine.low %v10549_v12, %v1656_v35  ;;  %v2644_v18 = vcombine.high %v10549_v12, %v1656_v35  ;;  %v10829_v35 = vpop.permute.xlu0 %1221 }
 0x32a   : > { %v3363_v49 = vrot.slane %v3355_v60, %v10171_v44  ;;  %v3415_v22 = vrot.slane %v3407_v56, %v10171_v44  ;;  %v2711_v5 = vcombine.low %v10572_v38, %v1658_v39  ;;  %v2712_v51 = vcombine.high %v10572_v38, %v1658_v39 }
 0x32b   : > { %v3431_v63 = vrot.slane %v3423_v25, %v10171_v44  ;;  %v2651_v19 = vrot.slane %v2643_v6, %v10158_v42  ;;  %v2658_v0 = vrot.slane %v2644_v18, %v10158_v42  ;;  %v2703_v11 = vrot.slane %v2695_v55, %v10158_v42 }
 0x32c   : > { %v3371_v48 = vcombine.low %v3347_v7, %v3363_v49  ;;  %v3372_v46 = vcombine.high %v3347_v7, %v3363_v49  ;;  %v2719_v12 = vrot.slane %v2711_v5, %v10158_v42  ;;  %v2710_v38 = vrot.slane %v2696_v50, %v10158_v42 }
 0x32d   : > { %v3439_v60 = vcombine.low %v3415_v22, %v3431_v63  ;;  %v3440_v1 = vcombine.high %v3415_v22, %v3431_v63  ;;  %v2659_v56 = vcombine.low %v2635_v58, %v2651_v19  ;;  %v2660_v25 = vcombine.high %v2635_v58, %v2651_v19  ;;  %v10839_v63 = vpop.permute.xlu1 %1223 }
 0x32e   : > { %v2675_v37 = vcombine.low %v2642_v40, %v2658_v0  ;;  %v2676_v10 = vcombine.high %v2642_v40, %v2658_v0  ;;  %v2726_v49 = vrot.slane %v2712_v51, %v10158_v42  ;;  %v2727_v18 = vcombine.low %v2703_v11, %v2719_v12 }
 0x32f   : > { %v3855_v39 = vpack.c.bf16 %v3439_v60, %v3371_v48  ;;  %v3863_v7 = vpack.c.bf16 %v3440_v1, %v3372_v46  ;;  %v10834_v6 = vrot.slane %v2659_v56, %v10171_v44  ;;  %v10837_v55 = vrot.slane %v2660_v25, %v10171_v44 }
 0x330   : > { %v2728_v22 = vcombine.high %v2703_v11, %v2719_v12  ;;  %v10844_v50 = vrot.slane %v2675_v37, %v10171_v44  ;;  %v10847_v1 = vrot.slane %v2676_v10, %v10171_v44  ;;  %v10850_v5 = vrot.slane %v3579_v47, %v10158_v42  ;;  %v1228_v47 = vpop.permute.xlu0 %1227 }
 0x331   : > { %v6268_v58 = vsel %vm6251_vm1, %v3855_v39, 0  ;;  %v6336_v40 = vsel %vm6251_vm1, %v3863_v7, 0  ;;  %v10853_v51 = vrot.slane %v8032_v28, %v10158_v42  ;;  %v10856_v48 = vrot.slane %v3595_v4, %v10158_v42  ;;  %v1230_v7 = vpop.permute.xlu1 %1229 }
 0x332   : > { %8376 = vmatpush3.bf16.xpose.msra.mxu1 %v6268_v58  ;;  %8396 = vmatpush3.bf16.xpose.msra.mxu0 %v6336_v40  ;;  %v10859_v46 = vrot.slane %v8033_v16, %v10158_v42  ;;  %v10862_v37 = vrot.slane %v3647_v2, %v10158_v42  ;;  %v2743_v19 = vcombine.low %v2710_v38, %v2726_v49 }
 0x333   : > { %v2744_v10 = vcombine.high %v2710_v38, %v2726_v49  ;;  %8377 = vmatprep.subr.bf16.mxu1 %v12669_v8  ;;  %v10866_v0 = vrot.slane %v8034_v23, %v10158_v42  ;;  %v10869_v28 = vrot.slane %v3663_v54, %v10158_v42  ;;  %v10872_v4 = vrot.slane %v8035_v13, %v10158_v42 }
 0x334   : > { %v10875_v16 = vrot.slane %v2727_v18, %v10171_v44  ;;  %8397 = vmatprep.subr.bf16.mxu0 %v12669_v8  ;;  %v3715_v2 = vcombine.low %v10834_v6, %v10837_v55  ;;  %v10885_v54 = vrot.slane %v2728_v22, %v10171_v44  ;;  %v12710_v60 = vcombine.low %v10490_v17, %v10493_v36 }
 0x335   : > { %v12711_v56 = vcombine.high %v10490_v17, %v10493_v36  ;;  %v12712_v38 = vcombine.low %v10507_v52, %v10516_v26  ;;  %v10908_v49 = vrot.slane %v2743_v19, %v10171_v44  ;;  %v10911_v18 = vrot.slane %v2744_v10, %v10171_v44 }
 0x336   : > { %v10893_v12 = vrot.slane %v12710_v60, %v10158_v42  ;;  %v12714_v22 = vcombine.high %v10507_v52, %v10516_v26  ;;  %v12716_v36 = vcombine.low %v10523_v53, %v10526_v14  ;;  %v12718_v19 = vcombine.high %v10523_v53, %v10526_v14 }
 0x337   : > { %v10899_v25 = vrot.slane %v12711_v56, %v10158_v42  ;;  %v10905_v39 = vrot.slane %v12712_v38, %v10158_v42  ;;  %v12720_v52 = vcombine.low %v10591_v15, %v10594_v29  ;;  %v12722_v60 = vcombine.high %v10591_v15, %v10594_v29 }
 0x338   : > { %v10917_v17 = vrot.slane %v12714_v22, %v10158_v42  ;;  %v10923_v58 = vrot.slane %v12716_v36, %v10158_v42  ;;  %v10931_v10 = vrot.slane %v12718_v19, %v10158_v42  ;;  %v10946_v38 = vrot.slane %v3715_v2, %v10158_v42  ;;  %v1234_v36 = vpop.permute.xlu0 %1233 }
 0x339   : > { %12713 = vst [vmem:[#allocation92_spill] sm:$0xff] %v10905_v39  ;;  %v3475_v40 = vcombine.low %v10893_v12, %v10899_v25  ;;  %v10937_v26 = vrot.slane %v12720_v52, %v10158_v42  ;;  %v10943_v56 = vrot.slane %v12722_v60, %v10158_v42  ;;  %v1239_v22 = vcombine.low %v10106_v20, %v1228_v47 }
 0x33a   : > { %12715 = vst [vmem:[#allocation93_spill] sm:$0xff] %v10917_v17  ;;  %12717 = vst [vmem:[#allocation94_spill] sm:$0xff] %v10923_v58  ;;  %v3491_v14 = vcombine.low %v10905_v39, %v10917_v17  ;;  %v3543_v52 = vcombine.low %v10923_v58, %v10931_v10  ;;  %v1240_v15 = vcombine.high %v10106_v20, %v1228_v47 }
 0x33b   : > { %12719 = vst [vmem:[#allocation95_spill] sm:$0xff] %v10931_v10  ;;  %12721 = vst [vmem:[#allocation96_spill] sm:$0xff] %v10937_v26  ;;  %v3483_v19 = vrot.slane %v3475_v40, %v10171_v44  ;;  %v3559_v29 = vcombine.low %v10937_v26, %v10943_v56  ;;  %v1307_v53 = vcombine.low %v10113_v21, %v1230_v7 }
 0x33c   : > { %12723 = vst [vmem:[#allocation97_spill] sm:$0xff] %v10943_v56  ;;  %v3499_v60 = vrot.slane %v3491_v14, %v10171_v44  ;;  %v1308_v13 = vcombine.high %v10113_v21, %v1230_v7  ;;  %v3551_v23 = vrot.slane %v3543_v52, %v10171_v44  ;;  %v1255_v26 = vcombine.low %v10829_v35, %v1234_v36  ;;  %v1236_v56 = vpop.permute.xlu1 %1235 }
 0x33d   : > { %v3567_v11 = vrot.slane %v3559_v29, %v10171_v44  ;;  %v1247_v2 = vrot.slane %v1239_v22, %v10158_v42  ;;  %v1254_v14 = vrot.slane %v1240_v15, %v10158_v42  ;;  %v1256_v21 = vcombine.high %v10829_v35, %v1234_v36 }
 0x33e   : > { %v3507_v20 = vcombine.low %v3483_v19, %v3499_v60  ;;  %v3508_v47 = vcombine.high %v3483_v19, %v3499_v60  ;;  %v1263_v7 = vrot.slane %v1255_v26, %v10158_v42  ;;  %v1315_v40 = vrot.slane %v1307_v53, %v10158_v42 }
 0x33f   : > { %v3575_v58 = vcombine.low %v3551_v23, %v3567_v11  ;;  %v3576_v10 = vcombine.high %v3551_v23, %v3567_v11  ;;  %v1322_v52 = vrot.slane %v1308_v13, %v10158_v42  ;;  %v1323_v29 = vcombine.low %v10839_v63, %v1236_v56 }
 0x340   : > { %v1324_v39 = vcombine.high %v10839_v63, %v1236_v56  ;;  %v1270_v22 = vrot.slane %v1256_v21, %v10158_v42  ;;  %v1271_v60 = vcombine.low %v1247_v2, %v1263_v7  ;;  %v1272_v15 = vcombine.high %v1247_v2, %v1263_v7 }
 0x341   : > { %v3856_v17 = vpack.c.bf16 %v3575_v58, %v3507_v20  ;;  %v3864_v19 = vpack.c.bf16 %v3576_v10, %v3508_v47  ;;  %v1331_v11 = vrot.slane %v1323_v29, %v10158_v42  ;;  %v3611_v23 = vcombine.low %v10850_v5, %v10853_v51 }
 0x342   : > { %v1338_v35 = vrot.slane %v1324_v39, %v10158_v42  ;;  %v1279_v53 = vrot.slane %v1271_v60, %v10171_v44  ;;  %v1287_v63 = vcombine.low %v1254_v14, %v1270_v22  ;;  %v1286_v58 = vrot.slane %v1272_v15, %v10171_v44 }
 0x343   : > { %v6271_v26 = vsel %vm6251_vm1, %v3856_v17, 0  ;;  %v6339_v13 = vsel %vm6251_vm1, %v3864_v19, 0  ;;  %v1288_v10 = vcombine.high %v1254_v14, %v1270_v22  ;;  %v1339_v56 = vcombine.low %v1315_v40, %v1331_v11 }
 0x344   : > { %8378 = vmatpush3.bf16.xpose.msra.mxu1 %v6271_v26  ;;  %8398 = vmatpush3.bf16.xpose.msra.mxu0 %v6339_v13  ;;  %v1295_v36 = vrot.slane %v1287_v63, %v10171_v44  ;;  %v1340_v2 = vcombine.high %v1315_v40, %v1331_v11  ;;  %v1355_v39 = vcombine.low %v1322_v52, %v1338_v35 }
 0x345   : > { %v1356_v20 = vcombine.high %v1322_v52, %v1338_v35  ;;  %8379 = vmatprep.subr.bf16.mxu1 %v12669_v8  ;;  %v1302_v17 = vrot.slane %v1288_v10, %v10171_v44  ;;  %v1375_v47 = vcombine.low %v1279_v53, %v1286_v58  ;;  %v8004_v21 = vcombine.high %v1279_v53, %v1286_v58 }
 0x346   : > { %v1347_v7 = vrot.slane %v1339_v56, %v10171_v44  ;;  %8399 = vmatprep.subr.bf16.mxu0 %v12669_v8  ;;  %v1354_v29 = vrot.slane %v1340_v2, %v10171_v44  ;;  %v1363_v14 = vrot.slane %v1355_v39, %v10171_v44  ;;  %v3627_v40 = vcombine.low %v10856_v48, %v10859_v46 }
 0x347   : > { %v1370_v19 = vrot.slane %v1356_v20, %v10171_v44  ;;  %v10997_v52 = vrot.slane %v1375_v47, %v10158_v42  ;;  %v11000_v22 = vrot.slane %v8004_v21, %v10158_v42  ;;  %v1391_v60 = vcombine.low %v1295_v36, %v1302_v17 }
 0x348   : > { %v8005_v15 = vcombine.high %v1295_v36, %v1302_v17  ;;  %v1443_v11 = vcombine.low %v1347_v7, %v1354_v29  ;;  %v8006_v35 = vcombine.high %v1347_v7, %v1354_v29  ;;  %v8039_v53 = vcombine.high %v10908_v49, %v10911_v18 }
 0x349   : > { %v1459_v26 = vcombine.low %v1363_v14, %v1370_v19  ;;  %v8007_v13 = vcombine.high %v1363_v14, %v1370_v19  ;;  %v11005_v63 = vrot.slane %v1391_v60, %v10158_v42  ;;  %v12724_v20 = vcombine.high %v10834_v6, %v10837_v55 }
 0x34a   : > { %v11008_v58 = vrot.slane %v8005_v15, %v10158_v42  ;;  %v11013_v56 = vrot.slane %v1443_v11, %v10158_v42  ;;  %v11016_v36 = vrot.slane %v8006_v35, %v10158_v42  ;;  %v3619_v21 = vrot.slane %v3611_v23, %v10171_v44 }
 0x34b   : > { %v11019_v2 = vrot.slane %v1459_v26, %v10158_v42  ;;  %v11022_v39 = vrot.slane %v8007_v13, %v10158_v42  ;;  %v11028_v17 = vrot.slane %v12724_v20, %v10158_v42  ;;  %v3635_v7 = vrot.slane %v3627_v40, %v10171_v44 }
 0x34c   : > { %v1407_v29 = vcombine.low %v10997_v52, %v11000_v22  ;;  %v1423_v14 = vcombine.low %v11005_v63, %v11008_v58  ;;  %v12725_v55 = vcombine.low %v10844_v50, %v10847_v1  ;;  %v12727_v23 = vcombine.high %v10844_v50, %v10847_v1 }
 0x34d   : > { %v12728_v15 = vcombine.low %v10875_v16, %v10885_v54  ;;  %v3679_v35 = vcombine.low %v10862_v37, %v10866_v0  ;;  %v12730_v26 = vcombine.high %v10875_v16, %v10885_v54  ;;  %v12732_v50 = vcombine.low %v10908_v49, %v10911_v18 }
 0x34e   : > { %v11046_v60 = vrot.slane %v12725_v55, %v10158_v42  ;;  %v11052_v40 = vrot.slane %v12727_v23, %v10158_v42  ;;  %v11075_v20 = vrot.slane %v8039_v53, %v10158_v42  ;;  %v1475_v55 = vcombine.low %v11013_v56, %v11016_v36 }
 0x34f   : > { %v11058_v11 = vrot.slane %v12728_v15, %v10158_v42  ;;  %v11066_v13 = vrot.slane %v12730_v26, %v10158_v42  ;;  %v11072_v1 = vrot.slane %v12732_v50, %v10158_v42  ;;  %v1491_v23 = vcombine.low %v11019_v2, %v11022_v39 }
 0x350   : > { %12726 = vst [vmem:[#allocation98_spill] sm:$0xff] %v11046_v60  ;;  %12734 = vst [vmem:[#allocation102_spill] sm:$0xff] %v11075_v20  ;;  %v3687_v15 = vrot.slane %v3679_v35, %v10171_v44  ;;  %v3695_v16 = vcombine.low %v10869_v28, %v10872_v4  ;;  %v11085_v54 = vrot.slane %v1407_v29, %v10171_v44 }
 0x351   : > { %12729 = vst [vmem:[#allocation99_spill] sm:$0xff] %v11058_v11  ;;  %12731 = vst [vmem:[#allocation100_spill] sm:$0xff] %v11066_v13  ;;  %v11088_v49 = vrot.slane %v1423_v14, %v10171_v44  ;;  %v3643_v18 = vcombine.low %v3619_v21, %v3635_v7  ;;  %v11092_v53 = vadd.f32 %v10249_v62, %v10125_v24 }
 0x352   : > { %12733 = vst [vmem:[#allocation101_spill] sm:$0xff] %v11072_v1  ;;  %v3703_v26 = vrot.slane %v3695_v16, %v10171_v44  ;;  %v3644_v50 = vcombine.high %v3619_v21, %v3635_v7  ;;  %v11097_v35 = vadd.f32 %v10263_v30, %v10125_v24  ;;  %v3747_v6 = vcombine.low %v10946_v38, %v11028_v17 }
 0x353   : > { %12735 = vst [vmem:[#allocation103_spill] sm:$0xff] %v11092_v53  ;;  %v11102_v29 = vrot.slane %v1475_v55, %v10171_v44  ;;  %v3763_v14 = vcombine.low %v11046_v60, %v11052_v40  ;;  %v3815_v62 = vcombine.low %v11058_v11, %v11066_v13  ;;  %v3831_v16 = vcombine.low %v11072_v1, %v11075_v20 }
 0x354   : > { %3911 = vrot.lane.b32.xlu0 %v11092_v53, %s9307_s6  ;;  %v11113_v30 = vrot.slane %v1491_v23, %v10171_v44  ;;  %v3711_v21 = vcombine.low %v3687_v15, %v3703_v26  ;;  %v3712_v7 = vcombine.high %v3687_v15, %v3703_v26  ;;  %v3755_v55 = vrot.slane %v3747_v6, %v10171_v44  ;;  %v12736_v23 = vld [vmem:[#allocation58_spill] sm:$0xff] }
 0x355   : > { %3913 = vrot.lane.b32.xlu1 %v11097_v35, %s9307_s6  ;;  %v3771_v19 = vrot.slane %v3763_v14, %v10171_v44  ;;  %v3823_v47 = vrot.slane %v3815_v62, %v10171_v44  ;;  %v3839_v10 = vrot.slane %v3831_v16, %v10171_v44  ;;  %v2796_v20 = vcombine.high %v10258_v41, %v10261_v43  ;;  %v12737_v43 = vld [vmem:[#allocation57_spill] sm:$0xff]  ;;  %v12740_v62 = vld [vmem:[#allocation62_spill] sm:$0xff] }
 0x356   : > { %v3857_v42 = vpack.c.bf16 %v3711_v21, %v3643_v18  ;;  %v3865_v1 = vpack.c.bf16 %v3712_v7, %v3644_v50  ;;  %v2812_v11 = vcombine.high %v12736_v23, %v10279_v57  ;;  %v1439_v14 = vcombine.low %v11085_v54, %v11088_v49  ;;  %v12741_v21 = vld [vmem:[#allocation65_spill] sm:$0xff]  ;;  %v12742_v7 = vld [vmem:[#allocation64_spill] sm:$0xff] }
 0x357   : > { %v3779_v15 = vcombine.low %v3755_v55, %v3771_v19  ;;  %v3847_v26 = vcombine.low %v3823_v47, %v3839_v10  ;;  %v3780_v6 = vcombine.high %v3755_v55, %v3771_v19  ;;  %v3848_v13 = vcombine.high %v3823_v47, %v3839_v10  ;;  %v12738_v10 = vld [vmem:[#allocation59_spill] sm:$0xff] }
 0x358   : > { %3959 = vrot.lane.b32.xlu0 %v11092_v53, %s9308_s7  ;;  %v1507_v18 = vcombine.low %v11102_v29, %v11113_v30  ;;  %v6274_v50 = vsel %vm6251_vm1, %v3857_v42, 0  ;;  %v6342_v41 = vsel %vm6251_vm1, %v3865_v1, 0  ;;  %v11137_v57 = vadd.f32 %v12737_v43, %v10125_v24  ;;  %v12739_v19 = vld [vmem:[#allocation63_spill] sm:$0xff]  ;;  %v12743_v43 = vld [vmem:[#allocation56_spill] sm:$0xff] }
 0x359   : > { %3961 = vrot.lane.b32.xlu1 %v11097_v35, %s9308_s7  ;;  %8380 = vmatpush3.bf16.xpose.msra.mxu1 %v6274_v50  ;;  %v11141_v47 = vadd.f32 %v12738_v10, %v10125_v24  ;;  %v2864_v16 = vcombine.high %v12740_v62, %v12739_v19  ;;  %v3858_v42 = vpack.c.bf16 %v3847_v26, %v3779_v15  ;;  %v12744_v10 = vld [vmem:[#allocation55_spill] sm:$0xff]  ;;  %v12745_v15 = vld [vmem:[#allocation61_spill] sm:$0xff]  ;;  %v12746_v26 = vld [vmem:[#allocation60_spill] sm:$0xff] }
 0x35a   : > { %8400 = vmatpush3.bf16.xpose.msra.mxu0 %v6342_v41  ;;  %8381 = vmatprep.subr.bf16.mxu1 %v12669_v8  ;;  %v3866_v1 = vpack.c.bf16 %v3848_v13, %v3780_v6  ;;  %v2880_v55 = vcombine.high %v12742_v7, %v12741_v21  ;;  %v2810_v23 = vrot.slane %v2796_v20, %v10171_v44  ;;  %v12747_v62 = vld [vmem:[#allocation70_spill] sm:$0xff]  ;;  %v12748_v21 = vld [vmem:[#allocation69_spill] sm:$0xff]  ;;  %v12750_v20 = vld [vmem:[#allocation71_spill] sm:$0xff] }
 0x35b   : > { %8401 = vmatprep.subr.bf16.mxu0 %v12669_v8  ;;  %v2826_v50 = vrot.slane %v2812_v11, %v10171_v44  ;;  %v2878_v41 = vrot.slane %v2864_v16, %v10171_v44  ;;  %v2932_v19 = vcombine.high %v12744_v10, %v12743_v43  ;;  %v2948_v6 = vcombine.high %v12746_v26, %v12745_v15 }
 0x35c   : > { %4007 = vrot.lane.b32.xlu0 %v11092_v53, %s9309_s9  ;;  %v2894_v13 = vrot.slane %v2880_v55, %v10171_v44  ;;  %v3000_v7 = vcombine.high %v12748_v21, %v12747_v62  ;;  %v12749_v53 = vld [vmem:[#allocation72_spill] sm:$0xff]  ;;  %v12751_v11 = vcombine.high %v10997_v52, %v11000_v22  ;;  %v12752_v43 = vcombine.high %v11005_v63, %v11008_v58  ;;  %v12760_v21 = vld [vmem:[#allocation77_spill] sm:$0xff] }
 0x35d   : > { %4009 = vrot.lane.b32.xlu1 %v11097_v35, %s9309_s9  ;;  %v3016_v60 = vcombine.high %v12750_v20, %v12749_v53  ;;  %v1440_v10 = vcombine.high %v11085_v54, %v11088_v49  ;;  %v12753_v15 = vcombine.high %v11013_v56, %v11016_v36  ;;  %v1508_v52 = vcombine.high %v11102_v29, %v11113_v30 }
 0x35e   : > { %v11169_v16 = vrot.slane %v12751_v11, %v10171_v44  ;;  %v11175_v55 = vrot.slane %v12752_v43, %v10171_v44  ;;  %v6277_v22 = vsel %vm6251_vm1, %v3858_v42, 0  ;;  %v6345_v26 = vsel %vm6251_vm1, %v3866_v1, 0 }
 0x35f   : > { %v11183_v53 = vrot.slane %v12753_v15, %v10171_v44  ;;  %v2897_v62 = vcombine.low %v2878_v41, %v2894_v13  ;;  %v12754_v63 = vcombine.high %v11019_v2, %v11022_v39  ;;  %v1511_v54 = vpack.c.bf16 %v1507_v18, %v1439_v14 }
 0x360   : > { %v2829_v49 = vcombine.low %v2810_v23, %v2826_v50  ;;  %3907 = vrot.lane.b32.xlu0 %v11137_v57, %s9307_s6  ;;  %v2946_v56 = vrot.slane %v2932_v19, %v10171_v44  ;;  %v2898_v36 = vcombine.high %v2878_v41, %v2894_v13  ;;  %v2962_v29 = vrot.slane %v2948_v6, %v10171_v44  ;;  %v12755_v41 = vld [vmem:[#allocation75_spill] sm:$0xff]  ;;  %v12756_v19 = vld [vmem:[#allocation74_spill] sm:$0xff] }
 0x361   : > { %v11193_v58 = vrot.slane %v12754_v63, %v10171_v44  ;;  %3909 = vrot.lane.b32.xlu1 %v11141_v47, %s9307_s6  ;;  %v3014_v30 = vrot.slane %v3000_v7, %v10171_v44  ;;  %v3030_v42 = vrot.slane %v3016_v60, %v10171_v44  ;;  %8382 = vmatpush3.bf16.xpose.msra.mxu1 %v6277_v22  ;;  %v12757_v60 = vld [vmem:[#allocation66_spill] sm:$0xff] }
 0x362   : > { %8402 = vmatpush3.bf16.xpose.msra.mxu0 %v6345_v26  ;;  %v3867_v2 = vpack.c.bf16 %v2897_v62, %v2829_v49  ;;  %v3068_v39 = vcombine.high %v10513_v3, %v10532_v33  ;;  %v3084_v14 = vcombine.high %v10538_v31, %v10541_v61  ;;  %8407 = vmatprep.subr.bf16.mxu1 %v12669_v8  ;;  %v12758_v3 = vld [vmem:[#allocation67_spill] sm:$0xff]  ;;  %v12759_v31 = vld [vmem:[#allocation68_spill] sm:$0xff]  ;;  %v12763_v49 = vld [vmem:[#allocation82_spill] sm:$0xff] }
 0x363   : > { %8427 = vmatprep.subr.bf16.mxu0 %v12669_v8  ;;  %v1512_v18 = vpack.c.bf16 %v1508_v52, %v1440_v10  ;;  %v2830_v1 = vcombine.high %v2810_v23, %v2826_v50  ;;  %v3136_v13 = vcombine.high %v12756_v19, %v12755_v41  ;;  %v11215_v6 = vadd.f32 %v12757_v60, %v10125_v24  ;;  %v12761_v23 = vld [vmem:[#allocation76_spill] sm:$0xff] }
 0x364   : > { %3955 = vrot.lane.b32.xlu0 %v11137_v57, %s9308_s7  ;;  %v11219_v33 = vadd.f32 %v12758_v3, %v10125_v24  ;;  %v11223_v61 = vadd.f32 %v12759_v31, %v10125_v24  ;;  %v3152_v50 = vcombine.high %v12761_v23, %v12760_v21  ;;  %v2965_v20 = vcombine.low %v2946_v56, %v2962_v29  ;;  %v12762_v62 = vld [vmem:[#allocation80_spill] sm:$0xff] }
 0x365   : > { %v3875_v7 = vpack.c.bf16 %v2898_v36, %v2830_v1  ;;  %3957 = vrot.lane.b32.xlu1 %v11141_v47, %s9308_s7  ;;  %v3033_v11 = vcombine.low %v3014_v30, %v3030_v42  ;;  %v3034_v43 = vcombine.high %v3014_v30, %v3030_v42  ;;  %v6392_v10 = vsel %vm6251_vm1, %v3867_v2, 0  ;;  %v12764_v36 = vld [vmem:[#allocation81_spill] sm:$0xff]  ;;  %v12766_v30 = vld [vmem:[#allocation83_spill] sm:$0xff]  ;;  %v12767_v2 = vld [vmem:[#allocation86_spill] sm:$0xff] }
 0x366   : > { %v2966_v15 = vcombine.high %v2946_v56, %v2962_v29  ;;  %v3082_v52 = vrot.slane %v3068_v39, %v10171_v44  ;;  %v3098_v22 = vrot.slane %v3084_v14, %v10171_v44  ;;  %v3150_v26 = vrot.slane %v3136_v13, %v10171_v44  ;;  %v12765_v29 = vld [vmem:[#allocation84_spill] sm:$0xff]  ;;  %v12768_v39 = vld [vmem:[#allocation85_spill] sm:$0xff] }
 0x367   : > { %v3204_v63 = vcombine.high %v12762_v62, %v10641_v32  ;;  %v3220_v1 = vcombine.high %v12764_v36, %v12763_v49  ;;  %v3340_v41 = vcombine.high %v10680_v45, %v10683_v34  ;;  %v3166_v56 = vrot.slane %v3152_v50, %v10171_v44  ;;  %v12769_v13 = vld [vmem:[#allocation73_spill] sm:$0xff]  ;;  %v12772_v62 = vld [vmem:[#allocation90_spill] sm:$0xff] }
 0x368   : > { %4003 = vrot.lane.b32.xlu0 %v11137_v57, %s9309_s9  ;;  %v3272_v42 = vcombine.high %v12766_v30, %v12765_v29  ;;  %v3288_v14 = vcombine.high %v12768_v39, %v12767_v2  ;;  %v3356_v32 = vcombine.high %v10762_v9, %v10768_v27  ;;  %8384 = vmatmul.mubr.msk.bf16.vlgmr.msra.gmra.mrb[16].mxu1 %vm6251_vm1, %v1511_v54  ;;  %v6460_v45 = vsel %vm6251_vm1, %v3875_v7, 0  ;;  %v12773_v36 = vld [vmem:[#allocation93_spill] sm:$0xff]  ;;  %v12775_v29 = vld [vmem:[#allocation95_spill] sm:$0xff]  ;;  %v12776_v30 = vld [vmem:[#allocation94_spill] sm:$0xff] }
 0x369   : > { %8404 = vmatmul.mubr.msk.bf16.vlgmr.msra.gmra.mrb[20].mxu0 %vm6251_vm1, %v1512_v18  ;;  %v3868_v34 = vpack.c.bf16 %v3033_v11, %v2965_v20  ;;  %v3876_v19 = vpack.c.bf16 %v3034_v43, %v2966_v15  ;;  %v11253_v60 = vadd.f32 %v12769_v13, %v10125_v24  ;;  %8408 = vmatpush3.bf16.xpose.msra.mxu1 %v6392_v10  ;;  %v11265_v18 = vpop.permute.xlu1 %3899  ;;  %v12770_v15 = vld [vmem:[#allocation89_spill] sm:$0xff]  ;;  %v12778_v39 = vld [vmem:[#allocation96_spill] sm:$0xff] }
 0x36a   : > { %8428 = vmatpush3.bf16.xpose.msra.mxu0 %v6460_v45  ;;  %v3101_v3 = vcombine.low %v3082_v52, %v3098_v22  ;;  %v3102_v31 = vcombine.high %v3082_v52, %v3098_v22  ;;  %v11256_v21 = vrot.slane %v3340_v41, %v10171_v44  ;;  %8409 = vmatprep.subr.bf16.mxu1 %v12669_v8  ;;  %v12771_v22 = vld [vmem:[#allocation91_spill] sm:$0xff]  ;;  %v12777_v2 = vld [vmem:[#allocation97_spill] sm:$0xff] }
 0x36b   : > { %8429 = vmatprep.subr.bf16.mxu0 %v12669_v8  ;;  %v3218_v9 = vrot.slane %v3204_v63, %v10171_v44  ;;  %v3234_v27 = vrot.slane %v3220_v1, %v10171_v44  ;;  %v11263_v54 = vrot.slane %v3356_v32, %v10171_v44  ;;  %4005 = vrot.lane.b32.xlu1 %v11141_v47, %s9309_s9  ;;  %v6395_v20 = vsel %vm6251_vm1, %v3868_v34, 0 }
 0x36c   : > { %3919 = vrot.lane.b32.xlu0 %v11215_v6, %s9307_s6  ;;  %v3169_v23 = vcombine.low %v3150_v26, %v3166_v56  ;;  %v3286_v50 = vrot.slane %v3272_v42, %v10171_v44  ;;  %v3302_v7 = vrot.slane %v3288_v14, %v10171_v44  ;;  %v3170_v11 = vcombine.high %v3150_v26, %v3166_v56  ;;  %v12774_v26 = vld [vmem:[#allocation92_spill] sm:$0xff] }
 0x36d   : > { %v3373_v43 = vcombine.low %v11256_v21, %v11263_v54  ;;  %v3374_v10 = vcombine.high %v11256_v21, %v11263_v54  ;;  %8423 = vmatprep.mubr.msk.bf16.mxu1 %vm9306_vm0, %v12669_v8  ;;  %v3408_v52 = vcombine.high %v12770_v15, %v10774_v59  ;;  %v3424_v63 = vcombine.high %v12772_v62, %v12771_v22  ;;  %v11313_v22 = vpop.permute.xlu0 %3903  ;;  %v12788_v21 = vld [vmem:[#allocation53_spill] sm:$0xff] }
 0x36e   : > { %v3476_v49 = vcombine.high %v10893_v12, %v10899_v25  ;;  %v3492_v1 = vcombine.high %v12774_v26, %v12773_v36  ;;  %8443 = vmatprep.mubr.msk.bf16.mxu0 %vm9306_vm0, %v12669_v8  ;;  %v3237_v41 = vcombine.low %v3218_v9, %v3234_v27  ;;  %v3238_v56 = vcombine.high %v3218_v9, %v3234_v27  ;;  %v11303_v27 = vpop.permute.xlu1 %3947 }
 0x36f   : > { %v3544_v42 = vcombine.high %v12776_v30, %v12775_v29  ;;  %v3560_v59 = vcombine.high %v12778_v39, %v12777_v2  ;;  %v6463_v14 = vsel %vm6251_vm1, %v3876_v19, 0  ;;  %3921 = vrot.lane.b32.xlu1 %v11223_v61, %s9307_s6  ;;  %v3869_v12 = vpack.c.bf16 %v3169_v23, %v3101_v3  ;;  %v12780_v30 = vld [vmem:[#allocation100_spill] sm:$0xff] }
 0x370   : > { %3967 = vrot.lane.b32.xlu0 %v11215_v6, %s9308_s7  ;;  %v3305_v25 = vcombine.low %v3286_v50, %v3302_v7  ;;  %v3490_v32 = vrot.slane %v3476_v49, %v10171_v44  ;;  %v3877_v45 = vpack.c.bf16 %v3170_v11, %v3102_v31  ;;  %v3506_v34 = vrot.slane %v3492_v1, %v10171_v44 }
 0x371   : > { %v3558_v13 = vrot.slane %v3544_v42, %v10171_v44  ;;  %v3574_v9 = vrot.slane %v3560_v59, %v10171_v44  ;;  %8410 = vmatpush3.bf16.xpose.msra.mxu1 %v6395_v20  ;;  %v3306_v19 = vcombine.high %v3286_v50, %v3302_v7  ;;  %v11306_v3 = vrot.slane %v3408_v52, %v10171_v44  ;;  %v12781_v42 = vld [vmem:[#allocation99_spill] sm:$0xff] }
 0x372   : > { %8430 = vmatpush3.bf16.xpose.msra.mxu0 %v6463_v14  ;;  %v11309_v23 = vrot.slane %v3424_v63, %v10171_v44  ;;  %8411 = vmatprep.subr.bf16.mxu1 %v12669_v8  ;;  %v3509_v31 = vcombine.low %v3490_v32, %v3506_v34  ;;  %v3510_v15 = vcombine.high %v3490_v32, %v3506_v34  ;;  %v6398_v62 = vsel %vm6251_vm1, %v3869_v12, 0 }
 0x373   : > { %8431 = vmatprep.subr.bf16.mxu0 %v12669_v8  ;;  %v3577_v11 = vcombine.low %v3558_v13, %v3574_v9  ;;  %3969 = vrot.lane.b32.xlu1 %v11223_v61, %s9308_s7  ;;  %v3870_v50 = vpack.c.bf16 %v3305_v25, %v3237_v41  ;;  %v3578_v7 = vcombine.high %v3558_v13, %v3574_v9  ;;  %v3952_v25 = vpop.permute.xlu0 %3951  ;;  %v12783_v13 = vld [vmem:[#allocation101_spill] sm:$0xff] }
 0x374   : > { %4015 = vrot.lane.b32.xlu0 %v11215_v6, %s9309_s9  ;;  %v3612_v20 = vcombine.high %v10850_v5, %v10853_v51  ;;  %v3628_v63 = vcombine.high %v10856_v48, %v10859_v46  ;;  %v3680_v49 = vcombine.high %v10862_v37, %v10866_v0  ;;  %v3696_v36 = vcombine.high %v10869_v28, %v10872_v4  ;;  %v11340_v37 = vpop.permute.xlu1 %3905  ;;  %v12779_v4 = vld [vmem:[#allocation98_spill] sm:$0xff] }
 0x375   : > { %v11322_v52 = vpack.c.bf16 %v3577_v11, %v3509_v31  ;;  %v3878_v26 = vpack.c.bf16 %v3306_v19, %v3238_v56  ;;  %v3441_v1 = vcombine.low %v11306_v3, %v11309_v23  ;;  %v11332_v41 = vpack.c.bf16 %v3578_v7, %v3510_v15 }
 0x376   : > { %v3626_v29 = vrot.slane %v3612_v20, %v10171_v44  ;;  %v3442_v5 = vcombine.high %v11306_v3, %v11309_v23  ;;  %v3642_v51 = vrot.slane %v3628_v63, %v10171_v44  ;;  %v3694_v48 = vrot.slane %v3680_v49, %v10171_v44  ;;  %v12784_v20 = vld [vmem:[#allocation78_spill] sm:$0xff] }
 0x377   : > { %v3710_v46 = vrot.slane %v3696_v36, %v10171_v44  ;;  %v6466_v0 = vsel %vm6251_vm1, %v3877_v45, 0  ;;  %4017 = vrot.lane.b32.xlu1 %v11223_v61, %s9309_s9  ;;  %v3748_v28 = vcombine.high %v10946_v38, %v11028_v17  ;;  %v3764_v56 = vcombine.high %v12779_v4, %v11052_v40  ;;  %v12782_v40 = vld [vmem:[#allocation102_spill] sm:$0xff] }
 0x378   : > { %3915 = vrot.lane.b32.xlu0 %v11219_v33, %s9307_s6  ;;  %v3816_v2 = vcombine.high %v12781_v42, %v12780_v30  ;;  %v3645_v39 = vcombine.low %v3626_v29, %v3642_v51  ;;  %v3646_v14 = vcombine.high %v3626_v29, %v3642_v51  ;;  %v3832_v9 = vcombine.high %v12783_v13, %v12782_v40 }
 0x379   : > { %v3713_v59 = vcombine.low %v3694_v48, %v3710_v46  ;;  %v3714_v12 = vcombine.high %v3694_v48, %v3710_v46  ;;  %8412 = vmatpush3.bf16.xpose.msra.mxu1 %v6398_v62  ;;  %v3762_v32 = vrot.slane %v3748_v28, %v10171_v44  ;;  %v3778_v45 = vrot.slane %v3764_v56, %v10171_v44  ;;  %v3954_v62 = vpop.permute.xlu1 %3953  ;;  %v12785_v48 = vld [vmem:[#allocation50_spill] sm:$0xff] }
 0x37a   : > { %8432 = vmatpush3.bf16.xpose.msra.mxu0 %v6466_v0  ;;  %v3830_v34 = vrot.slane %v3816_v2, %v10171_v44  ;;  %8413 = vmatprep.subr.bf16.mxu1 %v12669_v8  ;;  %v1441_v23 = vcombine.low %v11169_v16, %v11175_v55  ;;  %v6401_v31 = vsel %vm6251_vm1, %v3870_v50, 0  ;;  %v3846_v11 = vrot.slane %v3832_v9, %v10171_v44  ;;  %v4000_v0 = vpop.permute.xlu0 %3999 }
 0x37b   : > { %8433 = vmatprep.subr.bf16.mxu0 %v12669_v8  ;;  %v11358_v38 = vpack.c.bf16 %v3713_v59, %v3645_v39  ;;  %v11360_v17 = vpack.c.bf16 %v3714_v12, %v3646_v14  ;;  %3917 = vrot.lane.b32.xlu1 %v11253_v60, %s9307_s6  ;;  %v3781_v19 = vcombine.low %v3762_v32, %v3778_v45  ;;  %v6469_v28 = vsel %vm6251_vm1, %v3878_v26, 0  ;;  %v12787_v26 = vld [vmem:[#allocation51_spill] sm:$0xff]  ;;  %v12790_v12 = vld [vmem:[#allocation88_spill] sm:$0xff] }
 0x37c   : > { %3963 = vrot.lane.b32.xlu0 %v11219_v33, %s9308_s7  ;;  %v3782_v3 = vcombine.high %v3762_v32, %v3778_v45  ;;  %v1509_v15 = vcombine.low %v11183_v53, %v11193_v58  ;;  %v3871_v7 = vpack.c.bf16 %v3441_v1, %v3373_v43  ;;  %v11379_v63 = vadd.f32 %v12784_v20, %v10125_v24 }
 0x37d   : > { %v1442_v49 = vcombine.high %v11169_v16, %v11175_v55  ;;  %v1510_v50 = vcombine.high %v11183_v53, %v11193_v58  ;;  %v3849_v36 = vcombine.low %v3830_v34, %v3846_v11  ;;  %v3850_v29 = vcombine.high %v3830_v34, %v3846_v11  ;;  %v12786_v16 = vld [vmem:[#allocation79_spill] sm:$0xff]  ;;  %v4002_v59 = vpop.permute.xlu1 %4001 }
 0x37e   : > { %v11385_v51 = vpack.c.bf16 %v1509_v15, %v1441_v23  ;;  %v4179_v46 = vcombine.low %v12785_v48, %v3952_v25  ;;  %v3879_v43 = vpack.c.bf16 %v3442_v5, %v3374_v10  ;;  %v11398_v55 = vadd.f32 %v12786_v16, %v10125_v24  ;;  %v12789_v10 = vld [vmem:[#allocation52_spill] sm:$0xff]  ;;  %v3996_v9 = vpop.permute.xlu0 %3995  ;;  %v12791_v16 = vld [vmem:[#allocation87_spill] sm:$0xff] }
 0x37f   : > { %3965 = vrot.lane.b32.xlu1 %v11253_v60, %s9308_s7  ;;  %v11400_v53 = vpack.c.bf16 %v1510_v50, %v1442_v49  ;;  %v11402_v58 = vpack.c.bf16 %v3849_v36, %v3781_v19  ;;  %v11404_v1 = vpack.c.bf16 %v3850_v29, %v3782_v3  ;;  %v4043_v4 = vcombine.low %v12787_v26, %v11303_v27 }
 0x380   : > { %4011 = vrot.lane.b32.xlu0 %v11219_v33, %s9309_s9  ;;  %v4180_v56 = vcombine.high %v12785_v48, %v3952_v25  ;;  %v4187_v54 = vrot.slane %v4179_v46, %v12788_v21  ;;  %v4247_v5 = vcombine.low %v12789_v10, %v3954_v62  ;;  %v4195_v30 = vcombine.low %v11313_v22, %v4000_v0 }
 0x381   : > { %8414 = vmatpush3.bf16.xpose.msra.mxu1 %v6401_v31  ;;  %v4248_v2 = vcombine.high %v12789_v10, %v3954_v62  ;;  %v4196_v39 = vcombine.high %v11313_v22, %v4000_v0  ;;  %v6404_v14 = vsel %vm6251_vm1, %v3871_v7, 0  ;;  %v11424_v25 = vadd.f32 %v12790_v12, %v10125_v24  ;;  %v3950_v46 = vpop.permute.xlu1 %3949 }
 0x382   : > { %8434 = vmatpush3.bf16.xpose.msra.mxu0 %v6469_v28  ;;  %8415 = vmatprep.subr.bf16.mxu1 %v12669_v8  ;;  %v4194_v42 = vrot.slane %v4180_v56, %v12788_v21  ;;  %v4044_v32 = vcombine.high %v12787_v26, %v11303_v27  ;;  %v4203_v45 = vrot.slane %v4195_v30, %v12788_v21  ;;  %v6472_v7 = vsel %vm6251_vm1, %v3879_v43, 0 }
 0x383   : > { %8435 = vmatprep.subr.bf16.mxu0 %v12669_v8  ;;  %4013 = vrot.lane.b32.xlu1 %v11253_v60, %s9309_s9  ;;  %v4255_v22 = vrot.slane %v4247_v5, %v12788_v21  ;;  %v4210_v34 = vrot.slane %v4196_v39, %v12788_v21  ;;  %v4263_v40 = vcombine.low %v11340_v37, %v4002_v59  ;;  %v6475_v30 = vsel %vm6251_vm1, %v11332_v41, 0 }
 0x384   : > { %3927 = vrot.lane.b32.xlu0 %v11379_v63, %s9307_s6  ;;  %v4264_v13 = vcombine.high %v11340_v37, %v4002_v59  ;;  %v4051_v19 = vrot.slane %v4043_v4, %v12788_v21  ;;  %v4211_v3 = vcombine.low %v4187_v54, %v4203_v45  ;;  %v4212_v23 = vcombine.high %v4187_v54, %v4203_v45 }
 0x385   : > { %v4059_v31 = vcombine.low %v11265_v18, %v3996_v9  ;;  %v4262_v11 = vrot.slane %v4248_v2, %v12788_v21  ;;  %v4227_v27 = vcombine.low %v4194_v42, %v4210_v34  ;;  %v4228_v15 = vcombine.high %v4194_v42, %v4210_v34  ;;  %v3902_v34 = vpop.permute.xlu0 %3901 }
 0x386   : > { %v4271_v62 = vrot.slane %v4263_v40, %v12788_v21  ;;  %v4219_v37 = vrot.slane %v4211_v3, %v10171_v44  ;;  %v4226_v20 = vrot.slane %v4212_v23, %v10171_v44  ;;  %v4278_v49 = vrot.slane %v4264_v13, %v12788_v21  ;;  %v3998_v40 = vpop.permute.xlu1 %3997 }
 0x387   : > { %3923 = vrot.lane.b32.xlu1 %v11398_v55, %s9307_s6  ;;  %v4235_v50 = vrot.slane %v4227_v27, %v10171_v44  ;;  %v4242_v36 = vrot.slane %v4228_v15, %v10171_v44  ;;  %v4060_v28 = vcombine.high %v11265_v18, %v3996_v9  ;;  %v4067_v43 = vrot.slane %v4059_v31, %v12788_v21 }
 0x388   : > { %4019 = vrot.lane.b32.xlu0 %v11398_v55, %s9309_s9  ;;  %v4279_v29 = vcombine.low %v4255_v22, %v4271_v62  ;;  %v4280_v48 = vcombine.high %v4255_v22, %v4271_v62  ;;  %v5267_v0 = vcombine.low %v4219_v37, %v4226_v20  ;;  %v11453_v26 = vadd.f32 %v12791_v16, %v10125_v24 }
 0x389   : > { %8416 = vmatpush3.bf16.xpose.msra.mxu1 %v6404_v14  ;;  %v8044_v4 = vcombine.high %v4219_v37, %v4226_v20  ;;  %v5283_v56 = vcombine.low %v4235_v50, %v4242_v36  ;;  %v6407_v54 = vsel %vm6251_vm1, %v11322_v52, 0  ;;  %v4058_v18 = vrot.slane %v4044_v32, %v12788_v21  ;;  %v12792_v14 = vld [vmem:[#allocation54_spill] sm:$0xff] }
 0x38a   : > { %8436 = vmatpush3.bf16.xpose.msra.mxu0 %v6472_v7  ;;  %8417 = vmatprep.subr.bf16.mxu1 %v12669_v8  ;;  %v8045_v10 = vcombine.high %v4235_v50, %v4242_v36  ;;  %v4295_v5 = vcombine.low %v4262_v11, %v4278_v49  ;;  %v4287_v24 = vrot.slane %v4279_v29, %v10171_v44  ;;  %v6410_v15 = vsel %vm6251_vm1, %v11358_v38, 0 }
 0x38b   : > { %8437 = vmatprep.subr.bf16.mxu0 %v12669_v8  ;;  %3971 = vrot.lane.b32.xlu1 %v11398_v55, %s9308_s7  ;;  %v4294_v42 = vrot.slane %v4280_v48, %v10171_v44  ;;  %v4296_v2 = vcombine.high %v4262_v11, %v4278_v49  ;;  %v11467_v52 = vrot.slane %v5267_v0, %v12788_v21  ;;  %v6478_v20 = vsel %vm6251_vm1, %v11360_v17, 0 }
 0x38c   : > { %3925 = vrot.lane.b32.xlu0 %v11424_v25, %s9307_s6  ;;  %v4074_v39 = vrot.slane %v4060_v28, %v12788_v21  ;;  %v4075_v59 = vcombine.low %v4051_v19, %v4067_v43  ;;  %v4111_v12 = vcombine.low %v12792_v14, %v3950_v46  ;;  %v11472_v32 = vrot.slane %v8044_v4, %v12788_v21 }
 0x38d   : > { %v11475_v45 = vrot.slane %v5283_v56, %v12788_v21  ;;  %v4076_v41 = vcombine.high %v4051_v19, %v4067_v43  ;;  %v4112_v22 = vcombine.high %v12792_v14, %v3950_v46  ;;  %v11481_v13 = vrot.slane %v8045_v10, %v12788_v21 }
 0x38e   : > { %v4303_v9 = vrot.slane %v4295_v5, %v10171_v44  ;;  %v4083_v3 = vrot.slane %v4075_v59, %v10171_v44  ;;  %v4091_v23 = vcombine.low %v4058_v18, %v4074_v39  ;;  %v4310_v31 = vrot.slane %v4296_v2, %v10171_v44 }
 0x38f   : > { %3929 = vrot.lane.b32.xlu1 %v11453_v26, %s9307_s6  ;;  %v5335_v11 = vcombine.low %v4287_v24, %v4294_v42  ;;  %v4090_v19 = vrot.slane %v4076_v41, %v10171_v44  ;;  %v4092_v27 = vcombine.high %v4058_v18, %v4074_v39  ;;  %v4119_v7 = vrot.slane %v4111_v12, %v12788_v21 }
 0x390   : > { %v4099_v62 = vrot.slane %v4091_v23, %v10171_v44  ;;  %v4127_v37 = vcombine.low %v3902_v34, %v3998_v40  ;;  %v8046_v49 = vcombine.high %v4287_v24, %v4294_v42  ;;  %v4126_v36 = vrot.slane %v4112_v22, %v12788_v21 }
 0x391   : > { %8418 = vmatpush3.bf16.xpose.msra.mxu1 %v6407_v54  ;;  %v4106_v50 = vrot.slane %v4092_v27, %v10171_v44  ;;  %v5131_v38 = vcombine.low %v4083_v3, %v4090_v19  ;;  %v8040_v29 = vcombine.high %v4083_v3, %v4090_v19  ;;  %v4128_v48 = vcombine.high %v3902_v34, %v3998_v40 }
 0x392   : > { %8438 = vmatpush3.bf16.xpose.msra.mxu0 %v6475_v30  ;;  %8419 = vmatprep.subr.bf16.mxu1 %v12669_v8  ;;  %v4135_v46 = vrot.slane %v4127_v37, %v12788_v21  ;;  %v5351_v0 = vcombine.low %v4303_v9, %v4310_v31  ;;  %v8047_v28 = vcombine.high %v4303_v9, %v4310_v31 }
 0x393   : > { %8439 = vmatprep.subr.bf16.mxu0 %v12669_v8  ;;  %3973 = vrot.lane.b32.xlu1 %v11424_v25, %s9308_s7  ;;  %v5147_v43 = vcombine.low %v4099_v62, %v4106_v50  ;;  %v8041_v16 = vcombine.high %v4099_v62, %v4106_v50  ;;  %v11501_v4 = vrot.slane %v5131_v38, %v12788_v21  ;;  %v6413_v38 = vsel %vm6251_vm1, %v11402_v58, 0 }
 0x394   : > { %v11504_v17 = vrot.slane %v8040_v29, %v12788_v21  ;;  %v4142_v56 = vrot.slane %v4128_v48, %v12788_v21  ;;  %v4143_v54 = vcombine.low %v4119_v7, %v4135_v46  ;;  %v11508_v18 = vrot.slane %v5335_v11, %v12788_v21 }
 0x395   : > { %v11511_v10 = vrot.slane %v5147_v43, %v12788_v21  ;;  %v11514_v5 = vrot.slane %v8041_v16, %v12788_v21  ;;  %v4144_v30 = vcombine.high %v4119_v7, %v4135_v46  ;;  %v11519_v24 = vrot.slane %v8046_v49, %v12788_v21 }
 0x396   : > { %v4151_v42 = vrot.slane %v4143_v54, %v10171_v44  ;;  %v4159_v2 = vcombine.low %v4126_v36, %v4142_v56  ;;  %v4160_v39 = vcombine.high %v4126_v36, %v4142_v56  ;;  %v11523_v59 = vrot.slane %v5351_v0, %v12788_v21 }
 0x397   : > { %4021 = vrot.lane.b32.xlu1 %v11424_v25, %s9309_s9  ;;  %v4158_v14 = vrot.slane %v4144_v30, %v10171_v44  ;;  %v5163_v12 = vcombine.low %v11501_v4, %v11504_v17  ;;  %v5179_v41 = vcombine.low %v11511_v10, %v11514_v5  ;;  %v11531_v22 = vrot.slane %v8047_v28, %v12788_v21 }
 0x398   : > { %v4167_v34 = vrot.slane %v4159_v2, %v10171_v44  ;;  %v4174_v40 = vrot.slane %v4160_v39, %v10171_v44  ;;  %v5299_v23 = vcombine.low %v11467_v52, %v11472_v32  ;;  %v5315_v19 = vcombine.low %v11475_v45, %v11481_v13 }
 0x399   : > { %8420 = vmatpush3.bf16.xpose.msra.mxu1 %v6410_v15  ;;  %v5199_v9 = vcombine.low %v4151_v42, %v4158_v14  ;;  %v8042_v3 = vcombine.high %v4151_v42, %v4158_v14  ;;  %v5367_v27 = vcombine.low %v11508_v18, %v11519_v24  ;;  %v5171_v7 = vrot.slane %v5163_v12, %v10171_v44 }
 0x39a   : > { %8440 = vmatpush3.bf16.xpose.msra.mxu0 %v6478_v20  ;;  %8421 = vmatprep.subr.bf16.mxu1 %v12669_v8  ;;  %v5215_v31 = vcombine.low %v4167_v34, %v4174_v40  ;;  %v8043_v11 = vcombine.high %v4167_v34, %v4174_v40  ;;  %v5187_v37 = vrot.slane %v5179_v41, %v10171_v44  ;;  %v6481_v29 = vsel %vm6251_vm1, %v11404_v1, 0 }
 0x39b   : > { %8441 = vmatprep.subr.bf16.mxu0 %v12669_v8  ;;  %v5206_v15 = vrot.slane %v5199_v9, %v12788_v21  ;;  %v5214_v62 = vrot.slane %v8042_v3, %v12788_v21  ;;  %v5383_v50 = vcombine.low %v11523_v59, %v11531_v22  ;;  %v5307_v46 = vrot.slane %v5299_v23, %v10171_v44 }
 0x39c   : > { %v5222_v20 = vrot.slane %v5215_v31, %v12788_v21  ;;  %v5230_v49 = vrot.slane %v8043_v11, %v12788_v21  ;;  %v5195_v0 = vcombine.low %v5171_v7, %v5187_v37  ;;  %v5323_v43 = vrot.slane %v5315_v19, %v10171_v44 }
 0x39d   : > { %v5231_v36 = vcombine.low %v5206_v15, %v5214_v62  ;;  %v5375_v16 = vrot.slane %v5367_v27, %v10171_v44  ;;  %v5196_v54 = vcombine.high %v5171_v7, %v5187_v37  ;;  %v5391_v58 = vrot.slane %v5383_v50, %v10171_v44 }
 0x39e   : > { %v5247_v48 = vcombine.low %v5222_v20, %v5230_v49  ;;  %v5331_v42 = vcombine.low %v5307_v46, %v5323_v43  ;;  %v5332_v2 = vcombine.high %v5307_v46, %v5323_v43  ;;  %v5232_v9 = vcombine.high %v5206_v15, %v5214_v62 }
 0x39f   : > { %v5239_v28 = vrot.slane %v5231_v36, %v10171_v44  ;;  %v5399_v12 = vcombine.low %v5375_v16, %v5391_v58  ;;  %v5400_v41 = vcombine.high %v5375_v16, %v5391_v58  ;;  %v5248_v3 = vcombine.high %v5222_v20, %v5230_v49 }
 0x3a0   : > { %v5255_v56 = vrot.slane %v5247_v48, %v10171_v44  ;;  %v5300_v23 = vcombine.high %v11467_v52, %v11472_v32  ;;  %v5316_v31 = vcombine.high %v11475_v45, %v11481_v13  ;;  %v5368_v11 = vcombine.high %v11508_v18, %v11519_v24  ;;  %v12797_v48 = vld [vmem:[#allocation103_spill] sm:$0xff] }
 0x3a1   : > { %8422 = vmatpush3.bf16.xpose.msra.mxu1 %v6413_v38  ;;  %v6220_v34 = vpack.c.bf16 %v5399_v12, %v5331_v42  ;;  %v6228_v40 = vpack.c.bf16 %v5400_v41, %v5332_v2  ;;  %v5384_v19 = vcombine.high %v11523_v59, %v11531_v22 }
 0x3a2   : > { %8442 = vmatpush3.bf16.xpose.msra.mxu0 %v6481_v29  ;;  %8447 = vmatprep.subr.bf16.mxu1 %v12669_v8  ;;  %v5263_v1 = vcombine.low %v5239_v28, %v5255_v56  ;;  %v5264_v30 = vcombine.high %v5239_v28, %v5255_v56  ;;  %v5330_v52 = vrot.slane %v5316_v31, %v10171_v44 }
 0x3a3   : > { %8467 = vmatprep.subr.bf16.mxu0 %v12669_v8  ;;  %v5382_v32 = vrot.slane %v5368_v11, %v10171_v44  ;;  %v5398_v45 = vrot.slane %v5384_v19, %v10171_v44 }
 0x3a4   : > { %v6219_v39 = vpack.c.bf16 %v5263_v1, %v5195_v0  ;;  %v6227_v14 = vpack.c.bf16 %v5264_v30, %v5196_v54 }
 0x3a5   : > { %v5401_v15 = vcombine.low %v5382_v32, %v5398_v45  ;;  %v5402_v7 = vcombine.high %v5382_v32, %v5398_v45 }
 0x3a8   : > { %8424 = vmatmul.mubr.msk.bf16.vlgmr.msra.gmra.mrb[20].mxu1 %vm6251_vm1, %v11385_v51  ;;  %v5164_v51 = vcombine.high %v11501_v4, %v11504_v17  ;;  %v5246_v17 = vrot.slane %v5232_v9, %v10171_v44 }
 0x3a9   : > { %8444 = vmatmul.mubr.msk.bf16.vlgmr.msra.gmra.mrb[24].mxu0 %vm6251_vm1, %v11400_v53  ;;  %8448 = vmatpush3.bf16.msra.mxu1 %v6219_v39  ;;  %v5180_v53 = vcombine.high %v11511_v10, %v11514_v5  ;;  %v5262_v10 = vrot.slane %v5248_v3, %v10171_v44  ;;  %v5314_v5 = vrot.slane %v5300_v23, %v10171_v44 }
 0x3aa   : > { %8468 = vmatpush3.bf16.msra.mxu0 %v6227_v14  ;;  %8449 = vmatprep.subr.bf16.mxu1 %v12669_v8  ;;  %v5178_v27 = vrot.slane %v5164_v51, %v10171_v44 }
 0x3ab   : > { %8469 = vmatprep.subr.bf16.mxu0 %v12669_v8  ;;  %8463 = vmatprep.mubr.msk.bf16.mxu1 %vm9306_vm0, %v12669_v8  ;;  %v5194_v4 = vrot.slane %v5180_v53, %v10171_v44  ;;  %v5265_v18 = vcombine.low %v5246_v17, %v5262_v10  ;;  %v5266_v59 = vcombine.high %v5246_v17, %v5262_v10 }
 0x3ac   : > { %8483 = vmatprep.mubr.msk.bf16.mxu0 %vm9306_vm0, %v12669_v8  ;;  %v5333_v22 = vcombine.low %v5314_v5, %v5330_v52  ;;  %v5334_v62 = vcombine.high %v5314_v5, %v5330_v52 }
 0x3ad   : > { %8450 = vmatpush3.bf16.msra.mxu1 %v6220_v34  ;;  %v5197_v13 = vcombine.low %v5178_v27, %v5194_v4  ;;  %v5198_v24 = vcombine.high %v5178_v27, %v5194_v4 }
 0x3ae   : > { %8470 = vmatpush3.bf16.msra.mxu0 %v6228_v40  ;;  %8451 = vmatprep.subr.bf16.mxu1 %v12669_v8  ;;  %v11599_v49 = vpack.c.bf16 %v5401_v15, %v5333_v22  ;;  %v11601_v50 = vpack.c.bf16 %v5402_v7, %v5334_v62 }
 0x3af   : > { %8471 = vmatprep.subr.bf16.mxu0 %v12669_v8  ;;  %v11595_v37 = vpack.c.bf16 %v5265_v18, %v5197_v13  ;;  %v11597_v20 = vpack.c.bf16 %v5266_v59, %v5198_v24 }
 0x3b0   : > { %12795 = vst [vmem:[#allocation59_spill] sm:$0xff] %v11599_v49  ;;  %12796 = vst [vmem:[#allocation63_spill] sm:$0xff] %v11601_v50 }
 0x3b1   : > { %12793 = vst [vmem:[#allocation58_spill] sm:$0xff] %v11595_v37  ;;  %12794 = vst [vmem:[#allocation57_spill] sm:$0xff] %v11597_v20 }
 0x3c6   : > { %v3912_v36 = vpop.permute.xlu0 %3911 }
 0x3c7   : > { %v3914_v38 = vpop.permute.xlu1 %3913 }
 0x3ca   : > { %v3960_v29 = vpop.permute.xlu0 %3959 }
 0x3cb   : > { %v4451_v46 = vcombine.low %v12797_v48, %v3960_v29  ;;  %v4452_v0 = vcombine.high %v12797_v48, %v3960_v29  ;;  %v3962_v28 = vpop.permute.xlu1 %3961 }
 0x3cc   : > { %v4519_v43 = vcombine.low %v11097_v35, %v3962_v28  ;;  %v4520_v16 = vcombine.high %v11097_v35, %v3962_v28 }
 0x3cd   : > { %v4459_v54 = vrot.slane %v4451_v46, %v12788_v21  ;;  %v4466_v58 = vrot.slane %v4452_v0, %v12788_v21 }
 0x3ce   : > { %v4008_v56 = vpop.permute.xlu0 %4007  ;;  %v4527_v2 = vrot.slane %v4519_v43, %v12788_v21  ;;  %v4534_v39 = vrot.slane %v4520_v16, %v12788_v21 }
 0x3cf   : > { %v4467_v1 = vcombine.low %v3912_v36, %v4008_v56  ;;  %v4468_v30 = vcombine.high %v3912_v36, %v4008_v56  ;;  %v4010_v42 = vpop.permute.xlu1 %4009 }
 0x3d0   : > { %v4535_v14 = vcombine.low %v3914_v38, %v4010_v42  ;;  %v4536_v12 = vcombine.high %v3914_v38, %v4010_v42 }
 0x3d1   : > { %v4475_v41 = vrot.slane %v4467_v1, %v12788_v21  ;;  %v4482_v34 = vrot.slane %v4468_v30, %v12788_v21 }
 0x3d2   : > { %v4543_v35 = vrot.slane %v4535_v14, %v12788_v21  ;;  %v4550_v40 = vrot.slane %v4536_v12, %v12788_v21  ;;  %v3908_v51 = vpop.permute.xlu0 %3907 }
 0x3d3   : > { %v4483_v53 = vcombine.low %v4459_v54, %v4475_v41  ;;  %v4484_v9 = vcombine.high %v4459_v54, %v4475_v41  ;;  %v4499_v3 = vcombine.low %v4466_v58, %v4482_v34  ;;  %v4500_v23 = vcombine.high %v4466_v58, %v4482_v34  ;;  %v3910_v31 = vpop.permute.xlu1 %3909 }
 0x3d4   : > { %v4551_v11 = vcombine.low %v4527_v2, %v4543_v35  ;;  %v4552_v19 = vcombine.high %v4527_v2, %v4543_v35  ;;  %v4567_v27 = vcombine.low %v4534_v39, %v4550_v40  ;;  %v4568_v4 = vcombine.high %v4534_v39, %v4550_v40 }
 0x3d5   : > { %v4491_v17 = vrot.slane %v4483_v53, %v10171_v44  ;;  %v4498_v10 = vrot.slane %v4484_v9, %v10171_v44  ;;  %v4507_v5 = vrot.slane %v4499_v3, %v10171_v44  ;;  %v4514_v52 = vrot.slane %v4500_v23, %v10171_v44 }
 0x3d6   : > { %v4559_v32 = vrot.slane %v4551_v11, %v10171_v44  ;;  %v4566_v45 = vrot.slane %v4552_v19, %v10171_v44  ;;  %v4575_v13 = vrot.slane %v4567_v27, %v10171_v44  ;;  %v4582_v18 = vrot.slane %v4568_v4, %v10171_v44  ;;  %v3956_v24 = vpop.permute.xlu0 %3955 }
 0x3d7   : > { %v5539_v59 = vcombine.low %v4491_v17, %v4498_v10  ;;  %v8052_v22 = vcombine.high %v4491_v17, %v4498_v10  ;;  %v5555_v15 = vcombine.low %v4507_v5, %v4514_v52  ;;  %v8053_v62 = vcombine.high %v4507_v5, %v4514_v52  ;;  %v3958_v48 = vpop.permute.xlu1 %3957 }
 0x3d8   : > { %v5607_v7 = vcombine.low %v4559_v32, %v4566_v45  ;;  %v8054_v36 = vcombine.high %v4559_v32, %v4566_v45  ;;  %v5623_v38 = vcombine.low %v4575_v13, %v4582_v18  ;;  %v8055_v29 = vcombine.high %v4575_v13, %v4582_v18 }
 0x3d9   : > { %v11624_v46 = vrot.slane %v5539_v59, %v12788_v21  ;;  %v11627_v0 = vrot.slane %v8052_v22, %v12788_v21  ;;  %v11630_v28 = vrot.slane %v5555_v15, %v12788_v21  ;;  %v11633_v43 = vrot.slane %v8053_v62, %v12788_v21 }
 0x3da   : > { %v11636_v16 = vrot.slane %v5607_v7, %v12788_v21  ;;  %v11639_v56 = vrot.slane %v8054_v36, %v12788_v21  ;;  %v4004_v54 = vpop.permute.xlu0 %4003  ;;  %v4315_v58 = vcombine.low %v11137_v57, %v3956_v24  ;;  %v4316_v1 = vcombine.high %v11137_v57, %v3956_v24 }
 0x3db   : > { %v4383_v30 = vcombine.low %v11141_v47, %v3958_v48  ;;  %v4384_v42 = vcombine.high %v11141_v47, %v3958_v48  ;;  %v4331_v2 = vcombine.low %v3908_v51, %v4004_v54  ;;  %v4332_v39 = vcombine.high %v3908_v51, %v4004_v54 }
 0x3dc   : > { %v5571_v14 = vcombine.low %v11624_v46, %v11627_v0  ;;  %v5587_v12 = vcombine.low %v11630_v28, %v11633_v43  ;;  %v11650_v41 = vrot.slane %v5623_v38, %v12788_v21  ;;  %v11653_v34 = vrot.slane %v8055_v29, %v12788_v21 }
 0x3dd   : > { %v4323_v57 = vrot.slane %v4315_v58, %v12788_v21  ;;  %v4330_v35 = vrot.slane %v4316_v1, %v12788_v21  ;;  %v4391_v47 = vrot.slane %v4383_v30, %v12788_v21  ;;  %v4398_v40 = vrot.slane %v4384_v42, %v12788_v21  ;;  %v4006_v9 = vpop.permute.xlu1 %4005 }
 0x3de   : > { %12798 = vst [vmem:[#allocation62_spill] sm:$0xff] %v11650_v41  ;;  %v4339_v51 = vrot.slane %v4331_v2, %v12788_v21  ;;  %v4346_v53 = vrot.slane %v4332_v39, %v12788_v21  ;;  %v11661_v3 = vpop.permute.xlu0 %3919  ;;  %v4399_v23 = vcombine.low %v3910_v31, %v4006_v9  ;;  %v4400_v11 = vcombine.high %v3910_v31, %v4006_v9 }
 0x3df   : > { %v11664_v19 = vrot.slane %v5571_v14, %v10171_v44  ;;  %v11667_v27 = vrot.slane %v5587_v12, %v10171_v44  ;;  %v5639_v45 = vcombine.low %v11636_v16, %v11639_v56 }
 0x3e0   : > { %v4347_v4 = vcombine.low %v4323_v57, %v4339_v51  ;;  %v4348_v17 = vcombine.high %v4323_v57, %v4339_v51  ;;  %v4363_v10 = vcombine.low %v4330_v35, %v4346_v53  ;;  %v4364_v5 = vcombine.high %v4330_v35, %v4346_v53 }
 0x3e1   : > { %v4407_v52 = vrot.slane %v4399_v23, %v12788_v21  ;;  %v4414_v32 = vrot.slane %v4400_v11, %v12788_v21  ;;  %v3922_v22 = vpop.permute.xlu1 %3921 }
 0x3e2   : > { %v4355_v13 = vrot.slane %v4347_v4, %v10171_v44  ;;  %v4362_v18 = vrot.slane %v4348_v17, %v10171_v44  ;;  %v4371_v24 = vrot.slane %v4363_v10, %v10171_v44  ;;  %v4378_v59 = vrot.slane %v4364_v5, %v10171_v44  ;;  %v3968_v15 = vpop.permute.xlu0 %3967 }
 0x3e3   : > { %v4415_v62 = vcombine.low %v4391_v47, %v4407_v52  ;;  %v4416_v7 = vcombine.high %v4391_v47, %v4407_v52  ;;  %v4431_v36 = vcombine.low %v4398_v40, %v4414_v32  ;;  %v4432_v38 = vcombine.high %v4398_v40, %v4414_v32 }
 0x3e4   : > { %v5403_v29 = vcombine.low %v4355_v13, %v4362_v18  ;;  %v8048_v48 = vcombine.high %v4355_v13, %v4362_v18  ;;  %v5419_v54 = vcombine.low %v4371_v24, %v4378_v59  ;;  %v8049_v58 = vcombine.high %v4371_v24, %v4378_v59 }
 0x3e5   : > { %v4423_v1 = vrot.slane %v4415_v62, %v10171_v44  ;;  %v4430_v30 = vrot.slane %v4416_v7, %v10171_v44  ;;  %v4439_v42 = vrot.slane %v4431_v36, %v10171_v44  ;;  %v4446_v2 = vrot.slane %v4432_v38, %v10171_v44  ;;  %v3970_v35 = vpop.permute.xlu1 %3969 }
 0x3e6   : > { %v11684_v39 = vrot.slane %v5403_v29, %v12788_v21  ;;  %v11687_v14 = vrot.slane %v8048_v48, %v12788_v21  ;;  %v11690_v12 = vrot.slane %v5419_v54, %v12788_v21  ;;  %v11693_v57 = vrot.slane %v8049_v58, %v12788_v21  ;;  %v4016_v47 = vpop.permute.xlu0 %4015 }
 0x3e7   : > { %v5471_v40 = vcombine.low %v4423_v1, %v4430_v30  ;;  %v8050_v51 = vcombine.high %v4423_v1, %v4430_v30  ;;  %v5487_v53 = vcombine.low %v4439_v42, %v4446_v2  ;;  %v8051_v9 = vcombine.high %v4439_v42, %v4446_v2 }
 0x3e8   : > { %v4723_v23 = vcombine.low %v11215_v6, %v3968_v15  ;;  %v4724_v11 = vcombine.high %v11215_v6, %v3968_v15  ;;  %v4791_v4 = vcombine.low %v11223_v61, %v3970_v35  ;;  %v4792_v17 = vcombine.high %v11223_v61, %v3970_v35 }
 0x3e9   : > { %v11700_v10 = vrot.slane %v5471_v40, %v12788_v21  ;;  %v11703_v5 = vrot.slane %v8050_v51, %v12788_v21  ;;  %v11708_v32 = vrot.slane %v5639_v45, %v10171_v44  ;;  %v11711_v13 = vrot.slane %v5487_v53, %v12788_v21  ;;  %v4018_v24 = vpop.permute.xlu1 %4017 }
 0x3ea   : > { %v11714_v6 = vrot.slane %v8051_v9, %v12788_v21  ;;  %v4731_v61 = vrot.slane %v4723_v23, %v12788_v21  ;;  %v4738_v18 = vrot.slane %v4724_v11, %v12788_v21  ;;  %v11718_v59 = vpop.permute.xlu0 %3915  ;;  %v4739_v15 = vcombine.low %v11661_v3, %v4016_v47 }
 0x3eb   : > { %v4740_v62 = vcombine.high %v11661_v3, %v4016_v47  ;;  %v4807_v7 = vcombine.low %v3922_v22, %v4018_v24  ;;  %v4808_v45 = vcombine.high %v3922_v22, %v4018_v24  ;;  %v4799_v36 = vrot.slane %v4791_v4, %v12788_v21 }
 0x3ec   : > { %v4806_v38 = vrot.slane %v4792_v17, %v12788_v21  ;;  %v5435_v29 = vcombine.low %v11684_v39, %v11687_v14  ;;  %v5451_v48 = vcombine.low %v11690_v12, %v11693_v57  ;;  %v4747_v54 = vrot.slane %v4739_v15, %v12788_v21 }
 0x3ed   : > { %v4754_v58 = vrot.slane %v4740_v62, %v12788_v21  ;;  %v4815_v1 = vrot.slane %v4807_v7, %v12788_v21  ;;  %v4822_v3 = vrot.slane %v4808_v45, %v12788_v21  ;;  %v11732_v30 = vpop.permute.xlu1 %3917  ;;  %v5503_v35 = vcombine.low %v11700_v10, %v11703_v5 }
 0x3ee   : > { %v3964_v22 = vpop.permute.xlu0 %3963  ;;  %v5443_v42 = vrot.slane %v5435_v29, %v10171_v44  ;;  %v5459_v2 = vrot.slane %v5451_v48, %v10171_v44  ;;  %v5519_v47 = vcombine.low %v11711_v13, %v11714_v6  ;;  %v4755_v40 = vcombine.low %v4731_v61, %v4747_v54 }
 0x3ef   : > { %v4756_v51 = vcombine.high %v4731_v61, %v4747_v54  ;;  %v4771_v53 = vcombine.low %v4738_v18, %v4754_v58  ;;  %v4772_v9 = vcombine.high %v4738_v18, %v4754_v58  ;;  %v4823_v23 = vcombine.low %v4799_v36, %v4815_v1 }
 0x3f0   : > { %v4824_v11 = vcombine.high %v4799_v36, %v4815_v1  ;;  %v4839_v4 = vcombine.low %v4806_v38, %v4822_v3  ;;  %v4840_v17 = vcombine.high %v4806_v38, %v4822_v3  ;;  %v4763_v24 = vrot.slane %v4755_v40, %v10171_v44 }
 0x3f1   : > { %v4770_v15 = vrot.slane %v4756_v51, %v10171_v44  ;;  %v4779_v62 = vrot.slane %v4771_v53, %v10171_v44  ;;  %v4786_v7 = vrot.slane %v4772_v9, %v10171_v44  ;;  %v4831_v45 = vrot.slane %v4823_v23, %v10171_v44  ;;  %v3966_v36 = vpop.permute.xlu1 %3965 }
 0x3f2   : > { %v4838_v29 = vrot.slane %v4824_v11, %v10171_v44  ;;  %v11747_v61 = vrot.slane %v4839_v4, %v10171_v44  ;;  %v11750_v18 = vrot.slane %v4840_v17, %v10171_v44  ;;  %v4012_v38 = vpop.permute.xlu0 %4011  ;;  %v5511_v51 = vrot.slane %v5503_v35, %v10171_v44 }
 0x3f3   : > { %v5811_v48 = vcombine.low %v4763_v24, %v4770_v15  ;;  %v8060_v54 = vcombine.high %v4763_v24, %v4770_v15  ;;  %v5827_v58 = vcombine.low %v4779_v62, %v4786_v7  ;;  %v8061_v1 = vcombine.high %v4779_v62, %v4786_v7 }
 0x3f4   : > { %v5879_v3 = vcombine.low %v4831_v45, %v4838_v29  ;;  %v8062_v40 = vcombine.high %v4831_v45, %v4838_v29  ;;  %v5527_v53 = vrot.slane %v5519_v47, %v10171_v44  ;;  %v4587_v7 = vcombine.low %v11219_v33, %v3964_v22 }
 0x3f5   : > { %v11755_v9 = vrot.slane %v5811_v48, %v12788_v21  ;;  %v11758_v23 = vrot.slane %v8060_v54, %v12788_v21  ;;  %v11765_v17 = vrot.slane %v5827_v58, %v12788_v21  ;;  %v11768_v24 = vrot.slane %v8061_v1, %v12788_v21  ;;  %v4014_v15 = vpop.permute.xlu1 %4013 }
 0x3f6   : > { %v11771_v35 = vrot.slane %v5879_v3, %v12788_v21  ;;  %v11774_v47 = vrot.slane %v8062_v40, %v12788_v21  ;;  %v11776_v62 = vpop.permute.xlu0 %3927  ;;  %v4588_v45 = vcombine.high %v11219_v33, %v3964_v22  ;;  %v4655_v29 = vcombine.low %v11253_v60, %v3966_v36 }
 0x3f7   : > { %v4656_v48 = vcombine.high %v11253_v60, %v3966_v36  ;;  %v5467_v54 = vcombine.low %v5443_v42, %v5459_v2  ;;  %v5535_v58 = vcombine.low %v5511_v51, %v5527_v53  ;;  %v5468_v1 = vcombine.high %v5443_v42, %v5459_v2 }
 0x3f8   : > { %v5536_v4 = vcombine.high %v5511_v51, %v5527_v53  ;;  %v4595_v3 = vrot.slane %v4587_v7, %v12788_v21  ;;  %v4602_v40 = vrot.slane %v4588_v45, %v12788_v21  ;;  %v4663_v11 = vrot.slane %v4655_v29, %v12788_v21 }
 0x3f9   : > { %v4670_v52 = vrot.slane %v4656_v48, %v12788_v21  ;;  %v6221_v31 = vpack.c.bf16 %v5535_v58, %v5467_v54  ;;  %v4603_v33 = vcombine.low %v11718_v59, %v4012_v38  ;;  %v4604_v22 = vcombine.high %v11718_v59, %v4012_v38  ;;  %v11788_v49 = vpop.permute.xlu1 %3923 }
 0x3fa   : > { %v6229_v50 = vpack.c.bf16 %v5536_v4, %v5468_v1  ;;  %v4671_v60 = vcombine.low %v11732_v30, %v4014_v15  ;;  %v4672_v42 = vcombine.high %v11732_v30, %v4014_v15  ;;  %v12799_v2 = vcombine.low %v11650_v41, %v11653_v34  ;;  %v11798_v53 = vpop.permute.xlu0 %4019 }
 0x3fb   : > { %v5604_v51 = vcombine.high %v11664_v19, %v11667_v27  ;;  %8452 = vmatpush3.bf16.msra.mxu1 %v6221_v31  ;;  %v4611_v59 = vrot.slane %v4603_v33, %v12788_v21  ;;  %v4618_v38 = vrot.slane %v4604_v22, %v12788_v21  ;;  %v4875_v4 = vcombine.low %v11788_v49, %v11798_v53 }
 0x3fc   : > { %v5663_v36 = vrot.slane %v12799_v2, %v10171_v44  ;;  %8472 = vmatpush3.bf16.msra.mxu0 %v6229_v50  ;;  %8453 = vmatprep.subr.bf16.mxu1 %v12669_v8  ;;  %v4679_v30 = vrot.slane %v4671_v60, %v12788_v21  ;;  %v4686_v15 = vrot.slane %v4672_v42, %v12788_v21 }
 0x3fd   : > { %8473 = vmatprep.subr.bf16.mxu0 %v12669_v8  ;;  %v4619_v45 = vcombine.low %v4595_v3, %v4611_v59  ;;  %v4620_v31 = vcombine.high %v4595_v3, %v4611_v59  ;;  %v4635_v50 = vcombine.low %v4602_v40, %v4618_v38  ;;  %v4636_v29 = vcombine.high %v4602_v40, %v4618_v38  ;;  %v3972_v48 = vpop.permute.xlu1 %3971 }
 0x3fe   : > { %v5671_v7 = vcombine.low %v11708_v32, %v5663_v36  ;;  %v4687_v54 = vcombine.low %v4663_v11, %v4679_v30  ;;  %v4688_v58 = vcombine.high %v4663_v11, %v4679_v30  ;;  %v4703_v1 = vcombine.low %v4670_v52, %v4686_v15 }
 0x3ff   : > { %v4704_v33 = vcombine.high %v4670_v52, %v4686_v15  ;;  %v4627_v22 = vrot.slane %v4619_v45, %v10171_v44  ;;  %v4634_v2 = vrot.slane %v4620_v31, %v10171_v44  ;;  %v4643_v20 = vrot.slane %v4635_v50, %v10171_v44 }
 0x400   : > { %v4650_v60 = vrot.slane %v4636_v29, %v10171_v44  ;;  %v4695_v42 = vrot.slane %v4687_v54, %v10171_v44  ;;  %v4702_v37 = vrot.slane %v4688_v58, %v10171_v44  ;;  %v4711_v3 = vrot.slane %v4703_v1, %v10171_v44 }
 0x401   : > { %v4718_v40 = vrot.slane %v4704_v33, %v10171_v44  ;;  %v5675_v59 = vcombine.low %v4627_v22, %v4634_v2  ;;  %v8056_v11 = vcombine.high %v4627_v22, %v4634_v2  ;;  %v11829_v1 = vpop.permute.xlu1 %3929  ;;  %v12800_v2 = vcombine.low %v11664_v19, %v11667_v27 }
 0x402   : > { %v5691_v38 = vcombine.low %v4643_v20, %v4650_v60  ;;  %v8057_v52 = vcombine.high %v4643_v20, %v4650_v60  ;;  %v5743_v30 = vcombine.low %v4695_v42, %v4702_v37  ;;  %v8058_v15 = vcombine.high %v4695_v42, %v4702_v37 }
 0x403   : > { %v5759_v45 = vcombine.low %v4711_v3, %v4718_v40  ;;  %v8059_v31 = vcombine.high %v4711_v3, %v4718_v40  ;;  %v11818_v50 = vrot.slane %v5675_v59, %v12788_v21  ;;  %v11821_v29 = vrot.slane %v8056_v11, %v12788_v21 }
 0x404   : > { %v11824_v54 = vrot.slane %v5691_v38, %v12788_v21  ;;  %v11827_v58 = vrot.slane %v8057_v52, %v12788_v21  ;;  %v11832_v20 = vrot.slane %v5743_v30, %v12788_v21  ;;  %v11835_v37 = vrot.slane %v8058_v15, %v12788_v21 }
 0x405   : > { %v11838_v33 = vrot.slane %v5759_v45, %v12788_v21  ;;  %v11841_v22 = vrot.slane %v8059_v31, %v12788_v21  ;;  %v6222_v60 = vpack.c.bf16 %v5671_v7, %v12800_v2  ;;  %v5672_v42 = vcombine.high %v11708_v32, %v5663_v36  ;;  %v3974_v2 = vpop.permute.xlu1 %3973 }
 0x406   : > { %v4859_v3 = vcombine.low %v11398_v55, %v3972_v48  ;;  %v4860_v40 = vcombine.high %v11398_v55, %v3972_v48  ;;  %v5707_v59 = vcombine.low %v11818_v50, %v11821_v29  ;;  %v5723_v11 = vcombine.low %v11824_v54, %v11827_v58 }
 0x407   : > { %v5775_v38 = vcombine.low %v11832_v20, %v11835_v37  ;;  %v5791_v52 = vcombine.low %v11838_v33, %v11841_v22  ;;  %8454 = vmatpush3.bf16.msra.mxu1 %v6222_v60  ;;  %v6230_v19 = vpack.c.bf16 %v5672_v42, %v5604_v51  ;;  %v4876_v55 = vcombine.high %v11788_v49, %v11798_v53 }
 0x408   : > { %v4867_v27 = vrot.slane %v4859_v3, %v12788_v21  ;;  %v4874_v32 = vrot.slane %v4860_v40, %v12788_v21  ;;  %8455 = vmatprep.subr.bf16.mxu1 %v12669_v8  ;;  %v5715_v36 = vrot.slane %v5707_v59, %v10171_v44  ;;  %v5731_v7 = vrot.slane %v5723_v11, %v10171_v44 }
 0x409   : > { %v5783_v48 = vrot.slane %v5775_v38, %v10171_v44  ;;  %v5799_v30 = vrot.slane %v5791_v52, %v10171_v44  ;;  %v12801_v51 = vcombine.low %v11747_v61, %v11750_v18  ;;  %v12802_v49 = vcombine.high %v11747_v61, %v11750_v18  ;;  %8474 = vmatpush3.bf16.msra.mxu0 %v6230_v19 }
 0x40a   : > { %v4883_v45 = vrot.slane %v4875_v4, %v12788_v21  ;;  %v4890_v31 = vrot.slane %v4876_v55, %v12788_v21  ;;  %8475 = vmatprep.subr.bf16.mxu0 %v12669_v8  ;;  %v5739_v60 = vcombine.low %v5715_v36, %v5731_v7  ;;  %v5740_v3 = vcombine.high %v5715_v36, %v5731_v7 }
 0x40b   : > { %v11870_v15 = vrot.slane %v12801_v51, %v12788_v21  ;;  %v11876_v53 = vrot.slane %v12802_v49, %v12788_v21  ;;  %v5807_v42 = vcombine.low %v5783_v48, %v5799_v30  ;;  %v5808_v40 = vcombine.high %v5783_v48, %v5799_v30 }
 0x40c   : > { %v4891_v59 = vcombine.low %v4867_v27, %v4883_v45  ;;  %v4892_v11 = vcombine.high %v4867_v27, %v4883_v45  ;;  %v4907_v38 = vcombine.low %v4874_v32, %v4890_v31  ;;  %v4908_v52 = vcombine.high %v4874_v32, %v4890_v31  ;;  %v3926_v45 = vpop.permute.xlu0 %3925  ;;  %v4022_v31 = vpop.permute.xlu1 %4021 }
 0x40d   : > { %v6223_v51 = vpack.c.bf16 %v5807_v42, %v5739_v60  ;;  %v6231_v61 = vpack.c.bf16 %v5808_v40, %v5740_v3  ;;  %v4927_v18 = vcombine.low %v11424_v25, %v3974_v2  ;;  %v4928_v19 = vcombine.high %v11424_v25, %v3974_v2 }
 0x40e   : > { %v4899_v4 = vrot.slane %v4891_v59, %v10171_v44  ;;  %v4906_v55 = vrot.slane %v4892_v11, %v10171_v44  ;;  %v4915_v49 = vrot.slane %v4907_v38, %v10171_v44  ;;  %v4922_v41 = vrot.slane %v4908_v52, %v10171_v44 }
 0x40f   : > { %8456 = vmatpush3.bf16.msra.mxu1 %v6223_v51  ;;  %8476 = vmatpush3.bf16.msra.mxu0 %v6231_v61  ;;  %v5843_v27 = vcombine.low %v11755_v9, %v11758_v23  ;;  %v5859_v32 = vcombine.low %v11765_v17, %v11768_v24  ;;  %v5911_v36 = vcombine.low %v11771_v35, %v11774_v47 }
 0x410   : > { %v5947_v25 = vcombine.low %v4899_v4, %v4906_v55  ;;  %v8064_v7 = vcombine.high %v4899_v4, %v4906_v55  ;;  %v5963_v48 = vcombine.low %v4915_v49, %v4922_v41  ;;  %v8065_v30 = vcombine.high %v4915_v49, %v4922_v41  ;;  %8457 = vmatprep.subr.bf16.mxu1 %v12669_v8 }
 0x411   : > { %8477 = vmatprep.subr.bf16.mxu0 %v12669_v8  ;;  %v5851_v2 = vrot.slane %v5843_v27, %v10171_v44  ;;  %v5867_v60 = vrot.slane %v5859_v32, %v10171_v44  ;;  %v5919_v42 = vrot.slane %v5911_v36, %v10171_v44  ;;  %v5927_v3 = vcombine.low %v11870_v15, %v11876_v53 }
 0x412   : > { %v11901_v40 = vrot.slane %v5947_v25, %v12788_v21  ;;  %v11904_v41 = vrot.slane %v8064_v7, %v12788_v21  ;;  %v4935_v59 = vrot.slane %v4927_v18, %v12788_v21  ;;  %v4942_v11 = vrot.slane %v4928_v19, %v12788_v21 }
 0x413   : > { %v5875_v38 = vcombine.low %v5851_v2, %v5867_v60  ;;  %v5935_v52 = vrot.slane %v5927_v3, %v10171_v44  ;;  %v5876_v51 = vcombine.high %v5851_v2, %v5867_v60  ;;  %v4943_v61 = vcombine.low %v3926_v45, %v4022_v31 }
 0x414   : > { %v11910_v4 = vrot.slane %v5963_v48, %v12788_v21  ;;  %v11913_v55 = vrot.slane %v8065_v30, %v12788_v21  ;;  %v4944_v49 = vcombine.high %v3926_v45, %v4022_v31  ;;  %v5436_v27 = vcombine.high %v11684_v39, %v11687_v14 }
 0x415   : > { %v5943_v32 = vcombine.low %v5919_v42, %v5935_v52  ;;  %v5944_v36 = vcombine.high %v5919_v42, %v5935_v52  ;;  %v4951_v18 = vrot.slane %v4943_v61, %v12788_v21  ;;  %v5452_v19 = vcombine.high %v11690_v12, %v11693_v57 }
 0x416   : > { %v4958_v25 = vrot.slane %v4944_v49, %v12788_v21  ;;  %v5450_v7 = vrot.slane %v5436_v27, %v10171_v44  ;;  %v5979_v39 = vcombine.low %v11901_v40, %v11904_v41  ;;  %v5995_v14 = vcombine.low %v11910_v4, %v11913_v55 }
 0x417   : > { %v6224_v48 = vpack.c.bf16 %v5943_v32, %v5875_v38  ;;  %v6232_v2 = vpack.c.bf16 %v5944_v36, %v5876_v51  ;;  %v4959_v60 = vcombine.low %v4935_v59, %v4951_v18  ;;  %v4960_v30 = vcombine.high %v4935_v59, %v4951_v18 }
 0x418   : > { %v4975_v3 = vcombine.low %v4942_v11, %v4958_v25  ;;  %v4976_v45 = vcombine.high %v4942_v11, %v4958_v25  ;;  %v5466_v31 = vrot.slane %v5452_v19, %v10171_v44  ;;  %v5504_v11 = vcombine.high %v11700_v10, %v11703_v5 }
 0x419   : > { %8458 = vmatpush3.bf16.msra.mxu1 %v6224_v48  ;;  %8478 = vmatpush3.bf16.msra.mxu0 %v6232_v2  ;;  %v4967_v12 = vrot.slane %v4959_v60, %v10171_v44  ;;  %v4974_v57 = vrot.slane %v4960_v30, %v10171_v44  ;;  %v5520_v61 = vcombine.high %v11711_v13, %v11714_v6 }
 0x41a   : > { %v4983_v42 = vrot.slane %v4975_v3, %v10171_v44  ;;  %v4990_v59 = vrot.slane %v4976_v45, %v10171_v44  ;;  %8459 = vmatprep.subr.bf16.mxu1 %v12669_v8  ;;  %8479 = vmatprep.subr.bf16.mxu0 %v12669_v8  ;;  %v5469_v51 = vcombine.low %v5450_v7, %v5466_v31 }
 0x41b   : > { %v6015_v38 = vcombine.low %v4967_v12, %v4974_v57  ;;  %v8066_v52 = vcombine.high %v4967_v12, %v4974_v57  ;;  %v5518_v32 = vrot.slane %v5504_v11, %v10171_v44  ;;  %v5470_v36 = vcombine.high %v5450_v7, %v5466_v31 }
 0x41c   : > { %v6031_v49 = vcombine.low %v4983_v42, %v4990_v59  ;;  %v8067_v27 = vcombine.high %v4983_v42, %v4990_v59  ;;  %v5987_v25 = vrot.slane %v5979_v39, %v10171_v44  ;;  %v5534_v48 = vrot.slane %v5520_v61, %v10171_v44 }
 0x41d   : > { %v6022_v18 = vrot.slane %v6015_v38, %v12788_v21  ;;  %v6030_v19 = vrot.slane %v8066_v52, %v12788_v21  ;;  %v6003_v2 = vrot.slane %v5995_v14, %v10171_v44  ;;  %v5640_v13 = vcombine.high %v11636_v16, %v11639_v56 }
 0x41e   : > { %v6038_v10 = vrot.slane %v6031_v49, %v12788_v21  ;;  %v6046_v5 = vrot.slane %v8067_v27, %v12788_v21  ;;  %v5537_v60 = vcombine.low %v5518_v32, %v5534_v48  ;;  %v5538_v7 = vcombine.high %v5518_v32, %v5534_v48 }
 0x41f   : > { %v6047_v6 = vcombine.low %v6022_v18, %v6030_v19  ;;  %v5708_v12 = vcombine.high %v11818_v50, %v11821_v29  ;;  %v6011_v57 = vcombine.low %v5987_v25, %v6003_v2  ;;  %v6012_v14 = vcombine.high %v5987_v25, %v6003_v2 }
 0x420   : > { %v6063_v30 = vcombine.low %v6038_v10, %v6046_v5  ;;  %v11948_v45 = vpack.c.bf16 %v5537_v60, %v5469_v51  ;;  %v11950_v39 = vpack.c.bf16 %v5538_v7, %v5470_v36  ;;  %v5724_v59 = vcombine.high %v11824_v54, %v11827_v58 }
 0x421   : > { %v6055_v3 = vrot.slane %v6047_v6, %v10171_v44  ;;  %v5722_v42 = vrot.slane %v5708_v12, %v10171_v44  ;;  %v5776_v11 = vcombine.high %v11832_v20, %v11835_v37  ;;  %v5792_v38 = vcombine.high %v11838_v33, %v11841_v22 }
 0x422   : > { %v6071_v31 = vrot.slane %v6063_v30, %v10171_v44  ;;  %v5738_v61 = vrot.slane %v5724_v59, %v10171_v44  ;;  %v5844_v49 = vcombine.high %v11755_v9, %v11758_v23  ;;  %v5860_v33 = vcombine.high %v11765_v17, %v11768_v24 }
 0x423   : > { %v5790_v50 = vrot.slane %v5776_v11, %v10171_v44  ;;  %v5806_v29 = vrot.slane %v5792_v38, %v10171_v44  ;;  %v5912_v22 = vcombine.high %v11771_v35, %v11774_v47  ;;  %v5928_v25 = vcombine.high %v11870_v15, %v11876_v53 }
 0x424   : > { %v6079_v52 = vcombine.low %v6055_v3, %v6071_v31  ;;  %v6080_v51 = vcombine.high %v6055_v3, %v6071_v31  ;;  %v5741_v54 = vcombine.low %v5722_v42, %v5738_v61  ;;  %v5742_v36 = vcombine.high %v5722_v42, %v5738_v61 }
 0x425   : > { %v5809_v58 = vcombine.low %v5790_v50, %v5806_v29  ;;  %v5810_v20 = vcombine.high %v5790_v50, %v5806_v29  ;;  %v5858_v37 = vrot.slane %v5844_v49, %v10171_v44  ;;  %v5874_v48 = vrot.slane %v5860_v33, %v10171_v44 }
 0x426   : > { %v6225_v27 = vpack.c.bf16 %v6079_v52, %v6011_v57  ;;  %v6233_v32 = vpack.c.bf16 %v6080_v51, %v6012_v14  ;;  %v5926_v2 = vrot.slane %v5912_v22, %v10171_v44  ;;  %v5980_v17 = vcombine.high %v11901_v40, %v11904_v41 }
 0x427   : > { %v11974_v9 = vpack.c.bf16 %v5809_v58, %v5741_v54  ;;  %v11976_v23 = vpack.c.bf16 %v5810_v20, %v5742_v36  ;;  %v5996_v24 = vcombine.high %v11910_v4, %v11913_v55  ;;  %v5942_v35 = vrot.slane %v5928_v25, %v10171_v44 }
 0x428   : > { %8460 = vmatpush3.bf16.msra.mxu1 %v6225_v27  ;;  %8480 = vmatpush3.bf16.msra.mxu0 %v6233_v32  ;;  %v6048_v47 = vcombine.high %v6022_v18, %v6030_v19  ;;  %v6064_v6 = vcombine.high %v6038_v10, %v6046_v5  ;;  %v5877_v60 = vcombine.low %v5858_v37, %v5874_v48 }
 0x429   : > { %8461 = vmatprep.subr.bf16.mxu1 %v12669_v8  ;;  %8481 = vmatprep.subr.bf16.mxu0 %v12669_v8  ;;  %v5878_v7 = vcombine.high %v5858_v37, %v5874_v48  ;;  %v5994_v30 = vrot.slane %v5980_v17, %v10171_v44  ;;  %v6010_v15 = vrot.slane %v5996_v24, %v10171_v44 }
 0x42a   : > { %v5945_v53 = vcombine.low %v5926_v2, %v5942_v35  ;;  %v5946_v3 = vcombine.high %v5926_v2, %v5942_v35  ;;  %v6062_v12 = vrot.slane %v6048_v47, %v10171_v44  ;;  %v6078_v57 = vrot.slane %v6064_v6, %v10171_v44 }
 0x42b   : > { %v6013_v40 = vcombine.low %v5994_v30, %v6010_v15  ;;  %v6014_v41 = vcombine.high %v5994_v30, %v6010_v15 }
 0x42c   : > { %v11991_v31 = vpack.c.bf16 %v5945_v53, %v5877_v60  ;;  %v11993_v4 = vpack.c.bf16 %v5946_v3, %v5878_v7  ;;  %v6081_v55 = vcombine.low %v6062_v12, %v6078_v57  ;;  %v6082_v18 = vcombine.high %v6062_v12, %v6078_v57 }
 0x42e   : > { %v11995_v19 = vpack.c.bf16 %v6081_v55, %v6013_v40  ;;  %v11997_v10 = vpack.c.bf16 %v6082_v18, %v6014_v41 }
 0x43b   : > { %v6313_v5 = vpop.f32.mrb[16].mxu1 }
 0x43c   : > { %v6381_v14 = vpop.f32.mrb[20].mxu0  ;;  %v6524_v42 = vmul.f32 0.17677669, %v6313_v5  ;;  %v8385_v59 = vpop.f32.mrb[17].mxu1 }
 0x43d   : > { %v8405_v11 = vpop.f32.mrb[21].mxu0  ;;  %v6316_v38 = vpop.f32.mrb[18].mxu1  ;;  %v6526_v29 = vmul.f32 0.17677669, %v6381_v14 }
 0x43e   : > { %v6384_v52 = vpop.f32.mrb[22].mxu0  ;;  %v6525_v51 = vmul.f32 0.17677669, %v6316_v38  ;;  %v8386_v61 = vpop.f32.mrb[19].mxu1  ;;  %6532 = vmax.xlane.f32.xlu0 %v6524_v42 }
 0x43f   : > { %v8406_v50 = vpop.f32.mrb[23].mxu0  ;;  %v6527_v49 = vmul.f32 0.17677669, %v6384_v52 }
 0x440   : > { %6534 = vmax.xlane.f32.xlu1 %v6525_v51 }
 0x442   : > { %6536 = vmax.xlane.f32.xlu0 %v6526_v29 }
 0x446   : > { %6538 = vmax.xlane.f32.xlu0 %v6527_v49 }
 0x47b   : > { %v6449_v27 = vpop.f32.mrb[20].mxu1 }
 0x47c   : > { %v6517_v32 = vpop.f32.mrb[24].mxu0  ;;  %v6528_v54 = vmul.f32 0.17677669, %v6449_v27  ;;  %v8425_v58 = vpop.f32.mrb[21].mxu1 }
 0x47d   : > { %v8445_v36 = vpop.f32.mrb[25].mxu0  ;;  %v6452_v20 = vpop.f32.mrb[22].mxu1  ;;  %v6530_v48 = vmul.f32 0.17677669, %v6517_v32 }
 0x47e   : > { %v6520_v37 = vpop.f32.mrb[26].mxu0  ;;  %v6529_v33 = vmul.f32 0.17677669, %v6452_v20  ;;  %v8426_v22 = vpop.f32.mrb[23].mxu1  ;;  %6540 = vmax.xlane.f32.xlu1 %v6528_v54 }
 0x47f   : > { %v8446_v25 = vpop.f32.mrb[27].mxu0  ;;  %v6531_v2 = vmul.f32 0.17677669, %v6520_v37 }
 0x480   : > { %6542 = vmax.xlane.f32.xlu0 %v6529_v33 }
 0x482   : > { %6544 = vmax.xlane.f32.xlu1 %v6530_v48 }
 0x484   : > { %6546 = vmax.xlane.f32.xlu0 %v6531_v2 }
 0x493   : > { %3977 = vrot.lane.b32.xlu1 %v11453_v26, %s9308_s7 }
 0x49a   : > { %3975 = vrot.lane.b32.xlu0 %v11379_v63, %s9308_s7 }
 0x4cb   : > { %v6533_v17 = vpop.xlane.xlu0 %6532 }
 0x4cc   : > { %v6548_v24 = vsub.f32 %v6524_v42, %v6533_v17 }
 0x4cd   : > { %v6535_v35 = vpop.xlane.xlu1 %6534 }
 0x4ce   : > { %v6556_v47 = vmul.f32 1.442695, %v6548_v24  ;;  %v6549_v6 = vsub.f32 %v6525_v51, %v6535_v35 }
 0x4cf   : > { %v6537_v60 = vpop.xlane.xlu0 %6536 }
 0x4d0   : > { %8833 = vpow2.f32 %v6556_v47  ;;  %v6558_v7 = vmul.f32 1.442695, %v6549_v6  ;;  %v6550_v30 = vsub.f32 %v6526_v29, %v6537_v60 }
 0x4d2   : > { %8835 = vpow2.f32 %v6558_v7  ;;  %v6560_v15 = vmul.f32 1.442695, %v6550_v30 }
 0x4d3   : > { %v6539_v53 = vpop.xlane.xlu0 %6538 }
 0x4d4   : > { %8837 = vpow2.f32 %v6560_v15  ;;  %v6551_v3 = vsub.f32 %v6527_v49, %v6539_v53 }
 0x4d6   : > { %v6562_v12 = vmul.f32 1.442695, %v6551_v3 }
 0x4d8   : > { %8839 = vpow2.f32 %v6562_v12 }
 0x4da   : > { %v12003_v57 = vpop.eup %8833 }
 0x4db   : > { %6572 = vadd.xlane.f32.xlu0 %v12003_v57 }
 0x4dc   : > { %v12006_v40 = vpop.eup %8835 }
 0x4dd   : > { %6574 = vadd.xlane.f32.xlu1 %v12006_v40 }
 0x4de   : > { %v12009_v41 = vpop.eup %8837 }
 0x4df   : > { %6576 = vadd.xlane.f32.xlu0 %v12009_v41 }
 0x4e2   : > { %v12012_v55 = vpop.eup %8839 }
 0x4e3   : > { %6578 = vadd.xlane.f32.xlu0 %v12012_v55 }
 0x4ee   : > { %4025 = vrot.lane.b32.xlu1 %v11453_v26, %s9309_s9 }
 0x4f9   : > { %4023 = vrot.lane.b32.xlu0 %v11379_v63, %s9309_s9 }
 0x50b   : > { %v6541_v18 = vpop.xlane.xlu1 %6540 }
 0x50c   : > { %v6552_v5 = vsub.f32 %v6528_v54, %v6541_v18 }
 0x50d   : > { %v6543_v14 = vpop.xlane.xlu0 %6542 }
 0x50e   : > { %v6564_v42 = vmul.f32 1.442695, %v6552_v5  ;;  %v6553_v59 = vsub.f32 %v6529_v33, %v6543_v14 }
 0x50f   : > { %v6545_v11 = vpop.xlane.xlu1 %6544 }
 0x510   : > { %8841 = vpow2.f32 %v6564_v42  ;;  %v6566_v38 = vmul.f32 1.442695, %v6553_v59  ;;  %v6554_v52 = vsub.f32 %v6530_v48, %v6545_v11 }
 0x511   : > { %v6547_v51 = vpop.xlane.xlu0 %6546 }
 0x512   : > { %8843 = vpow2.f32 %v6566_v38  ;;  %v6568_v61 = vmul.f32 1.442695, %v6554_v52  ;;  %v6555_v50 = vsub.f32 %v6531_v2, %v6547_v51 }
 0x513   : > { %v3978_v36 = vpop.permute.xlu1 %3977 }
 0x514   : > { %8845 = vpow2.f32 %v6568_v61  ;;  %v6570_v29 = vmul.f32 1.442695, %v6555_v50  ;;  %v5063_v22 = vcombine.low %v11453_v26, %v3978_v36  ;;  %v5064_v25 = vcombine.high %v11453_v26, %v3978_v36 }
 0x515   : > { %v3976_v58 = vpop.permute.xlu0 %3975 }
 0x516   : > { %8847 = vpow2.f32 %v6570_v29  ;;  %v5071_v35 = vrot.slane %v5063_v22, %v12788_v21  ;;  %v5078_v47 = vrot.slane %v5064_v25, %v12788_v21  ;;  %v4995_v7 = vcombine.low %v11379_v63, %v3976_v58 }
 0x517   : > { %v4996_v3 = vcombine.high %v11379_v63, %v3976_v58 }
 0x518   : > { %v5003_v42 = vrot.slane %v4995_v7, %v12788_v21 }
 0x519   : > { %v5010_v61 = vrot.slane %v4996_v3, %v12788_v21 }
 0x51a   : > { %v12019_v49 = vpop.eup %8841 }
 0x51b   : > { %6580 = vadd.xlane.f32.xlu0 %v12019_v49 }
 0x51c   : > { %v12022_v27 = vpop.eup %8843 }
 0x51d   : > { %6582 = vadd.xlane.f32.xlu1 %v12022_v27 }
 0x51e   : > { %v12025_v32 = vpop.eup %8845 }
 0x51f   : > { %6584 = vadd.xlane.f32.xlu0 %v12025_v32 }
 0x520   : > { %v12028_v54 = vpop.eup %8847 }
 0x523   : > { %6586 = vadd.xlane.f32.xlu0 %v12028_v54 }
 0x568   : > { %v6573_v20 = vpop.xlane.xlu0 %6572 }
 0x569   : > { %8849 = vrcp.f32 %v6573_v20 }
 0x56a   : > { %v6575_v37 = vpop.xlane.xlu1 %6574 }
 0x56b   : > { %8851 = vrcp.f32 %v6575_v37 }
 0x56c   : > { %v6577_v33 = vpop.xlane.xlu0 %6576 }
 0x56e   : > { %v4026_v48 = vpop.permute.xlu1 %4025 }
 0x56f   : > { %v5079_v2 = vcombine.low %v11829_v1, %v4026_v48  ;;  %v5080_v17 = vcombine.high %v11829_v1, %v4026_v48 }
 0x570   : > { %v6579_v24 = vpop.xlane.xlu0 %6578 }
 0x571   : > { %v5087_v6 = vrot.slane %v5079_v2, %v12788_v21  ;;  %v5094_v60 = vrot.slane %v5080_v17, %v12788_v21  ;;  %8853 = vrcp.f32 %v6579_v24 }
 0x572   : > { %8855 = vrcp.f32 %v6577_v33 }
 0x573   : > { %v5095_v30 = vcombine.low %v5071_v35, %v5087_v6  ;;  %v5096_v15 = vcombine.high %v5071_v35, %v5087_v6  ;;  %v5111_v53 = vcombine.low %v5078_v47, %v5094_v60  ;;  %v5112_v26 = vcombine.high %v5078_v47, %v5094_v60  ;;  %v8850_v60 = vpop.eup %8849 }
 0x574   : > { %v4024_v12 = vpop.permute.xlu0 %4023 }
 0x575   : > { %v5103_v1 = vrot.slane %v5095_v30, %v10171_v44  ;;  %v5110_v18 = vrot.slane %v5096_v15, %v10171_v44  ;;  %v5119_v5 = vrot.slane %v5111_v53, %v10171_v44  ;;  %v5126_v14 = vrot.slane %v5112_v26, %v10171_v44  ;;  %v8852_v33 = vpop.eup %8851 }
 0x576   : > { %v5011_v59 = vcombine.low %v11776_v62, %v4024_v12  ;;  %v5012_v11 = vcombine.high %v11776_v62, %v4024_v12 }
 0x577   : > { %v6151_v38 = vcombine.low %v5103_v1, %v5110_v18  ;;  %v8070_v52 = vcombine.high %v5103_v1, %v5110_v18  ;;  %v6167_v63 = vcombine.low %v5119_v5, %v5126_v14  ;;  %v8071_v51 = vcombine.high %v5119_v5, %v5126_v14 }
 0x578   : > { %v5019_v50 = vrot.slane %v5011_v59, %v12788_v21  ;;  %v5026_v29 = vrot.slane %v5012_v11, %v12788_v21 }
 0x579   : > { %v12052_v58 = vrot.slane %v6151_v38, %v12788_v21  ;;  %v12055_v36 = vrot.slane %v8070_v52, %v12788_v21  ;;  %v12058_v20 = vrot.slane %v6167_v63, %v12788_v21  ;;  %v12061_v62 = vrot.slane %v8071_v51, %v12788_v21 }
 0x57a   : > { %v5027_v37 = vcombine.low %v5003_v42, %v5019_v50  ;;  %v5028_v22 = vcombine.high %v5003_v42, %v5019_v50  ;;  %v5043_v25 = vcombine.low %v5010_v61, %v5026_v29  ;;  %v5044_v48 = vcombine.high %v5010_v61, %v5026_v29 }
 0x57b   : > { %v6183_v47 = vcombine.low %v12052_v58, %v12055_v36  ;;  %v6199_v6 = vcombine.low %v12058_v20, %v12061_v62  ;;  %v8854_v18 = vpop.eup %8853  ;;  %v12092_v29 = vmul.f32 %v8852_v33, %v12006_v40 }
 0x57c   : > { %v5035_v2 = vrot.slane %v5027_v37, %v10171_v44  ;;  %v5042_v17 = vrot.slane %v5028_v22, %v10171_v44  ;;  %v5051_v24 = vrot.slane %v5043_v25, %v10171_v44  ;;  %v5058_v35 = vrot.slane %v5044_v48, %v10171_v44  ;;  %v8856_v52 = vpop.eup %8855 }
 0x57d   : > { %v6191_v42 = vrot.slane %v6183_v47, %v10171_v44  ;;  %v6207_v59 = vrot.slane %v6199_v6, %v10171_v44  ;;  %v12095_v37 = vmul.f32 %v8854_v18, %v12012_v55  ;;  %v12098_v48 = vmul.f32 %v8850_v60, %v12003_v57  ;;  %v12805_v47 = vld [vmem:[#allocation57_spill] sm:$0xff] }
 0x57e   : > { %v6083_v7 = vcombine.low %v5035_v2, %v5042_v17  ;;  %v8068_v30 = vcombine.high %v5035_v2, %v5042_v17  ;;  %v6099_v15 = vcombine.low %v5051_v24, %v5058_v35  ;;  %v8069_v53 = vcombine.high %v5051_v24, %v5058_v35  ;;  %v12804_v35 = vld [vmem:[#allocation58_spill] sm:$0xff] }
 0x57f   : > { %v6215_v51 = vcombine.low %v6191_v42, %v6207_v59  ;;  %v6216_v50 = vcombine.high %v6191_v42, %v6207_v59  ;;  %v12101_v2 = vmul.f32 %v8856_v52, %v12009_v41  ;;  %v6604_v17 = vpack.c.bf16 %v12092_v29, %v12098_v48  ;;  %v12803_v41 = vld [vmem:[#allocation62_spill] sm:$0xff]  ;;  %v8785_v52 = vld [vmem:[%s9862_s5] sm:$0xff]  }
 0x580   : > { %v12072_v26 = vrot.slane %v6083_v7, %v12788_v21  ;;  %v12075_v3 = vrot.slane %v8068_v30, %v12788_v21  ;;  %v12078_v12 = vrot.slane %v6099_v15, %v12788_v21  ;;  %v12081_v1 = vrot.slane %v8069_v53, %v12788_v21 }
 0x581   : > { %v6605_v40 = vpack.c.bf16 %v12095_v37, %v12101_v2  ;;  %v5572_v55 = vcombine.high %v11624_v46, %v11627_v0  ;;  %v5588_v57 = vcombine.high %v11630_v28, %v11633_v43  ;;  %v5656_v24 = vcombine.high %v12803_v41, %v11653_v34  ;;  %v12806_v43 = vld [vmem:[#allocation59_spill] sm:$0xff] }
 0x582   : > { %v6115_v5 = vcombine.low %v12072_v26, %v12075_v3  ;;  %v6131_v14 = vcombine.low %v12078_v12, %v12081_v1  ;;  %v5654_v0 = vrot.slane %v5640_v13, %v10171_v44  ;;  %v12807_v34 = vld [vmem:[#allocation63_spill] sm:$0xff]  ;;  %v6116_v15 = vcombine.high %v12072_v26, %v12075_v3 }
 0x583   : > { %v5586_v6 = vrot.slane %v5572_v55, %v10171_v44  ;;  %v5602_v46 = vrot.slane %v5588_v57, %v10171_v44  ;;  %v5670_v28 = vrot.slane %v5656_v24, %v10171_v44  ;;  %v6200_v53 = vcombine.high %v12058_v20, %v12061_v62 }
 0x584   : > { %v6123_v11 = vrot.slane %v6115_v5, %v10171_v44  ;;  %v6139_v38 = vrot.slane %v6131_v14, %v10171_v44  ;;  %v6130_v33 = vrot.slane %v6116_v15, %v10171_v44 }
 0x585   : > { %v5605_v60 = vcombine.low %v5586_v6, %v5602_v46  ;;  %v5673_v7 = vcombine.low %v5654_v0, %v5670_v28  ;;  %v5606_v16 = vcombine.high %v5586_v6, %v5602_v46  ;;  %v5674_v56 = vcombine.high %v5654_v0, %v5670_v28 }
 0x586   : > { %v6147_v63 = vcombine.low %v6123_v11, %v6139_v38  ;;  %v6148_v61 = vcombine.high %v6123_v11, %v6139_v38 }
 0x587   : > { %v6238_v13 = vpack.c.bf16 %v5673_v7, %v5605_v60  ;;  %v6246_v30 = vpack.c.bf16 %v5674_v56, %v5606_v16 }
 0x588   : > { %v6226_v22 = vpack.c.bf16 %v6215_v51, %v6147_v63  ;;  %v6234_v25 = vpack.c.bf16 %v6216_v50, %v6148_v61  ;;  %v8786_v63 = vld [vmem:[%s9862_s5 + $0x8] sm:$0xff]   ;;  %v8787_v51 = vld [vmem:[%s9862_s5 + $0x10] sm:$0xff]  }
 0x589   : > { %v8790_v61 = vld [vmem:[%s9862_s5 + $0x28] sm:$0xff]  }
 0x58a   : > { %8462 = vmatpush3.bf16.msra.mxu1 %v6226_v22  ;;  %8482 = vmatpush3.bf16.msra.mxu0 %v6234_v25 }
 0x58b   : > { %8487 = vmatprep.subr.bf16.mxu1 %v12669_v8  ;;  %8507 = vmatprep.subr.bf16.mxu0 %v12669_v8 }
 0x58d   : > { %8464 = vmatmul.mubr.bf16.vlgmr.msra.gmra.mrb[24].mxu1 %v6604_v17  ;;  %8484 = vmatmul.mubr.bf16.vlgmr.msra.gmra.mrb[28].mxu0 %v6605_v40 }
 0x58e   : > { %8488 = vmatpush3.bf16.msra.mxu1 %v12804_v35  ;;  %8508 = vmatpush3.bf16.msra.mxu0 %v12805_v47 }
 0x58f   : > { %8489 = vmatprep.subr.bf16.mxu1 %v12669_v8  ;;  %8509 = vmatprep.subr.bf16.mxu0 %v12669_v8 }
 0x590   : > { %8503 = vmatprep.mubr.msk.bf16.mxu1 %vm9306_vm0, %v12669_v8  ;;  %8523 = vmatprep.mubr.msk.bf16.mxu0 %vm9306_vm0, %v12669_v8 }
 0x592   : > { %8490 = vmatpush3.bf16.msra.mxu1 %v12806_v43  ;;  %8510 = vmatpush3.bf16.msra.mxu0 %v12807_v34 }
 0x593   : > { %8491 = vmatprep.subr.bf16.mxu1 %v12669_v8  ;;  %8511 = vmatprep.subr.bf16.mxu0 %v12669_v8 }
 0x596   : > { %8492 = vmatpush3.bf16.msra.mxu1 %v11948_v45  ;;  %8512 = vmatpush3.bf16.msra.mxu0 %v11950_v39  ;;  %v6132_v45 = vcombine.high %v12078_v12, %v12081_v1  ;;  %v6184_v39 = vcombine.high %v12052_v58, %v12055_v36 }
 0x597   : > { %8493 = vmatprep.subr.bf16.mxu1 %v12669_v8  ;;  %8513 = vmatprep.subr.bf16.mxu0 %v12669_v8 }
 0x598   : > { %v6146_v26 = vrot.slane %v6132_v45, %v10171_v44 }
 0x59a   : > { %8494 = vmatpush3.bf16.msra.mxu1 %v6238_v13  ;;  %8514 = vmatpush3.bf16.msra.mxu0 %v6246_v30  ;;  %v6149_v58 = vcombine.low %v6130_v33, %v6146_v26  ;;  %v6150_v36 = vcombine.high %v6130_v33, %v6146_v26 }
 0x59b   : > { %8495 = vmatprep.subr.bf16.mxu1 %v12669_v8  ;;  %8515 = vmatprep.subr.bf16.mxu0 %v12669_v8 }
 0x59e   : > { %8496 = vmatpush3.bf16.msra.mxu1 %v11974_v9  ;;  %8516 = vmatpush3.bf16.msra.mxu0 %v11976_v23  ;;  %v6198_v9 = vrot.slane %v6184_v39, %v10171_v44  ;;  %v6214_v23 = vrot.slane %v6200_v53, %v10171_v44 }
 0x59f   : > { %8497 = vmatprep.subr.bf16.mxu1 %v12669_v8  ;;  %8517 = vmatprep.subr.bf16.mxu0 %v12669_v8 }
 0x5a0   : > { %v6217_v20 = vcombine.low %v6198_v9, %v6214_v23  ;;  %v6218_v62 = vcombine.high %v6198_v9, %v6214_v23 }
 0x5a2   : > { %8498 = vmatpush3.bf16.msra.mxu1 %v11991_v31  ;;  %8518 = vmatpush3.bf16.msra.mxu0 %v11993_v4  ;;  %v6242_v4 = vpack.c.bf16 %v6217_v20, %v6149_v58  ;;  %v6250_v3 = vpack.c.bf16 %v6218_v62, %v6150_v36 }
 0x5a3   : > { %8499 = vmatprep.subr.bf16.mxu1 %v12669_v8  ;;  %8519 = vmatprep.subr.bf16.mxu0 %v12669_v8 }
 0x5a6   : > { %8500 = vmatpush3.bf16.msra.mxu1 %v11995_v19  ;;  %8520 = vmatpush3.bf16.msra.mxu0 %v11997_v10 }
 0x5a7   : > { %8501 = vmatprep.subr.bf16.mxu1 %v12669_v8  ;;  %8521 = vmatprep.subr.bf16.mxu0 %v12669_v8 }
 0x5a8   : > { %v6581_v31 = vpop.xlane.xlu0 %6580 }
 0x5a9   : > { %8857 = vrcp.f32 %v6581_v31 }
 0x5aa   : > { %8502 = vmatpush3.bf16.msra.mxu1 %v6242_v4  ;;  %8522 = vmatpush3.bf16.msra.mxu0 %v6250_v3  ;;  %v6583_v12 = vpop.xlane.xlu1 %6582 }
 0x5ab   : > { %8859 = vrcp.f32 %v6583_v12  ;;  %8527 = vmatprep.subr.bf16.mxu1 %v12669_v8 }
 0x5ac   : > { %v6585_v1 = vpop.xlane.xlu0 %6584 }
 0x5ad   : > { %8861 = vrcp.f32 %v6585_v1 }
 0x5b0   : > { %v6587_v19 = vpop.xlane.xlu0 %6586 }
 0x5b1   : > { %8863 = vrcp.f32 %v6587_v19 }
 0x5b3   : > { %v8858_v10 = vpop.eup %8857 }
 0x5b4   : > { %v12166_v5 = vmul.f32 %v8858_v10, %v12019_v49 }
 0x5b5   : > { %v8860_v18 = vpop.eup %8859 }
 0x5b6   : > { %v12169_v14 = vmul.f32 %v8860_v18, %v12022_v27 }
 0x5b7   : > { %v8862_v59 = vpop.eup %8861 }
 0x5b8   : > { %v6606_v42 = vpack.c.bf16 %v12169_v14, %v12166_v5  ;;  %v12176_v38 = vmul.f32 %v8862_v59, %v12025_v32  ;;  %v8788_v32 = vld [vmem:[%s9862_s5 + $0x18] sm:$0xff]  }
 0x5ba   : > { %8504 = vmatmul.mubr.bf16.vlgmr.msra.gmra.mrb[28].mxu1 %v6606_v42 }
 0x5bb   : > { %v8864_v11 = vpop.eup %8863  ;;  %8543 = vmatprep.mubr.msk.bf16.mxu1 %vm9306_vm0, %v12669_v8  ;;  %8528 = vmatpush3.bf16.msra.mxu1 %v8785_v52 }
 0x5bc   : > { %v12179_v49 = vmul.f32 %v8864_v11, %v12028_v54  ;;  %8529 = vmatprep.subr.bf16.mxu1 %v12669_v8  ;;  %v8789_v54 = vld [vmem:[%s9862_s5 + $0x20] sm:$0xff]  }
 0x5be   : > { %v6607_v27 = vpack.c.bf16 %v12179_v49, %v12176_v38 }
 0x5bf   : > { %8530 = vmatpush3.bf16.msra.mxu1 %v8786_v63 }
 0x5c0   : > { %8524 = vmatmul.mubr.bf16.vlgmr.msra.gmra.mrb[32].mxu0 %v6607_v27  ;;  %8531 = vmatprep.subr.bf16.mxu1 %v12669_v8 }
 0x5c3   : > { %8532 = vmatpush3.bf16.msra.mxu1 %v8787_v51 }
 0x5c4   : > { %8533 = vmatprep.subr.bf16.mxu1 %v12669_v8 }
 0x5c7   : > { %8534 = vmatpush3.bf16.msra.mxu1 %v8788_v32 }
 0x5c8   : > { %8535 = vmatprep.subr.bf16.mxu1 %v12669_v8 }
 0x5cb   : > { %8536 = vmatpush3.bf16.msra.mxu1 %v8789_v54 }
 0x5cc   : > { %8537 = vmatprep.subr.bf16.mxu1 %v12669_v8 }
 0x5cf   : > { %8538 = vmatpush3.bf16.msra.mxu1 %v8790_v61 }
 0x5d0   : > { %8539 = vmatprep.subr.bf16.mxu1 %v12669_v8 }
 0x660   : > { %v6642_v50 = vpop.f32.mrb[24].mxu1  ;;  %v6683_v22 = vpop.f32.mrb[28].mxu0 }
 0x661   : > { %v8465_v25 = vpop.f32.mrb[25].mxu1  ;;  %v8485_v17 = vpop.f32.mrb[29].mxu0 }
 0x662   : > { %v6645_v40 = vpop.f32.mrb[26].mxu1  ;;  %v6686_v55 = vpop.f32.mrb[30].mxu0 }
 0x663   : > { %v8466_v57 = vpop.f32.mrb[27].mxu1  ;;  %v8486_v41 = vpop.f32.mrb[31].mxu0 }
 0x68d   : > { %v6724_v24 = vpop.f32.mrb[28].mxu1 }
 0x68e   : > { %v6772_v35 = vcombine.low %v6642_v50, %v6724_v24  ;;  %v6773_v47 = vcombine.high %v6642_v50, %v6724_v24  ;;  %v8505_v6 = vpop.f32.mrb[29].mxu1 }
 0x68f   : > { %v6727_v46 = vpop.f32.mrb[30].mxu1  ;;  %v8791_v6 = vld [vmem:[%s9862_s5 + $0x30] sm:$0xff]  }
 0x690   : > { %v6840_v0 = vcombine.low %v6645_v40, %v6727_v46  ;;  %v6841_v28 = vcombine.high %v6645_v40, %v6727_v46  ;;  %v8506_v43 = vpop.f32.mrb[31].mxu1  ;;  %v6780_v56 = vrot.slane %v6772_v35, %v12788_v21  ;;  %v6787_v13 = vrot.slane %v6773_v47, %v12788_v21  ;;  %8540 = vmatpush3.bf16.msra.mxu1 %v8791_v6 }
 0x691   : > { %8541 = vmatprep.subr.bf16.mxu1 %v12669_v8 }
 0x692   : > { %v6848_v36 = vrot.slane %v6840_v0, %v12788_v21  ;;  %v6855_v20 = vrot.slane %v6841_v28, %v12788_v21 }
 0x693   : > { %v6765_v34 = vpop.f32.mrb[32].mxu0 }
 0x694   : > { %v6788_v60 = vcombine.low %v6683_v22, %v6765_v34  ;;  %v6789_v7 = vcombine.high %v6683_v22, %v6765_v34  ;;  %v8525_v16 = vpop.f32.mrb[33].mxu0 }
 0x695   : > { %v6768_v30 = vpop.f32.mrb[34].mxu0 }
 0x696   : > { %v6796_v15 = vrot.slane %v6788_v60, %v12788_v21  ;;  %v6803_v45 = vrot.slane %v6789_v7, %v12788_v21  ;;  %v6856_v39 = vcombine.low %v6686_v55, %v6768_v30  ;;  %v6857_v53 = vcombine.high %v6686_v55, %v6768_v30  ;;  %v8526_v33 = vpop.f32.mrb[35].mxu0 }
 0x698   : > { %v6804_v26 = vcombine.low %v6780_v56, %v6796_v15  ;;  %v6805_v9 = vcombine.high %v6780_v56, %v6796_v15  ;;  %v6820_v23 = vcombine.low %v6787_v13, %v6803_v45  ;;  %v6821_v58 = vcombine.high %v6787_v13, %v6803_v45 }
 0x699   : > { %v6864_v62 = vrot.slane %v6856_v39, %v12788_v21  ;;  %v6871_v31 = vrot.slane %v6857_v53, %v12788_v21 }
 0x69a   : > { %v6812_v4 = vrot.slane %v6804_v26, %v10171_v44  ;;  %v6819_v3 = vrot.slane %v6805_v9, %v10171_v44  ;;  %v6828_v12 = vrot.slane %v6820_v23, %v10171_v44  ;;  %v6835_v1 = vrot.slane %v6821_v58, %v10171_v44  ;;  %v8792_v58 = vld [vmem:[%s9862_s5 + $0x38] sm:$0xff]  }
 0x69b   : > { %v6872_v19 = vcombine.low %v6848_v36, %v6864_v62  ;;  %v6873_v10 = vcombine.high %v6848_v36, %v6864_v62  ;;  %v6888_v18 = vcombine.low %v6855_v20, %v6871_v31  ;;  %v6889_v42 = vcombine.high %v6855_v20, %v6871_v31  ;;  %8542 = vmatpush3.bf16.msra.mxu1 %v8792_v58  ;;  %v8805_v58 = vld [vmem:[%s9864_s21 + $0x40] ss:$8 sps:$4 sm:$0xff]  }
 0x69c   : > { %v6908_v59 = vcombine.low %v6812_v4, %v6819_v3  ;;  %v8076_v11 = vcombine.high %v6812_v4, %v6819_v3  ;;  %v6924_v27 = vcombine.low %v6828_v12, %v6835_v1  ;;  %v8077_v52 = vcombine.high %v6828_v12, %v6835_v1 }
 0x69d   : > { %v6880_v63 = vrot.slane %v6872_v19, %v10171_v44  ;;  %v6887_v51 = vrot.slane %v6873_v10, %v10171_v44  ;;  %v6896_v32 = vrot.slane %v6888_v18, %v10171_v44  ;;  %v6903_v54 = vrot.slane %v6889_v42, %v10171_v44 }
 0x69e   : > { %v6915_v61 = vrot.slane %v6908_v59, %v12788_v21  ;;  %v6923_v50 = vrot.slane %v8076_v11, %v12788_v21  ;;  %v6931_v22 = vrot.slane %v6924_v27, %v12788_v21  ;;  %v6939_v25 = vrot.slane %v8077_v52, %v12788_v21 }
 0x69f   : > { %v6976_v17 = vcombine.low %v6880_v63, %v6887_v51  ;;  %v8078_v40 = vcombine.high %v6880_v63, %v6887_v51  ;;  %v6992_v55 = vcombine.low %v6896_v32, %v6903_v54  ;;  %v8079_v57 = vcombine.high %v6896_v32, %v6903_v54 }
 0x6a0   : > { %v6941_v41 = vcombine.high %v6915_v61, %v6923_v50  ;;  %v6957_v24 = vcombine.high %v6931_v22, %v6939_v25  ;;  %v6940_v35 = vcombine.low %v6915_v61, %v6923_v50  ;;  %v6956_v47 = vcombine.low %v6931_v22, %v6939_v25  ;;  %v12808_v50 = vld [vmem:[#allocation49_spill] sm:$0xff]  ;;  %v12237_v25 = vld [vmem:[%s9889_s20] sm:$0xff] }
 0x6a1   : > { %v6983_v46 = vrot.slane %v6976_v17, %v12788_v21  ;;  %v6991_v0 = vrot.slane %v8078_v40, %v12788_v21  ;;  %v6999_v28 = vrot.slane %v6992_v55, %v12788_v21  ;;  %v7007_v43 = vrot.slane %v8079_v57, %v12788_v21 }
 0x6a2   : > { %v6955_v34 = vrot.slane %v6941_v41, %v10171_v44  ;;  %v6971_v60 = vrot.slane %v6957_v24, %v10171_v44  ;;  %v6948_v7 = vrot.slane %v6940_v35, %v10171_v44  ;;  %v6964_v16 = vrot.slane %v6956_v47, %v10171_v44  ;;  %v8874_v24 = vld [vmem:[#allocation2] sm:$0xff] }
 0x6a3   : > { %v7009_v56 = vcombine.high %v6983_v46, %v6991_v0  ;;  %v7025_v13 = vcombine.high %v6999_v28, %v7007_v43  ;;  %v7008_v30 = vcombine.low %v6983_v46, %v6991_v0  ;;  %v7024_v15 = vcombine.low %v6999_v28, %v7007_v43  ;;  %v8875_v46 = vld [vmem:[#allocation2 + $0x8] sm:$0xff]  ;;  %v8793_v28 = vld [vmem:[%s9864_s21] ss:$8 sps:$4 sm:$0xff]   ;;  %v8795_v43 = vld [vmem:[%s9864_s21 + $0x4] ss:$8 sps:$4 sm:$0xff]  }
 0x6a4   : > { %v6974_v45 = vcombine.low %v6955_v34, %v6971_v60  ;;  %v6973_v39 = vcombine.high %v6948_v7, %v6964_v16  ;;  %v6975_v53 = vcombine.high %v6955_v34, %v6971_v60  ;;  %v6972_v21 = vcombine.low %v6948_v7, %v6964_v16  ;;  %v8798_v34 = vld [vmem:[%s9864_s21 + $0x14] ss:$8 sps:$4 sm:$0xff]   ;;  %7328 = vmatprep.subr.bf16.mxu0 %v8795_v43  ;;  %v8796_v60 = vld [vmem:[%s9864_s21 + $0x10] ss:$8 sps:$4 sm:$0xff]   ;;  %v8828_v43 = vld [vmem:[%s9891_s26 + $0x28] sm:$0xff]  }
 0x6a5   : > { %v7023_v33 = vrot.slane %v7009_v56, %v10171_v44  ;;  %v7039_v26 = vrot.slane %v7025_v13, %v10171_v44  ;;  %v7016_v9 = vrot.slane %v7008_v30, %v10171_v44  ;;  %v7032_v23 = vrot.slane %v7024_v15, %v10171_v44  ;;  %7329 = vmatpush1.bf16.msra.mxu0 %v8793_v28 }
 0x6a6   : > { %v7095_v22 = vsub.s32 3, %v12808_v50  ;;  %7330 = vmatprep.subr.bf16.mxu0 %v8798_v34  ;;  %v8829_v34 = vld [vmem:[%s9891_s26 + $0x70] sm:$0xff]  }
 0x6a7   : > { %v7042_v36 = vcombine.low %v7023_v33, %v7039_v26  ;;  %v7041_v20 = vcombine.high %v7016_v9, %v7032_v23  ;;  %v7043_v62 = vcombine.high %v7023_v33, %v7039_v26  ;;  %v7040_v31 = vcombine.low %v7016_v9, %v7032_v23  ;;  %v8804_v33 = vld [vmem:[%s9864_s21 + $0x34] ss:$8 sps:$4 sm:$0xff]   ;;  %v8802_v26 = vld [vmem:[%s9864_s21 + $0x30] ss:$8 sps:$4 sm:$0xff]   ;;  %v8807_v9 = vld [vmem:[%s9864_s21 + $0x44] ss:$8 sps:$4 sm:$0xff]  }
 0x6a8   : > { %v7096_v17 = vrot.slane %v12237_v25, %v7095_v22  ;;  %v9312_v23 = vmov 0   ;;  %v7213_v22 = vsub.s32 6, %v12808_v50 }
 0x6a9   : > { %v8743_v4 = vpack.i.bf16 %v7042_v36, %v6974_v45  ;;  %v8738_v8 = vpack.i.bf16 %v7041_v20, %v6973_v39  ;;  %v8748_v3 = vpack.i.bf16 %v7043_v62, %v6975_v53  ;;  %7331 = vmatpush1.bf16.msra.mxu0 %v8796_v60  ;;  %v8799_v53 = vld [vmem:[%s9864_s21 + $0x20] ss:$8 sps:$4 sm:$0xff]   ;;  %7360 = vmatprep.mubr.bf16.mxu0 %v9312_v23  ;;  %v8810_v36 = vld [vmem:[%s9864_s21 + $0x54] ss:$8 sps:$4 sm:$0xff]  }
 0x6aa   : > { %v8817_v20 = vld [vmem:[%s9891_s26 + $0x40] sm:$0xff]   ;;  %v8830_v60 = vld [vmem:[%s9891_s26 + $0x30] sm:$0xff]  }
 0x6ab   : > { %8744 = vrot.lane.b32.xlu0 %v8743_v4, %s9308_s7  ;;  %8739 = vrot.lane.b32.xlu1 %v8738_v8, %s9309_s9  ;;  %v8818_v62 = vld [vmem:[%s9891_s26] sm:$0xff]   ;;  %v8808_v4 = vld [vmem:[%s9864_s21 + $0x50] ss:$8 sps:$4 sm:$0xff]  }
 0x6ac   : > { %v8813_v8 = vld [vmem:[%s9864_s21 + $0x64] ss:$8 sps:$4 sm:$0xff]   ;;  %8261 = vmatprep.subr.bf16.mxu1 %v8817_v20 }
 0x6af   : > { %8749 = vrot.lane.b32.xlu1 %v8748_v3, %s9307_s6  ;;  %v8820_v3 = vld [vmem:[%s9891_s26 + $0x8] sm:$0xff]  }
 0x71d   : > { %v8745_v12 = vpop.permute.xlu0 %8744  ;;  %v8740_v1 = vpop.permute.xlu1 %8739 }
 0x71e   : > { %v8742_v19 = vunpack.i.h.bf16 %v8740_v1  ;;  %v8741_v10 = vunpack.i.l.bf16 %v8740_v1  ;;  %v8747_v44 = vunpack.i.h.bf16 %v8745_v12  ;;  %v8746_v18 = vunpack.i.l.bf16 %v8745_v12  ;;  %v8821_v12 = vld [vmem:[%s9891_s26 + $0x50] sm:$0xff]   ;;  %v8811_v1 = vld [vmem:[%s9864_s21 + $0x60] ss:$8 sps:$4 sm:$0xff]  }
 0x720   : > { %v7068_v42 = vsel %vm6251_vm1, %v6972_v21, %v8741_v10  ;;  %v7069_v59 = vsel %vm6251_vm1, %v7040_v31, %v8742_v19  ;;  %v8801_v21 = vld [vmem:[%s9864_s21 + $0x24] ss:$8 sps:$4 sm:$0xff]   ;;  %v8816_v19 = vld [vmem:[%s9864_s21 + $0x74] ss:$8 sps:$4 sm:$0xff]  }
 0x721   : > { %v8750_v11 = vpop.permute.xlu1 %8749  ;;  %v7071_v63 = vsel %vm7070_vm2, %v7068_v42, %v8746_v18  ;;  %v7072_v51 = vsel %vm7070_vm2, %v7069_v59, %v8747_v44  ;;  %7332 = vmatprep.subr.bf16.mxu0 %v8801_v21  ;;  %v8819_v31 = vld [vmem:[%s9891_s26 + $0x48] sm:$0xff]   ;;  %v8822_v10 = vld [vmem:[%s9891_s26 + $0x10] sm:$0xff]   ;;  %v8823_v44 = vld [vmem:[%s9891_s26 + $0x58] sm:$0xff]  }
 0x722   : > { %v8752_v27 = vunpack.i.h.bf16 %v8750_v11  ;;  %v8751_v52 = vunpack.i.l.bf16 %v8750_v11  ;;  %7333 = vmatpush1.bf16.msra.mxu0 %v8799_v53  ;;  %v8814_v18 = vld [vmem:[%s9864_s21 + $0x70] ss:$8 sps:$4 sm:$0xff]   ;;  %v8825_v59 = vld [vmem:[%s9891_s26 + $0x60] sm:$0xff]  }
 0x723   : > { %7334 = vmatprep.subr.bf16.mxu0 %v8804_v33  ;;  %v8824_v42 = vld [vmem:[%s9891_s26 + $0x18] sm:$0xff]   ;;  %v8826_v11 = vld [vmem:[%s9891_s26 + $0x20] sm:$0xff]  }
 0x724   : > { %v7074_v32 = vsel %vm7073_vm3, %v7071_v63, %v8751_v52  ;;  %v7075_v54 = vsel %vm7073_vm3, %v7072_v51, %v8752_v27  ;;  %v8827_v27 = vld [vmem:[%s9891_s26 + $0x68] sm:$0xff]  }
 0x725   : > { %v7076_v61 = vpack.c.bf16 %v7075_v54, %v7074_v32 }
 0x726   : > { %7335 = vmatpush1.bf16.msra.mxu0 %v8802_v26 }
 0x727   : > { %8544 = vmatmul.mubr.bf16.vlgmr.msra.gmra.mrb[32].mxu1 %v7076_v61  ;;  %7336 = vmatprep.subr.bf16.mxu0 %v8807_v9 }
 0x728   : > { %8262 = vmatpush3.bf16.msra.mxu1 %v8818_v62 }
 0x729   : > { %8263 = vmatprep.subr.bf16.mxu1 %v8819_v31 }
 0x72a   : > { %7337 = vmatpush1.bf16.msra.mxu0 %v8805_v58 }
 0x72b   : > { %7338 = vmatprep.subr.bf16.mxu0 %v8810_v36 }
 0x72c   : > { %8264 = vmatpush3.bf16.msra.mxu1 %v8820_v3 }
 0x72d   : > { %8265 = vmatprep.subr.bf16.mxu1 %v8821_v12 }
 0x72e   : > { %7339 = vmatpush1.bf16.msra.mxu0 %v8808_v4 }
 0x72f   : > { %7340 = vmatprep.subr.bf16.mxu0 %v8813_v8  ;;  %v7411_v8 = vsub.s32 5, %v12808_v50 }
 0x730   : > { %8266 = vmatpush3.bf16.msra.mxu1 %v8822_v10 }
 0x731   : > { %8267 = vmatprep.subr.bf16.mxu1 %v8823_v44  ;;  %v7412_v12 = vrot.slane %v12237_v25, %v7411_v8 }
 0x732   : > { %7341 = vmatpush1.bf16.msra.mxu0 %v8811_v1 }
 0x733   : > { %7342 = vmatprep.subr.bf16.mxu0 %v8816_v19 }
 0x734   : > { %8268 = vmatpush3.bf16.msra.mxu1 %v8824_v42 }
 0x735   : > { %8269 = vmatprep.subr.bf16.mxu1 %v8825_v59 }
 0x736   : > { %7343 = vmatpush1.bf16.msra.mxu0 %v8814_v18 }
 0x738   : > { %8270 = vmatpush3.bf16.msra.mxu1 %v8826_v11 }
 0x739   : > { %8271 = vmatprep.subr.bf16.mxu1 %v8827_v27 }
 0x73c   : > { %8272 = vmatpush3.bf16.msra.mxu1 %v8828_v43 }
 0x73d   : > { %8273 = vmatprep.subr.bf16.mxu1 %v8829_v34 }
 0x740   : > { %8274 = vmatpush3.bf16.msra.mxu1 %v8830_v60 }
 0x7fa   : > { %v7179_v40 = vpop.f32.mrb[32].mxu1 }
 0x7fb   : > { %v7180_v55 = vadd.f32 %v7179_v40, %v7096_v17  ;;  %v8545_v57 = vpop.f32.mrb[33].mxu1  ;;  %v7219_v40 = vsub.s32 7, %v12808_v50 }
 0x7fc   : > { %v7182_v41 = vpop.f32.mrb[34].mxu1 }
 0x7fd   : > { %v7186_v35 = vadd.f32 %v8874_v24, %v7180_v55  ;;  %v7183_v47 = vadd.f32 %v7182_v41, %v7096_v17  ;;  %v8546_v6 = vpop.f32.mrb[35].mxu1  ;;  %v7214_v17 = vrot.slane %v12237_v25, %v7213_v22 }
 0x7ff   : > { %v7187_v0 = vadd.f32 %v8875_v46, %v7183_v47  ;;  %7188 = vadd.xlane.f32.xlu1 %v7186_v35  ;;  %v7220_v47 = vrot.slane %v12237_v25, %v7219_v40 }
 0x801   : > { %7190 = vadd.xlane.f32.xlu0 %v7187_v0 }
 0x88c   : > { %v7189_v7 = vpop.xlane.xlu1 %7188 }
 0x88d   : > { %v7193_v16 = vmul.f32 0.0078125, %v7189_v7  ;;  %v8831_v7 = vld [vmem:[%s9891_s26 + $0x78] sm:$0xff]  }
 0x88e   : > { %v7191_v56 = vpop.xlane.xlu0 %7190  ;;  %8275 = vmatprep.subr.bf16.mxu1 %v8831_v7 }
 0x88f   : > { %v12244_v13 = vsub.f32 %v7186_v35, %v7193_v16  ;;  %v7194_v30 = vmul.f32 0.0078125, %v7191_v56  ;;  %v8832_v16 = vld [vmem:[%s9891_s26 + $0x38] sm:$0xff]   ;;  %v7242_v56 = vsub.s32 4, %v12808_v50  ;;  %s12811_s26 = sld [smem:[#allocation31_spill]] }
 0x890   : > { %8276 = vmatpush3.bf16.msra.mxu1 %v8832_v16 }
 0x891   : > { %v12246_v15 = vsub.f32 %v7187_v0, %v7194_v30  ;;  %v7197_v45 = vmul.f32 %v12244_v13, %v12244_v13  ;;  %v7243_v30 = vrot.slane %v12237_v25, %v7242_v56 }
 0x893   : > { %7199 = vadd.xlane.f32.xlu0 %v7197_v45  ;;  %v7198_v39 = vmul.f32 %v12246_v15, %v12246_v15 }
 0x895   : > { %7201 = vadd.xlane.f32.xlu1 %v7198_v39  ;;  %p8120_p1 = scmp.ne.s32.totalorder %s12811_s26, 1 }
 0x920   : > { %v7200_v52 = vpop.xlane.xlu0 %7199 }
 0x921   : > { %v7203_v63 = vmul.f32 0.0078125, %v7200_v52 }
 0x922   : > { %v7202_v51 = vpop.xlane.xlu1 %7201 }
 0x923   : > { %v7205_v32 = vadd.f32 1e-05, %v7203_v63  ;;  %v7204_v54 = vmul.f32 0.0078125, %v7202_v51 }
 0x925   : > { %8865 = vrsqrt.f32 %v7205_v32  ;;  %v7206_v61 = vadd.f32 1e-05, %v7204_v54 }
 0x927   : > { %8867 = vrsqrt.f32 %v7206_v61 }
 0x92f   : > { %v8866_v55 = vpop.eup %8865 }
 0x930   : > { %v7209_v57 = vmul.f32 %v8866_v55, %v12244_v13  ;;  %v730_v13 = vld [vmem:[%s9889_s20 + $0x8] sm:$0xff] }
 0x931   : > { %v8868_v41 = vpop.eup %8867 }
 0x932   : > { %v7210_v24 = vmul.f32 %v8868_v41, %v12246_v15  ;;  %v7215_v35 = vmul.f32 %v7214_v17, %v7209_v57  ;;  %v7247_v15 = vrot.slane %v730_v13, %v7242_v56 }
 0x934   : > { %v7216_v6 = vmul.f32 %v7214_v17, %v7210_v24  ;;  %v7221_v46 = vadd.f32 %v7220_v47, %v7215_v35  ;;  %v731_v35 = vld [vmem:[%s9889_s20 + $0x10] sm:$0x3] }
 0x936   : > { %v7222_v0 = vadd.f32 %v7220_v47, %v7216_v6  ;;  %v12809_v47 = vsub.s32 0, %v12808_v50 }
 0x938   : > { %v7223_v28 = vpack.c.bf16 %v7222_v0, %v7221_v46  ;;  %v7577_v6 = vrot.slane %v731_v35, %v12809_v47 }
 0x93a   : > { %7361 = vmatmul.mubr.bf16.vlgmr.msra.gmra.mrb[36].mxu0 %v7223_v28 }
 0xa0d   : > { %v7362_v45 = vpop.f32.mrb[36].mxu0 }
 0xa0e   : > { %v7363_v39 = vadd.f32 %v7362_v45, %v7243_v30  ;;  %v7364_v53 = vpop.f32.mrb[37].mxu0 }
 0xa0f   : > { %v7365_v21 = vadd.f32 %v7364_v53, %v7247_v15  ;;  %v7366_v33 = vpop.f32.mrb[38].mxu0 }
 0xa10   : > { %v7367_v26 = vadd.f32 %v7366_v33, %v7243_v30  ;;  %v7368_v9 = vpop.f32.mrb[39].mxu0  ;;  %v7371_v58 = vmax.f32 %v7363_v39, 0.0  ;;  %v7597_v30 = vadd.f32 (!%p8120_p1), %v12095_v37, %v12092_v29 }
 0xa11   : > { %v7369_v23 = vadd.f32 %v7368_v9, %v7247_v15  ;;  %v7372_v20 = vmax.f32 %v7365_v21, 0.0 }
 0xa12   : > { %v7373_v36 = vmax.f32 %v7367_v26, 0.0  ;;  %v7598_v45 = vadd.f32 (!%p8120_p1), %v7597_v30, %v12169_v14 }
 0xa13   : > { %v7374_v62 = vmax.f32 %v7369_v23, 0.0 }
 0xa14   : > { %v7375_v31 = vpack.c.bf16 %v7373_v36, %v7371_v58  ;;  %v7599_v53 = vadd.f32 (!%p8120_p1), %v7598_v45, %v12179_v49 }
 0xa15   : > { %v7376_v4 = vpack.c.bf16 %v7374_v62, %v7372_v20 }
 0xa16   : > { %v7602_v33 = vmul.f32 (!%p8120_p1), 0.25, %v7599_v53 }
 0xa17   : > { %7541 = vmatprep.mubr.bf16.mxu1 %v7376_v4 }
 0xa18   : > { %7542 = vmatmul.mubr.bf16.vlgmr.msra.gmra.mrb[36].mxu1 %v7375_v31  ;;  %7604 = vst [vmem:[%s9895_s22 + $0x8] sm:$0xff] (!%p8120_p1), %v7602_v33 }
 0xaeb   : > { %v8277_v3 = vpop.f32.mrb[36].mxu1 }
 0xaec   : > { %v8278_v1 = vpop.f32.mrb[37].mxu1 }
 0xaed   : > { %v8279_v19 = vadd.f32 %v8278_v1, %v8277_v3  ;;  %v8280_v10 = vpop.f32.mrb[38].mxu1 }
 0xaee   : > { %v8281_v44 = vpop.f32.mrb[39].mxu1 }
 0xaef   : > { %v7544_v18 = vadd.f32 %v8279_v19, %v7412_v12  ;;  %v8282_v42 = vadd.f32 %v8281_v44, %v8280_v10 }
 0xaf1   : > { %v7547_v59 = vadd.f32 %v8282_v42, %v7412_v12  ;;  %v7550_v11 = vadd.f32 %v7544_v18, %v7221_v46 }
 0xaf3   : > { %7552 = vadd.xlane.f32.xlu0 %v7550_v11  ;;  %v7551_v27 = vadd.f32 %v7547_v59, %v7222_v0  ;;  %v12810_v0 = vsub.s32 1, %v12808_v50  ;;  %v7594_v50 = vadd.f32 (!%p8120_p1), %v12101_v2, %v12098_v48 }
 0xaf5   : > { %7554 = vadd.xlane.f32.xlu1 %v7551_v27  ;;  %v7583_v28 = vrot.slane %v731_v35, %v12810_v0  ;;  %v7595_v15 = vadd.f32 (!%p8120_p1), %v7594_v50, %v12166_v5 }
 0xaf7   : > { %v7596_v39 = vadd.f32 (!%p8120_p1), %v7595_v15, %v12176_v38 }
 0xaf9   : > { %v7601_v21 = vmul.f32 (!%p8120_p1), 0.25, %v7596_v39 }
 0xafb   : > { %7603 = vst [vmem:[%s9895_s22] sm:$0xff] (!%p8120_p1), %v7601_v21 }
 0xb80   : > { %v7553_v52 = vpop.xlane.xlu0 %7552 }
 0xb81   : > { %v7556_v63 = vmul.f32 0.0078125, %v7553_v52 }
 0xb82   : > { %v7555_v51 = vpop.xlane.xlu1 %7554 }
 0xb83   : > { %v7558_v32 = vsub.f32 %v7550_v11, %v7556_v63  ;;  %v7557_v54 = vmul.f32 0.0078125, %v7555_v51 }
 0xb85   : > { %v7559_v61 = vsub.f32 %v7551_v27, %v7557_v54  ;;  %v7560_v22 = vmul.f32 %v7558_v32, %v7558_v32 }
 0xb87   : > { %7562 = vadd.xlane.f32.xlu0 %v7560_v22  ;;  %v7561_v25 = vmul.f32 %v7559_v61, %v7559_v61 }
 0xb89   : > { %7564 = vadd.xlane.f32.xlu1 %v7561_v25 }
 0xc14   : > { %v7563_v17 = vpop.xlane.xlu0 %7562 }
 0xc15   : > { %v7566_v40 = vmul.f32 0.0078125, %v7563_v17 }
 0xc16   : > { %v7565_v55 = vpop.xlane.xlu1 %7564 }
 0xc17   : > { %v7568_v57 = vadd.f32 1e-05, %v7566_v40  ;;  %v7567_v41 = vmul.f32 0.0078125, %v7565_v55 }
 0xc19   : > { %8869 = vrsqrt.f32 %v7568_v57  ;;  %v7569_v24 = vadd.f32 1e-05, %v7567_v41 }
 0xc1b   : > { %8871 = vrsqrt.f32 %v7569_v24 }
 0xc23   : > { %v8870_v46 = vpop.eup %8869 }
 0xc24   : > { %v7572_v43 = vmul.f32 %v8870_v46, %v7558_v32 }
 0xc25   : > { %v8872_v34 = vpop.eup %8871 }
 0xc26   : > { %v7578_v60 = vmul.f32 %v7577_v6, %v7572_v43  ;;  %v7573_v7 = vmul.f32 %v8872_v34, %v7559_v61  ;;  %7591 = sbr.rel (%p8120_p1) target bundleno = 3117 (0xc2d), region = 92 }
 0xc28   : > { %v7584_v16 = vadd.f32 %v7583_v28, %v7578_v60  ;;  %v7579_v56 = vmul.f32 %v7577_v6, %v7573_v7 }
 0xc2a   : > { %7586 = vst [vmem:[#allocation2] sm:$0xff] %v7584_v16  ;;  %v7585_v13 = vadd.f32 %v7583_v28, %v7579_v56  ;;  %7592 = vst [vmem:[%s9893_s15] sm:$0xff] (!%p8120_p1), %v7584_v16 }
 0xc2c   : > { %7587 = vst [vmem:[#allocation2 + $0x8] sm:$0xff] %v7585_v13  ;;  %7593 = vst [vmem:[%s9893_s15 + $0x8] sm:$0xff] (!%p8120_p1), %v7585_v13 }
 0xc2d PF: > { %s12812_s20 = sld [smem:[#allocation33_spill]]  ;;  %s7626_s8 = sshll.u32 %s9893_s15, 4  ;;  %s12315_s8 = int_to_ptr.vmem [resolvable:$true] %s7626_s8 }
 0xc2e   : > { %s12813_s5 = sld [smem:[#allocation113_spill]]  ;;  %s7606_s23 = scalar_lea.sflag [#allocation5], %s9871_s19 }
 0xc2f   : > { %s9086_s17 = scalar_lea.vmem %s12315_s8, 256  ;;  %p12814_p0 = scmp.ne.s32.totalorder %s12618_s25, 0 }
 0xc30   : > { %p9087_p2 = scmp.ne.s32.totalorder %s12315_s8, %s9086_s17  ;;  %s9313_s29 = smov [#allocation15]  }
 0xc31   : > { %s9090_s15 = sshll.u32 %s9313_s29, 4  ;;  %s9091_s15 = int_to_ptr.vmem [resolvable:$false] %s9090_s15 }
 0xc32   : > { %p9088_p12 = pnand %p9087_p2, %p12814_p0  ;;  %p9093_p8 = scmp.lt.s32.totalorder %s12315_s8, %s9091_s15 }
 0xc33   : > { %s8124_s10 = sshll.u32 %s12812_s20, 2 }
 0xc34   : > { %s12311_s12 = sadd.s32 %s8124_s10, %s9875_s11  ;;  %p9089_p13 = pneg %p9088_p12 }
 0xc35   : > { %s8125_s4 = sshll.u32 %s12311_s12, 7  ;;  %s9092_s11 = scalar_lea.vmem %s9091_s15, 512 }
 0xc36   : > { %s12322_s21 = scalar_lea.hbm %s12813_s5, %s8125_s4  ;;  %p9094_p3 = scmp.lt.s32.totalorder %s9092_s11, %s9086_s17 }
 0xc38   : > { %p9095_p10 = por %p9094_p3, %p9093_p8 }
 0xc3a   : > { %p9096_p9 = pnand %p9095_p10, %p9089_p13 }
 0xc3c   : > { %9099 = shalt.err (!%p9096_p9)
}
 0xc3d   : > { %s9100_s16 = scalar_lea.hbm %s12322_s21, 256  ;;  %s9104_s13 = scalar_lea.hbm %s12813_s5, 1024 }
 0xc3e   : > { %p9101_p4 = scmp.ne.s32.totalorder %s12322_s21, %s9100_s16  ;;  %p9105_p7 = scmp.lt.u32.totalorder %s12322_s21, %s12813_s5 }
 0xc3f   : > { %p9106_p5 = scmp.lt.u32.totalorder %s9104_s13, %s9100_s16  ;;  %p9108_p2 = scmp.lt.u32.totalorder %s9100_s16, %s12322_s21 }
 0xc40   : > { %p9102_p11 = pnand %p9101_p4, %p12814_p0 }
 0xc41   : > { %p9107_p1 = por %p9106_p5, %p9105_p7 }
 0xc42   : > { %p9103_p6 = pneg %p9102_p11 }
 0xc43   : > { %p9109_p12 = por %p9108_p2, %p9107_p1 }
 0xc45   : > { %p9110_p13 = pnand %p9109_p12, %p9103_p6 }
 0xc47   : > { %9113 = shalt.err (!%p9110_p13)
}
 0xc48   : > { %s9314_s0 = smov 128   ;;  %s9315_s24 = smov 8  }
 0xc49   : > { %8561 = dma.vmem_to_hbm [thread:$0]  (%p12814_p0), %s12315_s8, 256, %s12322_s21, %s7606_s23, %s9314_s0, %s9314_s0, %s9315_s24  }
 0xc4a   : > { %s12815_s7 = sld [smem:[#allocation114_spill]]  ;;  %s7644_s26 = sshll.u32 %s9895_s22, 4  ;;  %s12359_s26 = int_to_ptr.vmem [resolvable:$true] %s7644_s26 }
 0xc4b   : > { %s7611_s20 = scalar_lea.sflag [#allocation17], %s9871_s19  ;;  %s9114_s10 = scalar_lea.vmem %s12359_s26, 256 }
 0xc4c   : > { %p9115_p8 = scmp.ne.s32.totalorder %s12359_s26, %s9114_s10  ;;  %s9316_s18 = smov [#allocation16]  }
 0xc4d   : > { %s9118_s8 = sshll.u32 %s9316_s18, 4  ;;  %s9119_s8 = int_to_ptr.vmem [resolvable:$false] %s9118_s8 }
 0xc4e   : > { %p9116_p3 = pnand %p9115_p8, %p12814_p0  ;;  %s9120_s12 = scalar_lea.vmem %s9119_s8, 512 }
 0xc4f   : > { %p9121_p9 = scmp.lt.s32.totalorder %s12359_s26, %s9119_s8  ;;  %p9122_p4 = scmp.lt.s32.totalorder %s9120_s12, %s9114_s10 }
 0xc50   : > { %s12356_s9 = scalar_lea.hbm %s12815_s7, %s8125_s4  ;;  %p9117_p10 = pneg %p9116_p3 }
 0xc51   : > { %p9123_p11 = por %p9122_p4, %p9121_p9 }
 0xc53   : > { %p9124_p6 = pnand %p9123_p11, %p9117_p10 }
 0xc55   : > { %9127 = shalt.err (!%p9124_p6)
}
 0xc56   : > { %s9128_s22 = scalar_lea.hbm %s12356_s9, 256  ;;  %s9132_s21 = scalar_lea.hbm %s12815_s7, 1024 }
 0xc57   : > { %p9129_p7 = scmp.ne.s32.totalorder %s12356_s9, %s9128_s22  ;;  %p9133_p2 = scmp.lt.u32.totalorder %s12356_s9, %s12815_s7 }
 0xc58   : > { %p9134_p12 = scmp.lt.u32.totalorder %s9132_s21, %s9128_s22  ;;  %p9136_p8 = scmp.lt.u32.totalorder %s9128_s22, %s12356_s9 }
 0xc59   : > { %p9130_p5 = pnand %p9129_p7, %p12814_p0 }
 0xc5a   : > { %p9135_p13 = por %p9134_p12, %p9133_p2 }
 0xc5b   : > { %p9131_p1 = pneg %p9130_p5 }
 0xc5c   : > { %p9137_p3 = por %p9136_p8, %p9135_p13 }
 0xc5e   : > { %p9138_p10 = pnand %p9137_p3, %p9131_p1 }
 0xc60   : > { %9141 = shalt.err (!%p9138_p10)
}
 0xc61   : > { %8562 = dma.vmem_to_hbm [thread:$0]  (%p12814_p0), %s12359_s26, 256, %s12356_s9, %s7611_s20, %s9314_s0, %s9314_s0, %s9315_s24  }
 0xc62 PF: > { %s12816_s29 = sld [smem:[#allocation24_spill]]  ;;  %s12817_s15 = sld [smem:[#allocation40_spill]] }
 0xc63   : > { %p8595_p9 = scmp.ge.s32.totalorder %s9292_s28, 2 }
 0xc68   : > { %s7659_s11 = sand.u32 1, %s12816_s29   ;;  %p12818_p4 = scmp.ne.s32.totalorder %s12817_s15, 0 }
 0xc69   : > { %s7660_s16 = scalar_lea.sflag [#allocation5], %s7659_s11 }
 0xc6a   : > { %p8588_p11 = pnand %p8595_p9, %p12818_p4 }
 0xc6c   : > { %9223 = dma.done.wait (!%p8588_p11), %s7660_s16, 256  }
 0xc6d   : > { %9225 = vsyncadd (!%p8588_p11), %s7660_s16, 4294967040  ;;  %s7669_s25 = scalar_lea.sflag [#allocation17], %s7659_s11 }
 0xc6e   : > { %9227 = dma.done.wait (!%p8588_p11), %s7669_s25, 256  }
 0xc6f   : > { %9229 = vsyncadd (!%p8588_p11), %s7669_s25, 4294967040  ;;  %s39_s28 = sadd.s32 1, %s9292_s28   ;;  %s12820_s13 = sld [smem:[#allocation25_spill]] }
 0xc70   : > { %p12393_p6 = scmp.ge.s32.totalorder %s39_s28, 10   ;;  %s12821_s14 = sld [smem:[#allocation26_spill]] }
 0xc71   : > { %s12822_s15 = sld [smem:[#allocation48_spill]]  ;;  %s12823_s16 = sld [smem:[#allocation27_spill]] }
 0xc72   : > { %s12824_s17 = sld [smem:[#allocation28_spill]]  ;;  %s12825_s18 = sld [smem:[#allocation39_spill]] }
 0xc73   : > { %s12826_s1 = sld [smem:[#allocation29_spill]]  ;;  %s12827_s20 = sld [smem:[#allocation30_spill]] }
 0xc74   : > { %s12828_s21 = sld [smem:[#allocation47_spill]]  ;;  %s12829_s22 = sld [smem:[#allocation34_spill]] }
 0xc75   : > { %s12830_s23 = sld [smem:[#allocation35_spill]]  ;;  %s12831_s24 = sld [smem:[#allocation36_spill]] }
 0xc76   : > { %s12832_s25 = sld [smem:[#allocation37_spill]]  ;;  %s12833_s26 = sld [smem:[#allocation43_spill]] }
 0xc77   : > { %s12834_s27 = sld [smem:[#allocation46_spill]]  ;;  %38 = sbr.rel (!%p12393_p6) target bundleno = 31 (0x1f), region = 204 }
 0xc79   : > { %s12836_s19 = smov %s12826_s1 }
 0xc7e   :  { %7674 = vsyncpa [#allocation4], 1 }
 0xc7f   :  { %7676 = vsyncpa [#allocation4 + $0x1], 1 }
 0xc80   :  { %7677 = vsyncpa [#allocation7], 1 }
 0xc81   :  { %7679 = vsyncpa [#allocation7 + $0x1], 1 }
 0xc82   :  { %7680 = vsyncpa [#allocation10], 1 }
 0xc83   :  { %7682 = vsyncpa [#allocation10 + $0x1], 1 }
 0xc84   :  { %7683 = vsyncpa [#allocation13], 1 }
 0xc85   :  { %7685 = vsyncpa [#allocation13 + $0x1], 1 }
 0xc86   :  { %7686 = vsyncpa [#allocation5], 1 }
 0xc87   :  { %7688 = vsyncpa [#allocation5 + $0x1], 1 }
 0xc88   :  { %7689 = vsyncpa [#allocation17], 1 }
 0xc89   :  { %7691 = vsyncpa [#allocation17 + $0x1], 1 }

</bundles_post_ra>
